<compile_context>
chip_gen: v7x
topology: tpu7x:2x2x1
jax: 0.10.0
libtpu: 0.0.40
codegen_flags: <defaults>
</compile_context>

<pallas_src>
import jax
import jax.numpy as jnp
from jax import lax
from jax.experimental import pallas as pl
from jax.experimental.pallas import tpu as pltpu


# ---------------------------------------------------------------------------
# Pallas kernel: add_on (1x1 conv + sigmoid) -> L2 prototype distances -> min
# ---------------------------------------------------------------------------
def proto_forward_kernel(feat_ref, w_ref, b_ref, pt2_ref, p2_ref, out_ref):
    # feat_ref: (Bblk, Ntile, Cb) bf16  backbone features (NHWC rows)
    # w_ref:    (Cb, Dp)          bf16  add_on 1x1 conv weight (as matmul)
    # b_ref:    (1, Dp)           f32   add_on bias (padded channels = -30)
    # pt2_ref:  (Dp, Pblk)        bf16  2 * prototypes (transposed, lane-padded)
    # p2_ref:   (1, Pblk)         f32   ||proto||^2 (hoisted, loop-invariant)
    # out_ref:  (Bblk, 1, Pblk)   f32   running min of |d2|; sqrt'ed at the end
    n = pl.program_id(2)

    @pl.when(n == 0)
    def _init():
        out_ref[...] = jnp.full(out_ref.shape, jnp.inf, dtype=out_ref.dtype)

    bblk, ntile, cb = feat_ref.shape
    # Merge (Bblk, Ntile) -> rows. Layout-preserving: the wrapper only allows
    # Bblk > 1 when Ntile is a multiple of the bf16 sublane packing (16).
    f = feat_ref[...].reshape(bblk * ntile, cb)

    # add_on: 1x1 conv == channel matmul (bf16 MXU, f32 accumulation) + Sigmoid.
    z = jnp.dot(f, w_ref[...], preferred_element_type=jnp.float32) + b_ref[...]
    x = jax.nn.sigmoid(z)                                        # (rows, Dp) f32
    # TODO(synk): if bundle profiling shows the EUP saturating on v6e/v7x, the
    # sigmoid could run in bf16 there (not on v5e: no bf16 EUP/VPU).

    # L2Conv2D with 1x1 prototypes: d2 = ||x||^2 - 2 x.p + ||p||^2, combined in
    # f32. The factor 2 is folded into pt2 = 2*protos (exact in bf16).
    # NOTE: bf16 MXU operands lose a little precision when a patch nearly
    # matches a prototype; acceptable for min-pooling (|.| + eps guards sign).
    x2 = jnp.sum(x * x, axis=-1, keepdims=True)                  # (rows, 1)
    xp = jnp.dot(x.astype(jnp.bfloat16), pt2_ref[...],
                 preferred_element_type=jnp.float32)             # (rows, Pblk)
    d2 = jnp.abs(x2 - xp + p2_ref[...])

    # sqrt is monotone -> reduce spatially first, sqrt only the (Bblk, P) result.
    tile_min = jnp.min(d2.reshape(bblk, ntile, -1), axis=1, keepdims=True)
    out_ref[...] = jnp.minimum(out_ref[...], tile_min)

    @pl.when(n == pl.num_programs(2) - 1)
    def _finalize():
        out_ref[...] = jnp.sqrt(out_ref[...] + 1e-14)


# ---------------------------------------------------------------------------
# Tiling / budget helpers (generation aware)
# ---------------------------------------------------------------------------
def _round_up(v, m):
    return ((v + m - 1) // m) * m


def _tpu_generation():
    """Return (vmem_capacity_bytes, tensorcores_per_device) with safe fallbacks."""
    kind = ""
    try:
        kind = jax.devices()[0].device_kind.lower()
    except Exception:
        pass
    vmem = None
    try:
        vmem = int(pltpu.get_tpu_info().vmem_capacity_bytes)
    except Exception:
        vmem = None
    is_v7 = ("v7" in kind) or (vmem is not None and vmem <= (64 << 20))
    if vmem is None:
        vmem = (64 << 20) if is_v7 else (128 << 20)
    cores = 2 if (is_v7 or "v4" in kind or "v5p" in kind) else 1
    return vmem, cores


def _pick_spatial_tile(N, max_rows, sub):
    """Largest divisor of N that is <= max_rows and a multiple of `sub`;
    falls back to the full axis (always legal as a BlockSpec dim)."""
    upper = min(N, max(max_rows, sub))
    for cand in range(upper, 0, -1):
        if N % cand == 0 and cand % sub == 0:
            return cand
    return N


def _pick_batch_block(B, Ntile, target_rows, num_cores, sub):
    """Largest divisor of B with Bblk*Ntile <= target_rows. Bblk > 1 only when
    Ntile is sublane-aligned (layout-preserving batch flatten). On multi-TC
    chips keep >= 2 batch grid steps so both cores get work."""
    if Ntile % sub != 0:
        return 1
    best = 1
    for cand in range(1, B + 1):
        if B % cand != 0:
            continue
        if cand * Ntile > target_rows:
            continue
        if num_cores >= 2 and B >= 2 and B // cand < 2:
            continue
        best = cand
    return best


def _estimate_vmem_bytes(Bblk, Ntile, Cb, Dp, Pblk):
    rows = Bblk * Ntile
    feat = 2 * rows * Cb * 2                                        # bf16, dbl-buffered
    consts = 2 * (Cb * Dp * 2 + Dp * 4 + Dp * Pblk * 2 + Pblk * 4)  # worst case 2x
    out = 2 * Bblk * Pblk * 4
    interm = rows * (2 * Dp + Pblk + 2) * 4                         # z/x, xp/d2, x2
    return feat + consts + out + interm


# ---------------------------------------------------------------------------
# Wrapper: pad, cast, tile, and call the kernel
# ---------------------------------------------------------------------------
def proto_base_min_distances(features_bnc, add_on_w, add_on_b, protos_t,
                             *, target_rows=None):
    """features_bnc: (B, N, Cb); add_on_w: (Cb, D); add_on_b: (D,);
    protos_t: (D, P). Returns (B, P) min L2 distances."""
    B, N, Cb = features_bnc.shape
    D, P = protos_t.shape

    vmem_cap, num_cores = _tpu_generation()
    small_vmem = vmem_cap <= (64 << 20)               # v7x-class chip
    scoped_cap = (48 << 20) if small_vmem else (108 << 20)
    default_rows = 2048 if small_vmem else 4096

    # Lane-dense padding: P to a multiple of 128 (dummy zero prototypes, sliced
    # off afterwards) and D to a multiple of 128 (zero weight cols, bias = -30,
    # zero prototype rows) -> unmasked stores, full MXU tiles.
    P_pad = _round_up(P, 128)
    D_pad = _round_up(D, 128)

    w_pad = jnp.zeros((Cb, D_pad), jnp.float32).at[:, :D].set(
        add_on_w.astype(jnp.float32))
    b_pad = jnp.full((1, D_pad), -30.0, jnp.float32).at[0, :D].set(
        add_on_b.astype(jnp.float32))
    protos_pad = jnp.zeros((D_pad, P_pad), jnp.float32).at[:D, :P].set(
        protos_t.astype(jnp.float32))

    # Hoisted loop-invariant ||proto||^2 and MXU-ready bf16 operands.
    p2 = jnp.sum(protos_pad * protos_pad, axis=0, keepdims=True)    # (1, P_pad)
    w_bf = w_pad.astype(jnp.bfloat16)
    pt2_bf = (2.0 * protos_pad).astype(jnp.bfloat16)                # exact x2 scale
    feats_bf = features_bnc.astype(jnp.bfloat16)                    # halves feat DMA

    # Row budget per grid step, derived from the scoped-VMEM cap.
    sub = 16                                                        # bf16 sublane pack
    fixed = Cb * D_pad * 2 + D_pad * 4 + D_pad * P_pad * 2 + P_pad * 4
    per_row = 2 * Cb * 2 + (2 * D_pad + P_pad + 2) * 4
    auto_rows = max(sub, (int(0.6 * scoped_cap) - fixed) // per_row)
    rows_budget = int(min(default_rows if target_rows is None else target_rows,
                          auto_rows))

    Ntile = _pick_spatial_tile(N, rows_budget, sub)
    Bblk = _pick_batch_block(B, Ntile, rows_budget, num_cores, sub)
    bgrid, ngrid = B // Bblk, N // Ntile

    # On multi-TC chips with too few batch steps, split the prototype (lane)
    # axis into a second "parallel" grid axis so both TensorCores get work.
    pgrid = 1
    if num_cores >= 2 and bgrid < num_cores and P_pad % (128 * num_cores) == 0:
        pgrid = num_cores
    P_blk = P_pad // pgrid

    grid = (pgrid, bgrid, ngrid)
    vmem_limit = int(min(scoped_cap,
                         max(32 << 20,
                             2 * _estimate_vmem_bytes(Bblk, Ntile, Cb,
                                                      D_pad, P_blk))))

    def build(single_buffer_consts):
        const_kw = ({"pipeline_mode": pl.Buffered(1)}
                    if single_buffer_consts else {})
        return pl.pallas_call(
            proto_forward_kernel,
            out_shape=jax.ShapeDtypeStruct((B, 1, P_pad), jnp.float32),
            grid_spec=pltpu.PrefetchScalarGridSpec(
                num_scalar_prefetch=0,
                grid=grid,
                in_specs=[
                    pl.BlockSpec((Bblk, Ntile, Cb), lambda p, b, n: (b, n, 0)),
                    pl.BlockSpec((Cb, D_pad), lambda p, b, n: (0, 0), **const_kw),
                    pl.BlockSpec((1, D_pad), lambda p, b, n: (0, 0), **const_kw),
                    pl.BlockSpec((D_pad, P_blk), lambda p, b, n: (0, p), **const_kw),
                    pl.BlockSpec((1, P_blk), lambda p, b, n: (0, p), **const_kw),
                ],
                out_specs=pl.BlockSpec((Bblk, 1, P_blk),
                                       lambda p, b, n: (b, 0, p)),
            ),
            compiler_params=pltpu.CompilerParams(
                dimension_semantics=("parallel", "parallel", "arbitrary"),
                vmem_limit_bytes=vmem_limit),
        )

    args = (feats_bf, w_bf, b_pad, pt2_bf, p2)
    try:
        out = build(True)(*args)   # loop-invariant operands single-buffered
    except Exception:
        out = build(False)(*args)  # fallback: default double buffering

    return out[:, 0, :P]


# ---------------------------------------------------------------------------
# Plain-JAX glue: stand-in backbone (external pluggable nn.Module in the spec)
# ---------------------------------------------------------------------------
def backbone_fn(x_nchw, conv_w, conv_b):
    """Simple 3x3 valid conv + ReLU, NCHW in / NCHW out."""
    y = lax.conv_general_dilated(
        x_nchw, conv_w,
        window_strides=(1, 1), padding="VALID",
        dimension_numbers=("NCHW", "OIHW", "NCHW"))
    y = y + conv_b[None, :, None, None]
    return jnp.maximum(y, 0.0)


def _features_bnc(x_nchw, params):
    feats = backbone_fn(x_nchw, params["bb_w"], params["bb_b"])     # (B, Cb, Hf, Wf)
    B, Cb, Hf, Wf = feats.shape
    # NCHW -> NHWC -> (B, N, Cb): channels on the lane (last) axis.
    return jnp.transpose(feats, (0, 2, 3, 1)).reshape(B, Hf * Wf, Cb)


def proto_base_forward(x_nchw, params):
    feats_bnc = _features_bnc(x_nchw, params)
    return proto_base_min_distances(
        feats_bnc, params["addon_w"], params["addon_b"], params["protos_t"])


# Pure-JAX reference of the same math. With bf16_matmul=True it mirrors the
# kernel's MXU casts (tight check); with False it is the exact f32 module math.
def proto_base_forward_ref(x_nchw, params, *, bf16_matmul=True):
    feats_bnc = _features_bnc(x_nchw, params)
    w, b, pt = params["addon_w"], params["addon_b"], params["protos_t"]
    cast = (lambda a: a.astype(jnp.bfloat16)) if bf16_matmul else (lambda a: a)
    z = jnp.einsum("bnc,cd->bnd", cast(feats_bnc), cast(w),
                   preferred_element_type=jnp.float32) + b[None, None, :]
    x = jax.nn.sigmoid(z)
    x2 = jnp.sum(x * x, axis=-1, keepdims=True)
    p2 = jnp.sum(pt * pt, axis=0)[None, None, :]
    xp = jnp.einsum("bnd,dp->bnp", cast(x), cast(pt),
                    preferred_element_type=jnp.float32)
    d = jnp.sqrt(jnp.abs(x2 - 2.0 * xp + p2) + 1e-14)  # original order: sqrt then min
    return jnp.min(d, axis=1)


if __name__ == "__main__":
    key = jax.random.PRNGKey(0)
    k_x, k_bb, k_addon, k_proto = jax.random.split(key, 4)

    # Small, forward-consistent shapes.
    B, Cin, H, W = 2, 3, 18, 18       # input images (NCHW)
    Cb = 16                           # backbone output channels
    D = 32                            # prototype channels, proto_shape = (D, 1, 1)
    P = 8                             # num_prototypes
    # backbone 3x3 valid conv: 18x18 -> 16x16 feature map (N = 256 patches)

    x = jax.random.normal(k_x, (B, Cin, H, W), dtype=jnp.float32)

    params = {
        # backbone (stand-in for the pretrained feature net)
        "bb_w": 0.1 * jax.random.normal(k_bb, (Cb, Cin, 3, 3), dtype=jnp.float32),
        "bb_b": jnp.zeros((Cb,), dtype=jnp.float32),
        # default add_on: Conv2d(Cb, D, kernel_size=1) + Sigmoid
        "addon_w": 0.1 * jax.random.normal(k_addon, (Cb, D), dtype=jnp.float32),
        "addon_b": jnp.zeros((D,), dtype=jnp.float32),
        # L2Conv2D prototypes: Normal(mean=0.5, std=0.1), shape (P, D, 1, 1) -> (D, P)
        "protos_t": (0.5 + 0.1 * jax.random.normal(k_proto, (P, D, 1, 1),
                                                   dtype=jnp.float32)
                     ).reshape(P, D).T,
    }
    # TODO(synk): prototypes with spatial extent > 1x1 would need an unfold
    # (patch extraction) between add_on and the distance kernel.

    out = jax.block_until_ready(proto_base_forward(x, params))                 # (B, P)
    ref_bf16 = jax.block_until_ready(proto_base_forward_ref(x, params, bf16_matmul=True))
    ref_f32 = jax.block_until_ready(proto_base_forward_ref(x, params, bf16_matmul=False))

    assert out.shape == (B, P), out.shape
    # Tight check against the reference that mirrors the kernel's bf16 MXU casts.
    assert jnp.allclose(out, ref_bf16, atol=1e-3, rtol=1e-3), (out, ref_bf16)
    # Loose sanity check against the exact f32 module math (bf16 rounding slack).
    assert jnp.allclose(out, ref_f32, atol=1e-1, rtol=1e-1), (out, ref_f32)
    print("KERNEL_OK")
</pallas_src>

<mosaic_0001>
module attributes {stable_mosaic.version = 11 : i64} {
  func.func @proto_forward_kernel(%arg0: i32, %arg1: i32, %arg2: i32, %arg3: memref<2x256x16xbf16, #tpu.memory_space<vmem>>, %arg4: memref<16x128xbf16, #tpu.memory_space<vmem>>, %arg5: memref<1x128xf32, #tpu.memory_space<vmem>>, %arg6: memref<128x128xbf16, #tpu.memory_space<vmem>>, %arg7: memref<1x128xf32, #tpu.memory_space<vmem>>, %arg8: memref<2x1x128xf32, #tpu.memory_space<vmem>>) attributes {dimension_semantics = [#tpu.dimension_semantics<parallel>, #tpu.dimension_semantics<parallel>, #tpu.dimension_semantics<arbitrary>], iteration_bounds = array<i64: 1, 1, 1>, scalar_prefetch = 0 : i64, scratch_operands = 0 : i64, tpu.core_type = #tpu.core_type<tc>, window_params = [{transform_indices = @transform_0, window_bounds = array<i64: 2, 256, 16>}, {pipeline_mode = #tpu.pipeline_mode<synchronous>, transform_indices = @transform_1, window_bounds = array<i64: 16, 128>}, {pipeline_mode = #tpu.pipeline_mode<synchronous>, transform_indices = @transform_2, window_bounds = array<i64: 1, 128>}, {pipeline_mode = #tpu.pipeline_mode<synchronous>, transform_indices = @transform_3, window_bounds = array<i64: 128, 128>}, {pipeline_mode = #tpu.pipeline_mode<synchronous>, transform_indices = @transform_4, window_bounds = array<i64: 1, 128>}, {transform_indices = @transform_5, window_bounds = array<i64: 2, 1, 128>}]} {
    %c0_i32 = arith.constant 0 : i32
    %0 = arith.cmpi eq, %arg2, %c0_i32 : i32
    %1 = arith.extui %0 : i1 to i32
    %c0_i32_0 = arith.constant 0 : i32
    %2 = arith.cmpi ne, %1, %c0_i32_0 : i32
    scf.if %2 {
      %cst_23 = arith.constant 0x7F800000 : f32
      %36 = vector.broadcast %cst_23 : f32 to vector<2x1x128xf32>
      %c0_24 = arith.constant 0 : index
      %c0_25 = arith.constant 0 : index
      %c0_26 = arith.constant 0 : index
      %37 = vector.load %arg8[%c0_24, %c0_25, %c0_26] : memref<2x1x128xf32, #tpu.memory_space<vmem>>, vector<2x1x128xf32>
      tpu.vector_store %arg8[%c0_24, %c0_25, %c0_26], %36 {strides = array<i32>} : memref<2x1x128xf32, #tpu.memory_space<vmem>>, vector<2x1x128xf32>,
    } else {
    }
    %c0 = arith.constant 0 : index
    %c0_1 = arith.constant 0 : index
    %c0_2 = arith.constant 0 : index
    %3 = vector.load %arg3[%c0, %c0_1, %c0_2] : memref<2x256x16xbf16, #tpu.memory_space<vmem>>, vector<2x256x16xbf16>
    %4 = vector.shape_cast %3 : vector<2x256x16xbf16> to vector<512x16xbf16>
    %c0_3 = arith.constant 0 : index
    %c0_4 = arith.constant 0 : index
    %5 = vector.load %arg4[%c0_3, %c0_4] : memref<16x128xbf16, #tpu.memory_space<vmem>>, vector<16x128xbf16>
    %cst = arith.constant dense<0.000000e+00> : vector<512x128xf32>
    %6 = tpu.matmul %4, %5, %cst {dimension_numbers = #tpu.dot_dimension_numbers<[1], [0], [0], [1], [0, 0, 1, 1], [], []>} : vector<512x16xbf16>, vector<16x128xbf16>, vector<512x128xf32> -> vector<512x128xf32>
    %c0_5 = arith.constant 0 : index
    %c0_6 = arith.constant 0 : index
    %7 = vector.load %arg5[%c0_5, %c0_6] : memref<1x128xf32, #tpu.memory_space<vmem>>, vector<1x128xf32>
    %8 = vector.broadcast %7 : vector<1x128xf32> to vector<512x128xf32>
    %9 = arith.addf %6, %8 : vector<512x128xf32>
    %10 = arith.negf %9 : vector<512x128xf32>
    %11 = math.exp %10 : vector<512x128xf32>
    %cst_7 = arith.constant 1.000000e+00 : f32
    %12 = vector.broadcast %cst_7 : f32 to vector<512x128xf32>
    %13 = arith.addf %12, %11 : vector<512x128xf32>
    %14 = arith.divf %12, %13 : vector<512x128xf32>
    %15 = arith.mulf %14, %14 : vector<512x128xf32>
    %cst_8 = arith.constant dense<0.000000e+00> : vector<512xf32>
    %16 = vector.multi_reduction <add>, %15, %cst_8 [1] : vector<512x128xf32> to vector<512xf32>
    %17 = vector.shape_cast %16 : vector<512xf32> to vector<512x1xf32>
    %18 = arith.truncf %14 : vector<512x128xf32> to vector<512x128xbf16>
    %c0_9 = arith.constant 0 : index
    %c0_10 = arith.constant 0 : index
    %19 = vector.load %arg6[%c0_9, %c0_10] : memref<128x128xbf16, #tpu.memory_space<vmem>>, vector<128x128xbf16>
    %cst_11 = arith.constant dense<0.000000e+00> : vector<512x128xf32>
    %20 = tpu.matmul %18, %19, %cst_11 {dimension_numbers = #tpu.dot_dimension_numbers<[1], [0], [0], [1], [0, 0, 1, 1], [], []>} : vector<512x128xbf16>, vector<128x128xbf16>, vector<512x128xf32> -> vector<512x128xf32>
    %21 = vector.broadcast %17 : vector<512x1xf32> to vector<512x128xf32>
    %22 = arith.subf %21, %20 : vector<512x128xf32>
    %c0_12 = arith.constant 0 : index
    %c0_13 = arith.constant 0 : index
    %23 = vector.load %arg7[%c0_12, %c0_13] : memref<1x128xf32, #tpu.memory_space<vmem>>, vector<1x128xf32>
    %24 = vector.broadcast %23 : vector<1x128xf32> to vector<512x128xf32>
    %25 = arith.addf %22, %24 : vector<512x128xf32>
    %26 = math.absf %25 : vector<512x128xf32>
    %27 = vector.shape_cast %26 : vector<512x128xf32> to vector<2x256x128xf32>
    %cst_14 = arith.constant dense<0x7F800000> : vector<2x128xf32>
    %28 = vector.multi_reduction <minimumf>, %27, %cst_14 [1] : vector<2x256x128xf32> to vector<2x128xf32>
    %29 = vector.shape_cast %28 : vector<2x128xf32> to vector<2x1x128xf32>
    %c0_15 = arith.constant 0 : index
    %c0_16 = arith.constant 0 : index
    %c0_17 = arith.constant 0 : index
    %30 = vector.load %arg8[%c0_15, %c0_16, %c0_17] : memref<2x1x128xf32, #tpu.memory_space<vmem>>, vector<2x1x128xf32>
    %31 = arith.minimumf %30, %29 : vector<2x1x128xf32>
    %c0_18 = arith.constant 0 : index
    %c0_19 = arith.constant 0 : index
    %c0_20 = arith.constant 0 : index
    %32 = vector.load %arg8[%c0_18, %c0_19, %c0_20] : memref<2x1x128xf32, #tpu.memory_space<vmem>>, vector<2x1x128xf32>
    tpu.vector_store %arg8[%c0_18, %c0_19, %c0_20], %31 {strides = array<i32>} : memref<2x1x128xf32, #tpu.memory_space<vmem>>, vector<2x1x128xf32>,
    %c0_i32_21 = arith.constant 0 : i32
    %33 = arith.cmpi eq, %arg2, %c0_i32_21 : i32
    %34 = arith.extui %33 : i1 to i32
    %c0_i32_22 = arith.constant 0 : i32
    %35 = arith.cmpi ne, %34, %c0_i32_22 : i32
    scf.if %35 {
      %c0_23 = arith.constant 0 : index
      %c0_24 = arith.constant 0 : index
      %c0_25 = arith.constant 0 : index
      %36 = vector.load %arg8[%c0_23, %c0_24, %c0_25] : memref<2x1x128xf32, #tpu.memory_space<vmem>>, vector<2x1x128xf32>
      %cst_26 = arith.constant 9.99999982E-15 : f32
      %37 = vector.broadcast %cst_26 : f32 to vector<2x1x128xf32>
      %38 = arith.addf %36, %37 : vector<2x1x128xf32>
      %39 = math.sqrt %38 : vector<2x1x128xf32>
      %c0_27 = arith.constant 0 : index
      %c0_28 = arith.constant 0 : index
      %c0_29 = arith.constant 0 : index
      %40 = vector.load %arg8[%c0_27, %c0_28, %c0_29] : memref<2x1x128xf32, #tpu.memory_space<vmem>>, vector<2x1x128xf32>
      tpu.vector_store %arg8[%c0_27, %c0_28, %c0_29], %39 {strides = array<i32>} : memref<2x1x128xf32, #tpu.memory_space<vmem>>, vector<2x1x128xf32>,
    } else {
    }
    return
  }
  func.func @transform_0(%arg0: i32, %arg1: i32, %arg2: i32) -> (i32, i32, i32) {
    %c0_i32 = arith.constant 0 : i32
    %c0_i32_0 = arith.constant 0 : i32
    return %arg1, %arg2, %c0_i32 : i32, i32, i32
  }
  func.func @transform_1(%arg0: i32, %arg1: i32, %arg2: i32) -> (i32, i32) {
    %c0_i32 = arith.constant 0 : i32
    %c0_i32_0 = arith.constant 0 : i32
    %c0_i32_1 = arith.constant 0 : i32
    return %c0_i32, %c0_i32_0 : i32, i32
  }
  func.func @transform_2(%arg0: i32, %arg1: i32, %arg2: i32) -> (i32, i32) {
    %c0_i32 = arith.constant 0 : i32
    %c0_i32_0 = arith.constant 0 : i32
    %c0_i32_1 = arith.constant 0 : i32
    return %c0_i32, %c0_i32_0 : i32, i32
  }
  func.func @transform_3(%arg0: i32, %arg1: i32, %arg2: i32) -> (i32, i32) {
    %c0_i32 = arith.constant 0 : i32
    %c0_i32_0 = arith.constant 0 : i32
    return %c0_i32, %arg0 : i32, i32
  }
  func.func @transform_4(%arg0: i32, %arg1: i32, %arg2: i32) -> (i32, i32) {
    %c0_i32 = arith.constant 0 : i32
    %c0_i32_0 = arith.constant 0 : i32
    return %c0_i32, %arg0 : i32, i32
  }
  func.func @transform_5(%arg0: i32, %arg1: i32, %arg2: i32) -> (i32, i32, i32) {
    %c0_i32 = arith.constant 0 : i32
    %c0_i32_0 = arith.constant 0 : i32
    return %arg1, %c0_i32, %arg0 : i32, i32, i32
  }
}

module attributes {stable_mosaic.version = 11 : i64} {
  func.func @proto_forward_kernel(%arg0: i32, %arg1: i32, %arg2: i32, %arg3: memref<2x256x16xbf16, #tpu.memory_space<vmem>>, %arg4: memref<16x128xbf16, #tpu.memory_space<vmem>>, %arg5: memref<1x128xf32, #tpu.memory_space<vmem>>, %arg6: memref<128x128xbf16, #tpu.memory_space<vmem>>, %arg7: memref<1x128xf32, #tpu.memory_space<vmem>>, %arg8: memref<2x1x128xf32, #tpu.memory_space<vmem>>) attributes {dimension_semantics = [#tpu.dimension_semantics<parallel>, #tpu.dimension_semantics<parallel>, #tpu.dimension_semantics<arbitrary>], iteration_bounds = array<i64: 1, 1, 1>, scalar_prefetch = 0 : i64, scratch_operands = 0 : i64, tpu.core_type = #tpu.core_type<tc>, window_params = [{transform_indices = @transform_0, window_bounds = array<i64: 2, 256, 16>}, {pipeline_mode = #tpu.pipeline_mode<synchronous>, transform_indices = @transform_1, window_bounds = array<i64: 16, 128>}, {pipeline_mode = #tpu.pipeline_mode<synchronous>, transform_indices = @transform_2, window_bounds = array<i64: 1, 128>}, {transform_indices = @transform_3, window_bounds = array<i64: 128, 128>}, {transform_indices = @transform_4, window_bounds = array<i64: 1, 128>}, {transform_indices = @transform_5, window_bounds = array<i64: 2, 1, 128>}]} {
    %c0_i32 = arith.constant 0 : i32
    %0 = arith.cmpi eq, %arg2, %c0_i32 : i32
    %1 = arith.extui %0 : i1 to i32
    %c0_i32_0 = arith.constant 0 : i32
    %2 = arith.cmpi ne, %1, %c0_i32_0 : i32
    scf.if %2 {
      %cst_23 = arith.constant 0x7F800000 : f32
      %36 = vector.broadcast %cst_23 : f32 to vector<2x1x128xf32>
      %c0_24 = arith.constant 0 : index
      %c0_25 = arith.constant 0 : index
      %c0_26 = arith.constant 0 : index
      %37 = vector.load %arg8[%c0_24, %c0_25, %c0_26] : memref<2x1x128xf32, #tpu.memory_space<vmem>>, vector<2x1x128xf32>
      tpu.vector_store %arg8[%c0_24, %c0_25, %c0_26], %36 {strides = array<i32>} : memref<2x1x128xf32, #tpu.memory_space<vmem>>, vector<2x1x128xf32>,
    } else {
    }
    %c0 = arith.constant 0 : index
    %c0_1 = arith.constant 0 : index
    %c0_2 = arith.constant 0 : index
    %3 = vector.load %arg3[%c0, %c0_1, %c0_2] : memref<2x256x16xbf16, #tpu.memory_space<vmem>>, vector<2x256x16xbf16>
    %4 = vector.shape_cast %3 : vector<2x256x16xbf16> to vector<512x16xbf16>
    %c0_3 = arith.constant 0 : index
    %c0_4 = arith.constant 0 : index
    %5 = vector.load %arg4[%c0_3, %c0_4] : memref<16x128xbf16, #tpu.memory_space<vmem>>, vector<16x128xbf16>
    %cst = arith.constant dense<0.000000e+00> : vector<512x128xf32>
    %6 = tpu.matmul %4, %5, %cst {dimension_numbers = #tpu.dot_dimension_numbers<[1], [0], [0], [1], [0, 0, 1, 1], [], []>} : vector<512x16xbf16>, vector<16x128xbf16>, vector<512x128xf32> -> vector<512x128xf32>
    %c0_5 = arith.constant 0 : index
    %c0_6 = arith.constant 0 : index
    %7 = vector.load %arg5[%c0_5, %c0_6] : memref<1x128xf32, #tpu.memory_space<vmem>>, vector<1x128xf32>
    %8 = vector.broadcast %7 : vector<1x128xf32> to vector<512x128xf32>
    %9 = arith.addf %6, %8 : vector<512x128xf32>
    %10 = arith.negf %9 : vector<512x128xf32>
    %11 = math.exp %10 : vector<512x128xf32>
    %cst_7 = arith.constant 1.000000e+00 : f32
    %12 = vector.broadcast %cst_7 : f32 to vector<512x128xf32>
    %13 = arith.addf %12, %11 : vector<512x128xf32>
    %14 = arith.divf %12, %13 : vector<512x128xf32>
    %15 = arith.mulf %14, %14 : vector<512x128xf32>
    %cst_8 = arith.constant dense<0.000000e+00> : vector<512xf32>
    %16 = vector.multi_reduction <add>, %15, %cst_8 [1] : vector<512x128xf32> to vector<512xf32>
    %17 = vector.shape_cast %16 : vector<512xf32> to vector<512x1xf32>
    %18 = arith.truncf %14 : vector<512x128xf32> to vector<512x128xbf16>
    %c0_9 = arith.constant 0 : index
    %c0_10 = arith.constant 0 : index
    %19 = vector.load %arg6[%c0_9, %c0_10] : memref<128x128xbf16, #tpu.memory_space<vmem>>, vector<128x128xbf16>
    %cst_11 = arith.constant dense<0.000000e+00> : vector<512x128xf32>
    %20 = tpu.matmul %18, %19, %cst_11 {dimension_numbers = #tpu.dot_dimension_numbers<[1], [0], [0], [1], [0, 0, 1, 1], [], []>} : vector<512x128xbf16>, vector<128x128xbf16>, vector<512x128xf32> -> vector<512x128xf32>
    %21 = vector.broadcast %17 : vector<512x1xf32> to vector<512x128xf32>
    %22 = arith.subf %21, %20 : vector<512x128xf32>
    %c0_12 = arith.constant 0 : index
    %c0_13 = arith.constant 0 : index
    %23 = vector.load %arg7[%c0_12, %c0_13] : memref<1x128xf32, #tpu.memory_space<vmem>>, vector<1x128xf32>
    %24 = vector.broadcast %23 : vector<1x128xf32> to vector<512x128xf32>
    %25 = arith.addf %22, %24 : vector<512x128xf32>
    %26 = math.absf %25 : vector<512x128xf32>
    %27 = vector.shape_cast %26 : vector<512x128xf32> to vector<2x256x128xf32>
    %cst_14 = arith.constant dense<0x7F800000> : vector<2x128xf32>
    %28 = vector.multi_reduction <minimumf>, %27, %cst_14 [1] : vector<2x256x128xf32> to vector<2x128xf32>
    %29 = vector.shape_cast %28 : vector<2x128xf32> to vector<2x1x128xf32>
    %c0_15 = arith.constant 0 : index
    %c0_16 = arith.constant 0 : index
    %c0_17 = arith.constant 0 : index
    %30 = vector.load %arg8[%c0_15, %c0_16, %c0_17] : memref<2x1x128xf32, #tpu.memory_space<vmem>>, vector<2x1x128xf32>
    %31 = arith.minimumf %30, %29 : vector<2x1x128xf32>
    %c0_18 = arith.constant 0 : index
    %c0_19 = arith.constant 0 : index
    %c0_20 = arith.constant 0 : index
    %32 = vector.load %arg8[%c0_18, %c0_19, %c0_20] : memref<2x1x128xf32, #tpu.memory_space<vmem>>, vector<2x1x128xf32>
    tpu.vector_store %arg8[%c0_18, %c0_19, %c0_20], %31 {strides = array<i32>} : memref<2x1x128xf32, #tpu.memory_space<vmem>>, vector<2x1x128xf32>,
    %c0_i32_21 = arith.constant 0 : i32
    %33 = arith.cmpi eq, %arg2, %c0_i32_21 : i32
    %34 = arith.extui %33 : i1 to i32
    %c0_i32_22 = arith.constant 0 : i32
    %35 = arith.cmpi ne, %34, %c0_i32_22 : i32
    scf.if %35 {
      %c0_23 = arith.constant 0 : index
      %c0_24 = arith.constant 0 : index
      %c0_25 = arith.constant 0 : index
      %36 = vector.load %arg8[%c0_23, %c0_24, %c0_25] : memref<2x1x128xf32, #tpu.memory_space<vmem>>, vector<2x1x128xf32>
      %cst_26 = arith.constant 9.99999982E-15 : f32
      %37 = vector.broadcast %cst_26 : f32 to vector<2x1x128xf32>
      %38 = arith.addf %36, %37 : vector<2x1x128xf32>
      %39 = math.sqrt %38 : vector<2x1x128xf32>
      %c0_27 = arith.constant 0 : index
      %c0_28 = arith.constant 0 : index
      %c0_29 = arith.constant 0 : index
      %40 = vector.load %arg8[%c0_27, %c0_28, %c0_29] : memref<2x1x128xf32, #tpu.memory_space<vmem>>, vector<2x1x128xf32>
      tpu.vector_store %arg8[%c0_27, %c0_28, %c0_29], %39 {strides = array<i32>} : memref<2x1x128xf32, #tpu.memory_space<vmem>>, vector<2x1x128xf32>,
    } else {
    }
    return
  }
  func.func @transform_0(%arg0: i32, %arg1: i32, %arg2: i32) -> (i32, i32, i32) {
    %c0_i32 = arith.constant 0 : i32
    %c0_i32_0 = arith.constant 0 : i32
    return %arg1, %arg2, %c0_i32 : i32, i32, i32
  }
  func.func @transform_1(%arg0: i32, %arg1: i32, %arg2: i32) -> (i32, i32) {
    %c0_i32 = arith.constant 0 : i32
    %c0_i32_0 = arith.constant 0 : i32
    %c0_i32_1 = arith.constant 0 : i32
    return %c0_i32, %c0_i32_0 : i32, i32
  }
  func.func @transform_2(%arg0: i32, %arg1: i32, %arg2: i32) -> (i32, i32) {
    %c0_i32 = arith.constant 0 : i32
    %c0_i32_0 = arith.constant 0 : i32
    %c0_i32_1 = arith.constant 0 : i32
    return %c0_i32, %c0_i32_0 : i32, i32
  }
  func.func @transform_3(%arg0: i32, %arg1: i32, %arg2: i32) -> (i32, i32) {
    %c0_i32 = arith.constant 0 : i32
    %c0_i32_0 = arith.constant 0 : i32
    return %c0_i32, %arg0 : i32, i32
  }
  func.func @transform_4(%arg0: i32, %arg1: i32, %arg2: i32) -> (i32, i32) {
    %c0_i32 = arith.constant 0 : i32
    %c0_i32_0 = arith.constant 0 : i32
    return %c0_i32, %arg0 : i32, i32
  }
  func.func @transform_5(%arg0: i32, %arg1: i32, %arg2: i32) -> (i32, i32, i32) {
    %c0_i32 = arith.constant 0 : i32
    %c0_i32_0 = arith.constant 0 : i32
    return %arg1, %c0_i32, %arg0 : i32, i32, i32
  }
}

</mosaic_0001>

<bundles_post_ra>
// kernel: tpu_custom_call.1
= control target key start
LH: loop header
LB: loop body
LE: loop exit
PB: predicated region body
PF: predicated region fallthrough
CT: control target
= control target key end

     0   :  { %vm267_vm0 = vcmask 130048   ;;  %s3110_s0 = inlined_call_operand.vmem [shape: bf16[2,256,16], index: 0, kind: input, shape index: {}]   ;;  %s3111_s1 = inlined_call_operand.vmem [shape: bf16[16,128], index: 1, kind: input, shape index: {}]   ;;  %s3112_s2 = inlined_call_operand.vmem [shape: f32[1,128], index: 2, kind: input, shape index: {}]   ;;  %s3113_s3 = inlined_call_operand.vmem [shape: bf16[128,128], index: 3, kind: input, shape index: {}]   ;;  %s3114_s4 = inlined_call_operand.vmem [shape: f32[1,128], index: 4, kind: input, shape index: {}]   ;;  %s3115_s5 = inlined_call_operand.hbm [shape: f32[2,1,128], index: 5, kind: output, shape index: {}]  }
   0x1   :  { %v2310_v0 = vld [vmem:[%s3111_s1] sm:$0xff]   ;;  %v2312_v2 = vld [vmem:[%s3110_s0 + $0x8] sm:$0xff]   ;;  %v2313_v3 = vld [vmem:[%s3110_s0 + $0x10] sm:$0xff]  }
   0x2   :  { %v2311_v1 = vld [vmem:[%s3110_s0] sm:$0xff]   ;;  %2144 = vmatprep.subr.bf16.mxu0 %v2310_v0  ;;  %v2314_v4 = vld [vmem:[%s3110_s0 + $0x18] sm:$0xff]   ;;  %v2316_v6 = vld [vmem:[%s3110_s0 + $0x28] sm:$0xff]  }
   0x3   :  { %2145 = vmatpush3.bf16.msra.mxu0 %v2310_v0  ;;  %2146 = vmatprep.mubr.msk.bf16.mxu0 %vm267_vm0, %v2311_v1  ;;  %v2315_v5 = vld [vmem:[%s3110_s0 + $0x20] sm:$0xff]   ;;  %v2317_v7 = vld [vmem:[%s3110_s0 + $0x30] sm:$0xff]   ;;  %v2318_v8 = vld [vmem:[%s3110_s0 + $0x38] sm:$0xff]  }
   0x4   :  { %v2319_v9 = vld [vmem:[%s3110_s0 + $0x40] sm:$0xff]   ;;  %v2320_v10 = vld [vmem:[%s3110_s0 + $0x48] sm:$0xff]   ;;  %v2321_v11 = vld [vmem:[%s3110_s0 + $0x50] sm:$0xff]  }
   0x6   :  { %2147 = vmatmul.mubr.msk.bf16.vlgmr.msra.gmra.mrb[0].mxu0 %vm267_vm0, %v2312_v2 }
   0x7   :  { %2150 = vmatprep.mubr.msk.bf16.mxu0 %vm267_vm0, %v2313_v3 }
   0xe   :  { %2151 = vmatmul.mubr.msk.bf16.gmra.mrb[4].mxu0 %vm267_vm0, %v2314_v4 }
   0xf   :  { %2154 = vmatprep.mubr.msk.bf16.mxu0 %vm267_vm0, %v2315_v5 }
  0x16   :  { %2155 = vmatmul.mubr.msk.bf16.gmra.mrb[8].mxu0 %vm267_vm0, %v2316_v6 }
  0x17   :  { %2158 = vmatprep.mubr.msk.bf16.mxu0 %vm267_vm0, %v2317_v7 }
  0x1e   :  { %2159 = vmatmul.mubr.msk.bf16.gmra.mrb[12].mxu0 %vm267_vm0, %v2318_v8 }
  0x1f   :  { %2162 = vmatprep.mubr.msk.bf16.mxu0 %vm267_vm0, %v2319_v9 }
  0x26   :  { %2163 = vmatmul.mubr.msk.bf16.gmra.mrb[16].mxu0 %vm267_vm0, %v2320_v10 }
  0x27   :  { %10 = vsyncpa [#allocation3], 0  ;;  %2166 = vmatprep.mubr.msk.bf16.mxu0 %vm267_vm0, %v2321_v11  ;;  %v2322_v12 = vld [vmem:[%s3110_s0 + $0x58] sm:$0xff]   ;;  %v2323_v13 = vld [vmem:[%s3110_s0 + $0x60] sm:$0xff]  }
  0x28   :  { %v2324_v14 = vld [vmem:[%s3110_s0 + $0x68] sm:$0xff]   ;;  %v2325_v15 = vld [vmem:[%s3110_s0 + $0x70] sm:$0xff]   ;;  %v2326_v16 = vld [vmem:[%s3110_s0 + $0x78] sm:$0xff]  }
  0x29   :  { %v2327_v17 = vld [vmem:[%s3110_s0 + $0x80] sm:$0xff]   ;;  %v2328_v18 = vld [vmem:[%s3110_s0 + $0x88] sm:$0xff]   ;;  %v2329_v19 = vld [vmem:[%s3110_s0 + $0x90] sm:$0xff]  }
  0x2a   :  { %v2330_v20 = vld [vmem:[%s3110_s0 + $0x98] sm:$0xff]   ;;  %v2331_v21 = vld [vmem:[%s3110_s0 + $0xa0] sm:$0xff]   ;;  %v2332_v22 = vld [vmem:[%s3110_s0 + $0xa8] sm:$0xff]  }
  0x2b   :  { %v2333_v23 = vld [vmem:[%s3110_s0 + $0xb0] sm:$0xff]   ;;  %v2334_v24 = vld [vmem:[%s3110_s0 + $0xb8] sm:$0xff]   ;;  %v2343_v25 = vld [vmem:[%s3113_s3] sm:$0xff]  }
  0x2c   :  { %v2335_v26 = vld [vmem:[%s3110_s0 + $0xc0] sm:$0xff]   ;;  %2210 = vmatprep.subr.bf16.mxu0 %v2343_v25  ;;  %2290 = vmatprep.subr.bf16.mxu1 %v2343_v25  ;;  %v2344_v27 = vld [vmem:[%s3113_s3 + $0x8] sm:$0xff]   ;;  %v2345_v29 = vld [vmem:[%s3113_s3 + $0x10] sm:$0xff]  }
  0x2d   :  { %2211 = vmatpush3.bf16.msra.mxu0 %v2343_v25  ;;  %2298 = vmatpush3.bf16.msra.mxu1 %v2343_v25  ;;  %v2336_v28 = vld [vmem:[%s3110_s0 + $0xc8] sm:$0xff]   ;;  %v2337_v30 = vld [vmem:[%s3110_s0 + $0xd0] sm:$0xff]   ;;  %v2346_v31 = vld [vmem:[%s3113_s3 + $0x18] sm:$0xff]  }
  0x2e   :  { %2167 = vmatmul.mubr.msk.bf16.gmra.mrb[20].mxu0 %vm267_vm0, %v2322_v12  ;;  %2212 = vmatprep.subr.bf16.mxu0 %v2344_v27  ;;  %v2338_v32 = vld [vmem:[%s3110_s0 + $0xd8] sm:$0xff]   ;;  %v2339_v33 = vld [vmem:[%s3110_s0 + $0xe0] sm:$0xff]   ;;  %v2348_v35 = vld [vmem:[%s3113_s3 + $0x28] sm:$0xff]  }
  0x2f   :  { %2170 = vmatprep.mubr.msk.bf16.mxu0 %vm267_vm0, %v2323_v13  ;;  %2291 = vmatprep.subr.bf16.mxu1 %v2344_v27  ;;  %v2347_v34 = vld [vmem:[%s3113_s3 + $0x20] sm:$0xff]   ;;  %v2340_v36 = vld [vmem:[%s3110_s0 + $0xe8] sm:$0xff]   ;;  %v2341_v37 = vld [vmem:[%s3110_s0 + $0xf0] sm:$0xff]  }
  0x30   :  { %v2349_v38 = vld [vmem:[%s3113_s3 + $0x30] sm:$0xff]   ;;  %v2350_v39 = vld [vmem:[%s3113_s3 + $0x38] sm:$0xff]   ;;  %v2828_v41 = vld [vmem:[%s3112_s2] ss:$0 sm:$0xff] }
  0x31   :  { %2213 = vmatpush3.bf16.msra.mxu0 %v2344_v27  ;;  %2299 = vmatpush3.bf16.msra.mxu1 %v2344_v27  ;;  %v2342_v40 = vld [vmem:[%s3110_s0 + $0xf8] sm:$0xff]  }
  0x32   :  { %2214 = vmatprep.subr.bf16.mxu0 %v2345_v29  ;;  %2292 = vmatprep.subr.bf16.mxu1 %v2345_v29 }
  0x35   :  { %2215 = vmatpush3.bf16.msra.mxu0 %v2345_v29  ;;  %2300 = vmatpush3.bf16.msra.mxu1 %v2345_v29 }
  0x36   :  { %2171 = vmatmul.mubr.msk.bf16.gmra.mrb[24].mxu0 %vm267_vm0, %v2324_v14  ;;  %2216 = vmatprep.subr.bf16.mxu0 %v2346_v31 }
  0x37   :  { %2174 = vmatprep.mubr.msk.bf16.mxu0 %vm267_vm0, %v2325_v15  ;;  %2293 = vmatprep.subr.bf16.mxu1 %v2346_v31 }
  0x39   :  { %2217 = vmatpush3.bf16.msra.mxu0 %v2346_v31  ;;  %2301 = vmatpush3.bf16.msra.mxu1 %v2346_v31 }
  0x3a   :  { %2218 = vmatprep.subr.bf16.mxu0 %v2347_v34  ;;  %2294 = vmatprep.subr.bf16.mxu1 %v2347_v34 }
  0x3d   :  { %2302 = vmatpush3.bf16.msra.mxu1 %v2347_v34  ;;  %2219 = vmatpush3.bf16.msra.mxu0 %v2347_v34 }
  0x3e   :  { %2175 = vmatmul.mubr.msk.bf16.gmra.mrb[28].mxu0 %vm267_vm0, %v2326_v16  ;;  %2220 = vmatprep.subr.bf16.mxu0 %v2348_v35 }
  0x3f   :  { %2178 = vmatprep.mubr.msk.bf16.mxu0 %vm267_vm0, %v2327_v17  ;;  %2295 = vmatprep.subr.bf16.mxu1 %v2348_v35 }
  0x41   :  { %2303 = vmatpush3.bf16.msra.mxu1 %v2348_v35  ;;  %2221 = vmatpush3.bf16.msra.mxu0 %v2348_v35 }
  0x42   :  { %2222 = vmatprep.subr.bf16.mxu0 %v2349_v38  ;;  %2296 = vmatprep.subr.bf16.mxu1 %v2349_v38 }
  0x45   :  { %2304 = vmatpush3.bf16.msra.mxu1 %v2349_v38  ;;  %2223 = vmatpush3.bf16.msra.mxu0 %v2349_v38 }
  0x46   :  { %2179 = vmatmul.mubr.msk.bf16.gmra.mrb[32].mxu0 %vm267_vm0, %v2328_v18  ;;  %2224 = vmatprep.subr.bf16.mxu0 %v2350_v39 }
  0x47   :  { %2182 = vmatprep.mubr.msk.bf16.mxu0 %vm267_vm0, %v2329_v19  ;;  %2297 = vmatprep.subr.bf16.mxu1 %v2350_v39 }
  0x49   :  { %2305 = vmatpush3.bf16.msra.mxu1 %v2350_v39  ;;  %2225 = vmatpush3.bf16.msra.mxu0 %v2350_v39 }
  0x4e   :  { %2183 = vmatmul.mubr.msk.bf16.gmra.mrb[36].mxu0 %vm267_vm0, %v2330_v20 }
  0x4f   :  { %2186 = vmatprep.mubr.msk.bf16.mxu0 %vm267_vm0, %v2331_v21 }
  0x56   :  { %2187 = vmatmul.mubr.msk.bf16.gmra.mrb[40].mxu0 %vm267_vm0, %v2332_v22 }
  0x57   :  { %2190 = vmatprep.mubr.msk.bf16.mxu0 %vm267_vm0, %v2333_v23 }
  0x5e   :  { %2191 = vmatmul.mubr.msk.bf16.gmra.mrb[44].mxu0 %vm267_vm0, %v2334_v24 }
  0x5f   :  { %2194 = vmatprep.mubr.msk.bf16.mxu0 %vm267_vm0, %v2335_v26 }
  0x66   :  { %2195 = vmatmul.mubr.msk.bf16.gmra.mrb[48].mxu0 %vm267_vm0, %v2336_v28 }
  0x67   :  { %2198 = vmatprep.mubr.msk.bf16.mxu0 %vm267_vm0, %v2337_v30 }
  0x6e   :  { %2199 = vmatmul.mubr.msk.bf16.gmra.mrb[52].mxu0 %vm267_vm0, %v2338_v32 }
  0x6f   :  { %2202 = vmatprep.mubr.msk.bf16.mxu0 %vm267_vm0, %v2339_v33 }
  0x76   :  { %2203 = vmatmul.mubr.msk.bf16.gmra.mrb[56].mxu0 %vm267_vm0, %v2340_v36 }
  0x77   :  { %2206 = vmatprep.mubr.msk.bf16.mxu0 %vm267_vm0, %v2341_v37 }
  0x7e   :  { %2207 = vmatmul.mubr.msk.bf16.gmra.mrb[60].mxu0 %vm267_vm0, %v2342_v40 }
  0xd9   :  { %v2148_v42 = vpop.f32.mrb[0].mxu0 }
  0xda   :  { %v407_v43 = vadd.f32 %v2148_v42, %v2828_v41  ;;  %v398_v44 = vpop.f32.mrb[1].mxu0 }
  0xdb   :  { %v399_v45 = vadd.f32 %v2828_v41, %v398_v44  ;;  %v2149_v46 = vpop.f32.mrb[2].mxu0 }
  0xdc   :  { %v2000_v47 = vmul.f32 -1.442695, %v407_v43  ;;  %v410_v48 = vadd.f32 %v2149_v46, %v2828_v41  ;;  %v401_v49 = vpop.f32.mrb[3].mxu0 }
  0xdd   :  { %v1998_v50 = vmul.f32 -1.442695, %v399_v45  ;;  %v402_v51 = vadd.f32 %v2828_v41, %v401_v49 }
  0xde   :  { %2351 = vpow2.f32 %v2000_v47  ;;  %v2001_v52 = vmul.f32 -1.442695, %v410_v48 }
  0xdf   :  { %2353 = vpow2.f32 %v1998_v50  ;;  %v1999_v53 = vmul.f32 -1.442695, %v402_v51 }
  0xe0   :  { %2355 = vpow2.f32 %v2001_v52 }
  0xe1   :  { %2357 = vpow2.f32 %v1999_v53  ;;  %v2152_v54 = vpop.f32.mrb[4].mxu0 }
  0xe2   :  { %v423_v55 = vadd.f32 %v2152_v54, %v2828_v41  ;;  %v414_v56 = vpop.f32.mrb[5].mxu0 }
  0xe3   :  { %v415_v57 = vadd.f32 %v2828_v41, %v414_v56  ;;  %v2153_v58 = vpop.f32.mrb[6].mxu0 }
  0xe4   :  { %v2004_v59 = vmul.f32 -1.442695, %v423_v55  ;;  %v426_v60 = vadd.f32 %v2153_v58, %v2828_v41  ;;  %v417_v61 = vpop.f32.mrb[7].mxu0 }
  0xe5   :  { %v2002_v62 = vmul.f32 -1.442695, %v415_v57  ;;  %v418_v63 = vadd.f32 %v2828_v41, %v417_v61 }
  0xe6   :  { %2359 = vpow2.f32 %v2004_v59  ;;  %v2005_v0 = vmul.f32 -1.442695, %v426_v60 }
  0xe7   :  { %2361 = vpow2.f32 %v2002_v62  ;;  %v2003_v1 = vmul.f32 -1.442695, %v418_v63 }
  0xe8   :  { %v2352_v2 = vpop.eup %2351  ;;  %2363 = vpow2.f32 %v2005_v0 }
  0xe9   :  { %v2354_v3 = vpop.eup %2353  ;;  %v847_v4 = vadd.f32 1.0, %v2352_v2  ;;  %2365 = vpow2.f32 %v2003_v1  ;;  %v2156_v5 = vpop.f32.mrb[8].mxu0 }
  0xea   :  { %v2356_v6 = vpop.eup %2355  ;;  %v845_v7 = vadd.f32 1.0, %v2354_v3  ;;  %v439_v8 = vadd.f32 %v2156_v5, %v2828_v41  ;;  %v430_v9 = vpop.f32.mrb[9].mxu0 }
  0xeb   :  { %v2358_v10 = vpop.eup %2357  ;;  %2367 = vrcp.f32 %v847_v4  ;;  %v848_v11 = vadd.f32 1.0, %v2356_v6  ;;  %v431_v12 = vadd.f32 %v2828_v41, %v430_v9  ;;  %v2157_v13 = vpop.f32.mrb[10].mxu0 }
  0xec   :  { %2369 = vrcp.f32 %v845_v7  ;;  %v846_v14 = vadd.f32 1.0, %v2358_v10  ;;  %v2008_v15 = vmul.f32 -1.442695, %v439_v8  ;;  %v442_v16 = vadd.f32 %v2157_v13, %v2828_v41  ;;  %v433_v17 = vpop.f32.mrb[11].mxu0 }
  0xed   :  { %2371 = vrcp.f32 %v848_v11  ;;  %v2006_v18 = vmul.f32 -1.442695, %v431_v12  ;;  %v434_v19 = vadd.f32 %v2828_v41, %v433_v17 }
  0xee   :  { %2373 = vrcp.f32 %v846_v14  ;;  %v2009_v20 = vmul.f32 -1.442695, %v442_v16 }
  0xef   :  { %2375 = vpow2.f32 %v2008_v15  ;;  %v2007_v21 = vmul.f32 -1.442695, %v434_v19 }
  0xf0   :  { %v2360_v22 = vpop.eup %2359  ;;  %2377 = vpow2.f32 %v2006_v18 }
  0xf1   :  { %v2362_v23 = vpop.eup %2361  ;;  %v851_v24 = vadd.f32 1.0, %v2360_v22  ;;  %2379 = vpow2.f32 %v2009_v20  ;;  %v2160_v25 = vpop.f32.mrb[12].mxu0 }
  0xf2   :  { %v2364_v26 = vpop.eup %2363  ;;  %v849_v27 = vadd.f32 1.0, %v2362_v23  ;;  %2381 = vpow2.f32 %v2007_v21  ;;  %v455_v28 = vadd.f32 %v2160_v25, %v2828_v41  ;;  %v446_v29 = vpop.f32.mrb[13].mxu0 }
  0xf3   :  { %v2366_v30 = vpop.eup %2365  ;;  %2383 = vrcp.f32 %v851_v24  ;;  %v852_v31 = vadd.f32 1.0, %v2364_v26  ;;  %v447_v32 = vadd.f32 %v2828_v41, %v446_v29  ;;  %v2161_v33 = vpop.f32.mrb[14].mxu0 }
  0xf4   :  { %2385 = vrcp.f32 %v849_v27  ;;  %v850_v34 = vadd.f32 1.0, %v2366_v30  ;;  %v2012_v35 = vmul.f32 -1.442695, %v455_v28  ;;  %v458_v36 = vadd.f32 %v2161_v33, %v2828_v41  ;;  %v449_v37 = vpop.f32.mrb[15].mxu0 }
  0xf5   :  { %v2368_v38 = vpop.eup %2367  ;;  %2387 = vrcp.f32 %v852_v31  ;;  %v2010_v39 = vmul.f32 -1.442695, %v447_v32  ;;  %v450_v40 = vadd.f32 %v2828_v41, %v449_v37 }
  0xf6   :  { %v2370_v42 = vpop.eup %2369  ;;  %2389 = vrcp.f32 %v850_v34  ;;  %v2013_v43 = vmul.f32 -1.442695, %v458_v36  ;;  %v1039_v44 = vmul.f32 %v2368_v38, %v2368_v38 }
  0xf7   :  { %v2372_v45 = vpop.eup %2371  ;;  %2391 = vpow2.f32 %v2012_v35  ;;  %v2011_v46 = vmul.f32 -1.442695, %v450_v40  ;;  %v1037_v47 = vmul.f32 %v2370_v42, %v2370_v42 }
  0xf8   :  { %v2374_v48 = vpop.eup %2373  ;;  %2393 = vpow2.f32 %v2010_v39  ;;  %1105 = vadd.xlane.f32.xlu1 %v1039_v44  ;;  %v1230_v49 = vpack.c.bf16 %v2372_v45, %v2368_v38  ;;  %v1040_v57 = vmul.f32 %v2372_v45, %v2372_v45 }
  0xf9   :  { %v2376_v50 = vpop.eup %2375  ;;  %2395 = vpow2.f32 %v2013_v43  ;;  %v2164_v51 = vpop.f32.mrb[16].mxu0  ;;  %1101 = vadd.xlane.f32.xlu0 %v1037_v47  ;;  %v1229_v52 = vpack.c.bf16 %v2374_v48, %v2370_v42  ;;  %v1038_v62 = vmul.f32 %v2374_v48, %v2374_v48 }
  0xfa   :  { %v2378_v53 = vpop.eup %2377  ;;  %v855_v54 = vadd.f32 1.0, %v2376_v50  ;;  %2397 = vpow2.f32 %v2011_v46  ;;  %v471_v55 = vadd.f32 %v2164_v51, %v2828_v41  ;;  %v462_v56 = vpop.f32.mrb[17].mxu0 }
  0xfb   :  { %v2380_v58 = vpop.eup %2379  ;;  %v853_v59 = vadd.f32 1.0, %v2378_v53  ;;  %v463_v60 = vadd.f32 %v2828_v41, %v462_v56  ;;  %v2165_v61 = vpop.f32.mrb[18].mxu0  ;;  %2226 = vmatprep.mubr.bf16.mxu0 %v1229_v52 }
  0xfc   :  { %v2382_v63 = vpop.eup %2381  ;;  %2399 = vrcp.f32 %v855_v54  ;;  %v856_v0 = vadd.f32 1.0, %v2380_v58  ;;  %v2016_v1 = vmul.f32 -1.442695, %v471_v55  ;;  %v474_v2 = vadd.f32 %v2165_v61, %v2828_v41  ;;  %1107 = vadd.xlane.f32.xlu1 %v1040_v57  ;;  %v465_v3 = vpop.f32.mrb[19].mxu0  ;;  %2227 = vmatmul.mubr.bf16.vlgmr.msra.gmra.mrb[64].mxu0 %v1230_v49 }
  0xfd   :  { %v2384_v4 = vpop.eup %2383  ;;  %2401 = vrcp.f32 %v853_v59  ;;  %v854_v5 = vadd.f32 1.0, %v2382_v63  ;;  %v2014_v6 = vmul.f32 -1.442695, %v463_v60  ;;  %v466_v7 = vadd.f32 %v2828_v41, %v465_v3  ;;  %1103 = vadd.xlane.f32.xlu0 %v1038_v62 }
  0xfe   :  { %v2386_v8 = vpop.eup %2385  ;;  %2403 = vrcp.f32 %v856_v0  ;;  %v2017_v9 = vmul.f32 -1.442695, %v474_v2  ;;  %v1043_v10 = vmul.f32 %v2384_v4, %v2384_v4 }
  0xff   :  { %v2388_v11 = vpop.eup %2387  ;;  %2405 = vrcp.f32 %v854_v5  ;;  %v2015_v12 = vmul.f32 -1.442695, %v466_v7  ;;  %v1041_v23 = vmul.f32 %v2386_v8, %v2386_v8 }
 0x100   :  { %v2390_v13 = vpop.eup %2389  ;;  %2407 = vpow2.f32 %v2016_v1  ;;  %v1044_v14 = vmul.f32 %v2388_v11, %v2388_v11  ;;  %v1232_v15 = vpack.c.bf16 %v2388_v11, %v2384_v4 }
 0x101   :  { %v2392_v16 = vpop.eup %2391  ;;  %2409 = vpow2.f32 %v2014_v6  ;;  %v2168_v17 = vpop.f32.mrb[20].mxu0  ;;  %1113 = vadd.xlane.f32.xlu0 %v1043_v10  ;;  %v1231_v18 = vpack.c.bf16 %v2390_v13, %v2386_v8  ;;  %v1042_v28 = vmul.f32 %v2390_v13, %v2390_v13 }
 0x102   :  { %v2394_v19 = vpop.eup %2393  ;;  %v859_v20 = vadd.f32 1.0, %v2392_v16  ;;  %2411 = vpow2.f32 %v2017_v9  ;;  %v487_v21 = vadd.f32 %v2168_v17, %v2828_v41  ;;  %1115 = vadd.xlane.f32.xlu1 %v1044_v14  ;;  %v478_v22 = vpop.f32.mrb[21].mxu0 }
 0x103   :  { %v2396_v24 = vpop.eup %2395  ;;  %v857_v25 = vadd.f32 1.0, %v2394_v19  ;;  %2413 = vpow2.f32 %v2015_v12  ;;  %v479_v26 = vadd.f32 %v2828_v41, %v478_v22  ;;  %v2169_v27 = vpop.f32.mrb[22].mxu0  ;;  %2230 = vmatprep.mubr.bf16.mxu1 %v1231_v18 }
 0x104   :  { %v2398_v29 = vpop.eup %2397  ;;  %2415 = vrcp.f32 %v859_v20  ;;  %v860_v30 = vadd.f32 1.0, %v2396_v24  ;;  %v2020_v31 = vmul.f32 -1.442695, %v487_v21  ;;  %v490_v32 = vadd.f32 %v2169_v27, %v2828_v41  ;;  %v481_v33 = vpop.f32.mrb[23].mxu0  ;;  %2231 = vmatmul.mubr.bf16.vlgmr.msra.gmra.mrb[0].mxu1 %v1232_v15 }
 0x105   :  { %2417 = vrcp.f32 %v857_v25  ;;  %v858_v34 = vadd.f32 1.0, %v2398_v29  ;;  %v2018_v35 = vmul.f32 -1.442695, %v479_v26  ;;  %v482_v36 = vadd.f32 %v2828_v41, %v481_v33  ;;  %1109 = vadd.xlane.f32.xlu0 %v1041_v23 }
 0x106   :  { %v2400_v37 = vpop.eup %2399  ;;  %2419 = vrcp.f32 %v860_v30  ;;  %v2021_v38 = vmul.f32 -1.442695, %v490_v32  ;;  %1111 = vadd.xlane.f32.xlu1 %v1042_v28 }
 0x107   :  { %v2402_v39 = vpop.eup %2401  ;;  %2421 = vrcp.f32 %v858_v34  ;;  %v2019_v40 = vmul.f32 -1.442695, %v482_v36  ;;  %v1047_v42 = vmul.f32 %v2400_v37, %v2400_v37 }
 0x108   :  { %v2404_v43 = vpop.eup %2403  ;;  %2423 = vpow2.f32 %v2020_v31  ;;  %v1045_v56 = vmul.f32 %v2402_v39, %v2402_v39 }
 0x109   :  { %v2406_v44 = vpop.eup %2405  ;;  %2425 = vpow2.f32 %v2018_v35  ;;  %v2172_v45 = vpop.f32.mrb[24].mxu0  ;;  %1121 = vadd.xlane.f32.xlu0 %v1047_v42  ;;  %v1048_v46 = vmul.f32 %v2404_v43, %v2404_v43  ;;  %v1234_v47 = vpack.c.bf16 %v2404_v43, %v2400_v37 }
 0x10a   :  { %v2408_v48 = vpop.eup %2407  ;;  %2427 = vpow2.f32 %v2021_v38  ;;  %v503_v49 = vadd.f32 %v2172_v45, %v2828_v41  ;;  %v494_v50 = vpop.f32.mrb[25].mxu0  ;;  %v1233_v51 = vpack.c.bf16 %v2406_v44, %v2402_v39  ;;  %v1046_v61 = vmul.f32 %v2406_v44, %v2406_v44 }
 0x10b   :  { %v2410_v52 = vpop.eup %2409  ;;  %v863_v53 = vadd.f32 1.0, %v2408_v48  ;;  %2429 = vpow2.f32 %v2019_v40  ;;  %v495_v54 = vadd.f32 %v2828_v41, %v494_v50  ;;  %1123 = vadd.xlane.f32.xlu1 %v1048_v46  ;;  %v2173_v55 = vpop.f32.mrb[26].mxu0 }
 0x10c   :  { %v2412_v57 = vpop.eup %2411  ;;  %v861_v58 = vadd.f32 1.0, %v2410_v52  ;;  %v506_v59 = vadd.f32 %v2173_v55, %v2828_v41  ;;  %2234 = vmatprep.mubr.bf16.mxu1 %v1233_v51  ;;  %v497_v60 = vpop.f32.mrb[27].mxu0  ;;  %v2024_v0 = vmul.f32 -1.442695, %v503_v49 }
 0x10d   :  { %v2414_v62 = vpop.eup %2413  ;;  %2431 = vrcp.f32 %v863_v53  ;;  %v864_v63 = vadd.f32 1.0, %v2412_v57  ;;  %v498_v1 = vadd.f32 %v2828_v41, %v497_v60  ;;  %2235 = vmatmul.mubr.bf16.gmra.mrb[4].mxu1 %v1234_v47  ;;  %1117 = vadd.xlane.f32.xlu0 %v1045_v56  ;;  %v2022_v4 = vmul.f32 -1.442695, %v495_v54 }
 0x10e   :  { %v2416_v2 = vpop.eup %2415  ;;  %2433 = vrcp.f32 %v861_v58  ;;  %v862_v3 = vadd.f32 1.0, %v2414_v62  ;;  %v2025_v6 = vmul.f32 -1.442695, %v506_v59 }
 0x10f   :  { %v2418_v5 = vpop.eup %2417  ;;  %2435 = vrcp.f32 %v864_v63  ;;  %1119 = vadd.xlane.f32.xlu1 %v1046_v61  ;;  %v1051_v7 = vmul.f32 %v2416_v2, %v2416_v2  ;;  %v2023_v9 = vmul.f32 -1.442695, %v498_v1 }
 0x110   :  { %v2420_v8 = vpop.eup %2419  ;;  %2437 = vrcp.f32 %v862_v3  ;;  %v1049_v22 = vmul.f32 %v2418_v5, %v2418_v5 }
 0x111   :  { %v2422_v10 = vpop.eup %2421  ;;  %2439 = vpow2.f32 %v2024_v0  ;;  %v2176_v11 = vpop.f32.mrb[28].mxu0  ;;  %1129 = vadd.xlane.f32.xlu0 %v1051_v7  ;;  %v1052_v12 = vmul.f32 %v2420_v8, %v2420_v8  ;;  %v1236_v13 = vpack.c.bf16 %v2420_v8, %v2416_v2 }
 0x112   :  { %v2424_v14 = vpop.eup %2423  ;;  %2441 = vpow2.f32 %v2022_v4  ;;  %v519_v15 = vadd.f32 %v2176_v11, %v2828_v41  ;;  %v510_v16 = vpop.f32.mrb[29].mxu0  ;;  %v1235_v17 = vpack.c.bf16 %v2422_v10, %v2418_v5  ;;  %v1050_v27 = vmul.f32 %v2422_v10, %v2422_v10 }
 0x113   :  { %v2426_v18 = vpop.eup %2425  ;;  %v867_v19 = vadd.f32 1.0, %v2424_v14  ;;  %2443 = vpow2.f32 %v2025_v6  ;;  %v511_v20 = vadd.f32 %v2828_v41, %v510_v16  ;;  %1131 = vadd.xlane.f32.xlu1 %v1052_v12  ;;  %v2177_v21 = vpop.f32.mrb[30].mxu0 }
 0x114   :  { %v2428_v23 = vpop.eup %2427  ;;  %v865_v24 = vadd.f32 1.0, %v2426_v18  ;;  %2445 = vpow2.f32 %v2023_v9  ;;  %v522_v25 = vadd.f32 %v2177_v21, %v2828_v41  ;;  %2238 = vmatprep.mubr.bf16.mxu1 %v1235_v17  ;;  %v513_v26 = vpop.f32.mrb[31].mxu0  ;;  %v2028_v30 = vmul.f32 -1.442695, %v519_v15 }
 0x115   :  { %v2430_v28 = vpop.eup %2429  ;;  %2447 = vrcp.f32 %v867_v19  ;;  %v868_v29 = vadd.f32 1.0, %v2428_v23  ;;  %v514_v31 = vadd.f32 %v2828_v41, %v513_v26  ;;  %2239 = vmatmul.mubr.bf16.gmra.mrb[8].mxu1 %v1236_v13  ;;  %1125 = vadd.xlane.f32.xlu0 %v1049_v22  ;;  %v2026_v33 = vmul.f32 -1.442695, %v511_v20 }
 0x116   :  { %2449 = vrcp.f32 %v865_v24  ;;  %v866_v32 = vadd.f32 1.0, %v2430_v28  ;;  %v2029_v35 = vmul.f32 -1.442695, %v522_v25 }
 0x117   :  { %v2432_v34 = vpop.eup %2431  ;;  %2451 = vrcp.f32 %v868_v29  ;;  %1127 = vadd.xlane.f32.xlu1 %v1050_v27  ;;  %v2027_v37 = vmul.f32 -1.442695, %v514_v31 }
 0x118   :  { %v2434_v36 = vpop.eup %2433  ;;  %2453 = vrcp.f32 %v866_v32  ;;  %v1055_v38 = vmul.f32 %v2432_v34, %v2432_v34 }
 0x119   :  { %v2436_v39 = vpop.eup %2435  ;;  %2455 = vpow2.f32 %v2028_v30  ;;  %v2180_v40 = vpop.f32.mrb[32].mxu0  ;;  %v1053_v55 = vmul.f32 %v2434_v36, %v2434_v36 }
 0x11a   :  { %v2438_v42 = vpop.eup %2437  ;;  %2457 = vpow2.f32 %v2026_v33  ;;  %v535_v43 = vadd.f32 %v2180_v40, %v2828_v41  ;;  %1137 = vadd.xlane.f32.xlu0 %v1055_v38  ;;  %v526_v44 = vpop.f32.mrb[33].mxu0  ;;  %v1056_v45 = vmul.f32 %v2436_v39, %v2436_v39  ;;  %v1238_v46 = vpack.c.bf16 %v2436_v39, %v2432_v34 }
 0x11b   :  { %v2440_v47 = vpop.eup %2439  ;;  %2459 = vpow2.f32 %v2029_v35  ;;  %v527_v48 = vadd.f32 %v2828_v41, %v526_v44  ;;  %v2181_v49 = vpop.f32.mrb[34].mxu0  ;;  %v1237_v50 = vpack.c.bf16 %v2438_v42, %v2434_v36  ;;  %v1054_v62 = vmul.f32 %v2438_v42, %v2438_v42 }
 0x11c   :  { %v2442_v51 = vpop.eup %2441  ;;  %v871_v52 = vadd.f32 1.0, %v2440_v47  ;;  %2461 = vpow2.f32 %v2027_v37  ;;  %1139 = vadd.xlane.f32.xlu1 %v1056_v45  ;;  %v538_v53 = vadd.f32 %v2181_v49, %v2828_v41  ;;  %v529_v54 = vpop.f32.mrb[35].mxu0  ;;  %v2032_v61 = vmul.f32 -1.442695, %v535_v43 }
 0x11d   :  { %v2444_v56 = vpop.eup %2443  ;;  %v869_v57 = vadd.f32 1.0, %v2442_v51  ;;  %2242 = vmatprep.mubr.bf16.mxu1 %v1237_v50  ;;  %v530_v58 = vadd.f32 %v2828_v41, %v529_v54  ;;  %v2030_v1 = vmul.f32 -1.442695, %v527_v48 }
 0x11e   :  { %v2446_v59 = vpop.eup %2445  ;;  %2463 = vrcp.f32 %v871_v52  ;;  %v872_v60 = vadd.f32 1.0, %v2444_v56  ;;  %2243 = vmatmul.mubr.bf16.gmra.mrb[12].mxu1 %v1238_v46  ;;  %1133 = vadd.xlane.f32.xlu0 %v1053_v55  ;;  %v2033_v3 = vmul.f32 -1.442695, %v538_v53 }
 0x11f   :  { %v2448_v63 = vpop.eup %2447  ;;  %2465 = vrcp.f32 %v869_v57  ;;  %v870_v0 = vadd.f32 1.0, %v2446_v59  ;;  %v2031_v6 = vmul.f32 -1.442695, %v530_v58 }
 0x120   :  { %v2450_v2 = vpop.eup %2449  ;;  %2467 = vrcp.f32 %v872_v60  ;;  %1135 = vadd.xlane.f32.xlu1 %v1054_v62  ;;  %v1059_v4 = vmul.f32 %v2448_v63, %v2448_v63 }
 0x121   :  { %v2452_v5 = vpop.eup %2451  ;;  %2469 = vrcp.f32 %v870_v0  ;;  %v2184_v7 = vpop.f32.mrb[36].mxu0  ;;  %v1057_v21 = vmul.f32 %v2450_v2, %v2450_v2 }
 0x122   :  { %v2454_v8 = vpop.eup %2453  ;;  %2471 = vpow2.f32 %v2032_v61  ;;  %v551_v9 = vadd.f32 %v2184_v7, %v2828_v41  ;;  %1145 = vadd.xlane.f32.xlu0 %v1059_v4  ;;  %v542_v10 = vpop.f32.mrb[37].mxu0  ;;  %v1060_v11 = vmul.f32 %v2452_v5, %v2452_v5  ;;  %v1240_v12 = vpack.c.bf16 %v2452_v5, %v2448_v63 }
 0x123   :  { %v2456_v13 = vpop.eup %2455  ;;  %2473 = vpow2.f32 %v2030_v1  ;;  %v543_v14 = vadd.f32 %v2828_v41, %v542_v10  ;;  %v2185_v15 = vpop.f32.mrb[38].mxu0  ;;  %v1239_v16 = vpack.c.bf16 %v2454_v8, %v2450_v2  ;;  %v1058_v28 = vmul.f32 %v2454_v8, %v2454_v8 }
 0x124   :  { %v2458_v17 = vpop.eup %2457  ;;  %v875_v18 = vadd.f32 1.0, %v2456_v13  ;;  %2475 = vpow2.f32 %v2033_v3  ;;  %1147 = vadd.xlane.f32.xlu1 %v1060_v11  ;;  %v554_v19 = vadd.f32 %v2185_v15, %v2828_v41  ;;  %v545_v20 = vpop.f32.mrb[39].mxu0  ;;  %v2036_v27 = vmul.f32 -1.442695, %v551_v9 }
 0x125   :  { %v2460_v22 = vpop.eup %2459  ;;  %v873_v23 = vadd.f32 1.0, %v2458_v17  ;;  %2477 = vpow2.f32 %v2031_v6  ;;  %2246 = vmatprep.mubr.bf16.mxu1 %v1239_v16  ;;  %v546_v24 = vadd.f32 %v2828_v41, %v545_v20  ;;  %v2034_v30 = vmul.f32 -1.442695, %v543_v14 }
 0x126   :  { %v2462_v25 = vpop.eup %2461  ;;  %2479 = vrcp.f32 %v875_v18  ;;  %v876_v26 = vadd.f32 1.0, %v2460_v22  ;;  %2247 = vmatmul.mubr.bf16.gmra.mrb[16].mxu1 %v1240_v12  ;;  %1141 = vadd.xlane.f32.xlu0 %v1057_v21  ;;  %v2037_v32 = vmul.f32 -1.442695, %v554_v19 }
 0x127   :  { %2481 = vrcp.f32 %v873_v23  ;;  %v874_v29 = vadd.f32 1.0, %v2462_v25  ;;  %v2035_v34 = vmul.f32 -1.442695, %v546_v24 }
 0x128   :  { %v2464_v31 = vpop.eup %2463  ;;  %2483 = vrcp.f32 %v876_v26  ;;  %1143 = vadd.xlane.f32.xlu1 %v1058_v28 }
 0x129   :  { %v2466_v33 = vpop.eup %2465  ;;  %2485 = vrcp.f32 %v874_v29  ;;  %v2188_v35 = vpop.f32.mrb[40].mxu0  ;;  %v1063_v36 = vmul.f32 %v2464_v31, %v2464_v31 }
 0x12a   :  { %v2468_v37 = vpop.eup %2467  ;;  %2487 = vpow2.f32 %v2036_v27  ;;  %v567_v38 = vadd.f32 %v2188_v35, %v2828_v41  ;;  %v558_v39 = vpop.f32.mrb[41].mxu0  ;;  %v1061_v54 = vmul.f32 %v2466_v33, %v2466_v33 }
 0x12b   :  { %v2470_v40 = vpop.eup %2469  ;;  %2489 = vpow2.f32 %v2034_v30  ;;  %1153 = vadd.xlane.f32.xlu0 %v1063_v36  ;;  %v559_v42 = vadd.f32 %v2828_v41, %v558_v39  ;;  %v1064_v43 = vmul.f32 %v2468_v37, %v2468_v37  ;;  %v2189_v44 = vpop.f32.mrb[42].mxu0  ;;  %v1242_v45 = vpack.c.bf16 %v2468_v37, %v2464_v31 }
 0x12c   :  { %v2472_v46 = vpop.eup %2471  ;;  %2491 = vpow2.f32 %v2037_v32  ;;  %v2040_v47 = vmul.f32 -1.442695, %v567_v38  ;;  %v570_v48 = vadd.f32 %v2189_v44, %v2828_v41  ;;  %v1241_v49 = vpack.c.bf16 %v2470_v40, %v2466_v33  ;;  %v561_v50 = vpop.f32.mrb[43].mxu0 }
 0x12d   :  { %v2474_v51 = vpop.eup %2473  ;;  %v879_v52 = vadd.f32 1.0, %v2472_v46  ;;  %2493 = vpow2.f32 %v2035_v34  ;;  %1155 = vadd.xlane.f32.xlu1 %v1064_v43  ;;  %v562_v53 = vadd.f32 %v2828_v41, %v561_v50  ;;  %v2038_v59 = vmul.f32 -1.442695, %v559_v42 }
 0x12e   :  { %v2476_v55 = vpop.eup %2475  ;;  %v877_v56 = vadd.f32 1.0, %v2474_v51  ;;  %2495 = vpow2.f32 %v2040_v47  ;;  %2250 = vmatprep.mubr.bf16.mxu1 %v1241_v49  ;;  %v1062_v60 = vmul.f32 %v2470_v40, %v2470_v40  ;;  %v2041_v63 = vmul.f32 -1.442695, %v570_v48 }
 0x12f   :  { %v2478_v57 = vpop.eup %2477  ;;  %2497 = vrcp.f32 %v879_v52  ;;  %v880_v58 = vadd.f32 1.0, %v2476_v55  ;;  %2251 = vmatmul.mubr.bf16.gmra.mrb[20].mxu1 %v1242_v45  ;;  %1149 = vadd.xlane.f32.xlu0 %v1061_v54  ;;  %v2039_v1 = vmul.f32 -1.442695, %v562_v53 }
 0x130   :  { %v2480_v61 = vpop.eup %2479  ;;  %2499 = vrcp.f32 %v877_v56  ;;  %v878_v62 = vadd.f32 1.0, %v2478_v57 }
 0x131   :  { %v2482_v0 = vpop.eup %2481  ;;  %2501 = vrcp.f32 %v880_v58  ;;  %1151 = vadd.xlane.f32.xlu1 %v1062_v60  ;;  %v2192_v2 = vpop.f32.mrb[44].mxu0  ;;  %v1067_v3 = vmul.f32 %v2480_v61, %v2480_v61 }
 0x132   :  { %v2484_v4 = vpop.eup %2483  ;;  %2503 = vrcp.f32 %v878_v62  ;;  %v583_v5 = vadd.f32 %v2192_v2, %v2828_v41  ;;  %v574_v6 = vpop.f32.mrb[45].mxu0  ;;  %v1065_v19 = vmul.f32 %v2482_v0, %v2482_v0 }
 0x133   :  { %v2486_v7 = vpop.eup %2485  ;;  %2505 = vpow2.f32 %v2038_v59  ;;  %1161 = vadd.xlane.f32.xlu0 %v1067_v3  ;;  %v1068_v8 = vmul.f32 %v2484_v4, %v2484_v4  ;;  %v2193_v9 = vpop.f32.mrb[46].mxu0  ;;  %v1244_v10 = vpack.c.bf16 %v2484_v4, %v2480_v61  ;;  %v575_v13 = vadd.f32 %v2828_v41, %v574_v6 }
 0x134   :  { %v2488_v11 = vpop.eup %2487  ;;  %2507 = vpow2.f32 %v2041_v63  ;;  %v2044_v12 = vmul.f32 -1.442695, %v583_v5  ;;  %v1243_v14 = vpack.c.bf16 %v2486_v7, %v2482_v0  ;;  %v577_v15 = vpop.f32.mrb[47].mxu0  ;;  %v586_v18 = vadd.f32 %v2193_v9, %v2828_v41 }
 0x135   :  { %v2490_v16 = vpop.eup %2489  ;;  %v883_v17 = vadd.f32 1.0, %v2488_v11  ;;  %2509 = vpow2.f32 %v2039_v1  ;;  %1163 = vadd.xlane.f32.xlu1 %v1068_v8  ;;  %v578_v22 = vadd.f32 %v2828_v41, %v577_v15  ;;  %v1066_v25 = vmul.f32 %v2486_v7, %v2486_v7 }
 0x136   :  { %v2492_v20 = vpop.eup %2491  ;;  %v881_v21 = vadd.f32 1.0, %v2490_v16  ;;  %2511 = vpow2.f32 %v2044_v12  ;;  %2254 = vmatprep.mubr.bf16.mxu1 %v1243_v14  ;;  %v2042_v28 = vmul.f32 -1.442695, %v575_v13  ;;  %v2045_v31 = vmul.f32 -1.442695, %v586_v18 }
 0x137   :  { %v2494_v23 = vpop.eup %2493  ;;  %2513 = vrcp.f32 %v883_v17  ;;  %v884_v24 = vadd.f32 1.0, %v2492_v20  ;;  %2255 = vmatmul.mubr.bf16.gmra.mrb[24].mxu1 %v1244_v10  ;;  %1157 = vadd.xlane.f32.xlu0 %v1065_v19  ;;  %v2043_v34 = vmul.f32 -1.442695, %v578_v22 }
 0x138   :  { %v2496_v26 = vpop.eup %2495  ;;  %2515 = vrcp.f32 %v881_v21  ;;  %v882_v27 = vadd.f32 1.0, %v2494_v23 }
 0x139   :  { %v2498_v29 = vpop.eup %2497  ;;  %2517 = vrcp.f32 %v884_v24  ;;  %v887_v30 = vadd.f32 1.0, %v2496_v26  ;;  %1159 = vadd.xlane.f32.xlu1 %v1066_v25  ;;  %v2196_v32 = vpop.f32.mrb[48].mxu0 }
 0x13a   :  { %v2500_v33 = vpop.eup %2499  ;;  %2519 = vrcp.f32 %v882_v27  ;;  %v599_v35 = vadd.f32 %v2196_v32, %v2828_v41  ;;  %v1071_v36 = vmul.f32 %v2498_v29, %v2498_v29  ;;  %v590_v37 = vpop.f32.mrb[49].mxu0  ;;  %v2893_v32 = vld [vmem:[%s3112_s2] ss:$0 sm:$0xff] }
 0x13b   :  { %v2502_v38 = vpop.eup %2501  ;;  %2521 = vrcp.f32 %v887_v30  ;;  %v2197_v39 = vpop.f32.mrb[50].mxu0  ;;  %v591_v43 = vadd.f32 %v2828_v41, %v590_v37  ;;  %v1069_v49 = vmul.f32 %v2500_v33, %v2500_v33 }
 0x13c   :  { %v2504_v40 = vpop.eup %2503  ;;  %2523 = vpow2.f32 %v2042_v28  ;;  %v2048_v42 = vmul.f32 -1.442695, %v599_v35  ;;  %1169 = vadd.xlane.f32.xlu0 %v1071_v36  ;;  %v1072_v44 = vmul.f32 %v2502_v38, %v2502_v38  ;;  %v593_v45 = vpop.f32.mrb[51].mxu0  ;;  %v602_v47 = vadd.f32 %v2197_v39, %v2828_v41 }
 0x13d   :  { %v2506_v46 = vpop.eup %2505  ;;  %2525 = vpow2.f32 %v2045_v31  ;;  %v1245_v48 = vpack.c.bf16 %v2504_v40, %v2500_v33  ;;  %v594_v52 = vadd.f32 %v2828_v41, %v593_v45  ;;  %v1246_v53 = vpack.c.bf16 %v2502_v38, %v2498_v29 }
 0x13e   :  { %v2508_v50 = vpop.eup %2507  ;;  %v885_v51 = vadd.f32 1.0, %v2506_v46  ;;  %2527 = vpow2.f32 %v2043_v34  ;;  %1171 = vadd.xlane.f32.xlu1 %v1072_v44  ;;  %v2046_v58 = vmul.f32 -1.442695, %v591_v43  ;;  %v1070_v59 = vmul.f32 %v2504_v40, %v2504_v40 }
 0x13f   :  { %v2510_v54 = vpop.eup %2509  ;;  %v888_v55 = vadd.f32 1.0, %v2508_v50  ;;  %2529 = vpow2.f32 %v2048_v42  ;;  %2258 = vmatprep.mubr.bf16.mxu1 %v1245_v48  ;;  %v2049_v62 = vmul.f32 -1.442695, %v602_v47  ;;  %v2047_v1 = vmul.f32 -1.442695, %v594_v52 }
 0x140   :  { %v2512_v56 = vpop.eup %2511  ;;  %2531 = vrcp.f32 %v885_v51  ;;  %v886_v57 = vadd.f32 1.0, %v2510_v54  ;;  %2259 = vmatmul.mubr.bf16.gmra.mrb[28].mxu1 %v1246_v53  ;;  %1165 = vadd.xlane.f32.xlu0 %v1069_v49 }
 0x141   :  { %v2514_v60 = vpop.eup %2513  ;;  %2533 = vrcp.f32 %v888_v55  ;;  %v891_v61 = vadd.f32 1.0, %v2512_v56  ;;  %v2200_v63 = vpop.f32.mrb[52].mxu0 }
 0x142   :  { %v2516_v0 = vpop.eup %2515  ;;  %2535 = vrcp.f32 %v886_v57  ;;  %1167 = vadd.xlane.f32.xlu1 %v1070_v59  ;;  %v615_v2 = vadd.f32 %v2200_v63, %v2828_v41  ;;  %v1075_v3 = vmul.f32 %v2514_v60, %v2514_v60  ;;  %v606_v4 = vpop.f32.mrb[53].mxu0 }
 0x143   :  { %v2518_v5 = vpop.eup %2517  ;;  %2537 = vrcp.f32 %v891_v61  ;;  %v607_v6 = vadd.f32 %v2828_v41, %v606_v4  ;;  %v2201_v7 = vpop.f32.mrb[54].mxu0  ;;  %v1073_v19 = vmul.f32 %v2516_v0, %v2516_v0 }
 0x144   :  { %v2520_v8 = vpop.eup %2519  ;;  %2539 = vpow2.f32 %v2046_v58  ;;  %v2052_v9 = vmul.f32 -1.442695, %v615_v2  ;;  %1177 = vadd.xlane.f32.xlu0 %v1075_v3  ;;  %v1076_v10 = vmul.f32 %v2518_v5, %v2518_v5  ;;  %v609_v11 = vpop.f32.mrb[55].mxu0  ;;  %v618_v14 = vadd.f32 %v2201_v7, %v2828_v41 }
 0x145   :  { %v2884_v12 = vpop.eup %2521  ;;  %2541 = vpow2.f32 %v2049_v62  ;;  %v2050_v13 = vmul.f32 -1.442695, %v607_v6  ;;  %v1247_v15 = vpack.c.bf16 %v2520_v8, %v2516_v0  ;;  %v610_v17 = vadd.f32 %v2828_v41, %v609_v11 }
 0x146   :  { %v2524_v16 = vpop.eup %2523  ;;  %2543 = vpow2.f32 %v2047_v1  ;;  %1179 = vadd.xlane.f32.xlu1 %v1076_v10  ;;  %v1248_v18 = vpack.c.bf16 %v2518_v5, %v2514_v60  ;;  %v1074_v24 = vmul.f32 %v2520_v8, %v2520_v8  ;;  %v1079_v25 = vmul.f32 %v2884_v12, %v2884_v12 }
 0x147   :  { %v2526_v20 = vpop.eup %2525  ;;  %v889_v21 = vadd.f32 1.0, %v2524_v16  ;;  %2545 = vpow2.f32 %v2052_v9  ;;  %2262 = vmatprep.mubr.bf16.mxu1 %v1247_v15  ;;  %v2053_v28 = vmul.f32 -1.442695, %v618_v14  ;;  %v2051_v31 = vmul.f32 -1.442695, %v610_v17 }
 0x148   :  { %v2528_v22 = vpop.eup %2527  ;;  %v892_v23 = vadd.f32 1.0, %v2526_v20  ;;  %2547 = vpow2.f32 %v2050_v13  ;;  %2263 = vmatmul.mubr.bf16.gmra.mrb[32].mxu1 %v1248_v18  ;;  %1173 = vadd.xlane.f32.xlu0 %v1073_v19 }
 0x149   :  { %v2530_v26 = vpop.eup %2529  ;;  %2549 = vrcp.f32 %v889_v21  ;;  %v890_v27 = vadd.f32 1.0, %v2528_v22  ;;  %v2204_v41 = vpop.f32.mrb[56].mxu0 }
 0x14a   :  { %v2532_v29 = vpop.eup %2531  ;;  %2551 = vrcp.f32 %v892_v23  ;;  %v895_v30 = vadd.f32 1.0, %v2530_v26  ;;  %1175 = vadd.xlane.f32.xlu1 %v1074_v24  ;;  %v631_v33 = vadd.f32 %v2893_v32, %v2204_v41  ;;  %v622_v34 = vpop.f32.mrb[57].mxu0 }
 0x14b   :  { %v2534_v35 = vpop.eup %2533  ;;  %2553 = vrcp.f32 %v890_v27  ;;  %v623_v36 = vadd.f32 %v2893_v32, %v622_v34  ;;  %v2205_v37 = vpop.f32.mrb[58].mxu0  ;;  %v1077_v49 = vmul.f32 %v2532_v29, %v2532_v29 }
 0x14c   :  { %v2536_v38 = vpop.eup %2535  ;;  %2555 = vrcp.f32 %v895_v30  ;;  %v2056_v39 = vmul.f32 -1.442695, %v631_v33  ;;  %1185 = vadd.xlane.f32.xlu0 %v1079_v25  ;;  %v1080_v40 = vmul.f32 %v2534_v35, %v2534_v35  ;;  %v625_v42 = vpop.f32.mrb[59].mxu0  ;;  %v634_v47 = vadd.f32 %v2893_v32, %v2205_v37 }
 0x14d   :  { %v2897_v43 = vpop.eup %2537  ;;  %2557 = vpow2.f32 %v2053_v28  ;;  %v2054_v44 = vmul.f32 -1.442695, %v623_v36  ;;  %v1249_v45 = vpack.c.bf16 %v2536_v38, %v2532_v29  ;;  %v1250_v48 = vpack.c.bf16 %v2534_v35, %v2884_v12 }
 0x14e   :  { %v2540_v46 = vpop.eup %2539  ;;  %2559 = vpow2.f32 %v2051_v31  ;;  %1187 = vadd.xlane.f32.xlu1 %v1080_v40  ;;  %v626_v52 = vadd.f32 %v2893_v32, %v625_v42  ;;  %v1078_v55 = vmul.f32 %v2536_v38, %v2536_v38  ;;  %v1083_v56 = vmul.f32 %v2897_v43, %v2897_v43 }
 0x14f   :  { %v2542_v50 = vpop.eup %2541  ;;  %v893_v51 = vadd.f32 1.0, %v2540_v46  ;;  %2561 = vpow2.f32 %v2056_v39  ;;  %2266 = vmatprep.mubr.bf16.mxu1 %v1249_v45  ;;  %v2057_v62 = vmul.f32 -1.442695, %v634_v47 }
 0x150   :  { %v2544_v53 = vpop.eup %2543  ;;  %v896_v54 = vadd.f32 1.0, %v2542_v50  ;;  %2563 = vpow2.f32 %v2054_v44  ;;  %2267 = vmatmul.mubr.bf16.gmra.mrb[36].mxu1 %v1250_v48  ;;  %1181 = vadd.xlane.f32.xlu0 %v1077_v49  ;;  %v2055_v3 = vmul.f32 -1.442695, %v626_v52 }
 0x151   :  { %v2546_v57 = vpop.eup %2545  ;;  %2565 = vrcp.f32 %v893_v51  ;;  %v894_v58 = vadd.f32 1.0, %v2544_v53  ;;  %v2208_v59 = vpop.f32.mrb[60].mxu0 }
 0x152   :  { %v2548_v60 = vpop.eup %2547  ;;  %2567 = vrcp.f32 %v896_v54  ;;  %v899_v61 = vadd.f32 1.0, %v2546_v57  ;;  %1183 = vadd.xlane.f32.xlu1 %v1078_v55  ;;  %v647_v63 = vadd.f32 %v2893_v32, %v2208_v59  ;;  %v638_v0 = vpop.f32.mrb[61].mxu0 }
 0x153   :  { %v2550_v1 = vpop.eup %2549  ;;  %2569 = vrcp.f32 %v894_v58  ;;  %v897_v2 = vadd.f32 1.0, %v2548_v60  ;;  %v639_v4 = vadd.f32 %v2893_v32, %v638_v0  ;;  %v2209_v5 = vpop.f32.mrb[62].mxu0 }
 0x154   :  { %v2552_v6 = vpop.eup %2551  ;;  %2571 = vrcp.f32 %v899_v61  ;;  %v2060_v7 = vmul.f32 -1.442695, %v647_v63  ;;  %1193 = vadd.xlane.f32.xlu0 %v1083_v56  ;;  %v641_v8 = vpop.f32.mrb[63].mxu0  ;;  %v650_v12 = vadd.f32 %v2893_v32, %v2209_v5  ;;  %v1081_v16 = vmul.f32 %v2550_v1, %v2550_v1 }
 0x155   :  { %v2554_v9 = vpop.eup %2553  ;;  %2573 = vrcp.f32 %v897_v2  ;;  %v2058_v10 = vmul.f32 -1.442695, %v639_v4  ;;  %v1084_v11 = vmul.f32 %v2552_v6, %v2552_v6  ;;  %v1252_v15 = vpack.c.bf16 %v2552_v6, %v2897_v43 }
 0x156   :  { %v2556_v13 = vpop.eup %2555  ;;  %2575 = vpow2.f32 %v2057_v62  ;;  %v1251_v14 = vpack.c.bf16 %v2554_v9, %v2550_v1  ;;  %v642_v18 = vadd.f32 %v2893_v32, %v641_v8  ;;  %v1082_v24 = vmul.f32 %v2554_v9, %v2554_v9 }
 0x157   :  { %v2558_v17 = vpop.eup %2557  ;;  %2577 = vpow2.f32 %v2055_v3  ;;  %1195 = vadd.xlane.f32.xlu1 %v1084_v11  ;;  %v1087_v21 = vmul.f32 %v2556_v13, %v2556_v13  ;;  %v2061_v27 = vmul.f32 -1.442695, %v650_v12 }
 0x158   :  { %v2560_v19 = vpop.eup %2559  ;;  %v900_v20 = vadd.f32 1.0, %v2558_v17  ;;  %2579 = vpow2.f32 %v2060_v7  ;;  %2270 = vmatprep.mubr.bf16.mxu1 %v1251_v14  ;;  %1189 = vadd.xlane.f32.xlu0 %v1081_v16  ;;  %v2059_v41 = vmul.f32 -1.442695, %v642_v18 }
 0x159   :  { %v2562_v22 = vpop.eup %2561  ;;  %v898_v23 = vadd.f32 1.0, %v2560_v19  ;;  %2581 = vpow2.f32 %v2058_v10  ;;  %2271 = vmatmul.mubr.bf16.gmra.mrb[40].mxu1 %v1252_v15 }
 0x15a   :  { %v2564_v25 = vpop.eup %2563  ;;  %2583 = vrcp.f32 %v900_v20  ;;  %v903_v26 = vadd.f32 1.0, %v2562_v22  ;;  %v2636_v22 = vmov inf  }
 0x15b   :  { %v2566_v28 = vpop.eup %2565  ;;  %2585 = vrcp.f32 %v898_v23  ;;  %1191 = vadd.xlane.f32.xlu1 %v1082_v24  ;;  %v901_v31 = vadd.f32 1.0, %v2564_v25  ;;  %26 = vst [vmem:[#allocation2] sm:$0x1] %v2636_v22  ;;  %27 = vst [vmem:[#allocation2 + $0x1] sm:$0x1] %v2636_v22 }
 0x15c   :  { %v2568_v29 = vpop.eup %2567  ;;  %2587 = vrcp.f32 %v903_v26  ;;  %1201 = vadd.xlane.f32.xlu0 %v1087_v21  ;;  %v1085_v36 = vmul.f32 %v2566_v28, %v2566_v28 }
 0x15d   :  { %v2570_v30 = vpop.eup %2569  ;;  %v1088_v32 = vmul.f32 %v2568_v29, %v2568_v29  ;;  %v1254_v33 = vpack.c.bf16 %v2568_v29, %v2556_v13  ;;  %2589 = vpow2.f32 %v2061_v27 }
 0x15e   :  { %v2572_v34 = vpop.eup %2571  ;;  %v1253_v35 = vpack.c.bf16 %v2570_v30, %v2566_v28  ;;  %2591 = vpow2.f32 %v2059_v41  ;;  %v1086_v43 = vmul.f32 %v2570_v30, %v2570_v30 }
 0x15f   :  { %v2574_v37 = vpop.eup %2573  ;;  %1203 = vadd.xlane.f32.xlu1 %v1088_v32  ;;  %v1091_v39 = vmul.f32 %v2572_v34, %v2572_v34  ;;  %2593 = vrcp.f32 %v901_v31 }
 0x160   :  { %v2576_v38 = vpop.eup %2575  ;;  %2274 = vmatprep.mubr.bf16.mxu1 %v1253_v35  ;;  %1197 = vadd.xlane.f32.xlu0 %v1085_v36  ;;  %v1089_v55 = vmul.f32 %v2574_v37, %v2574_v37 }
 0x161   :  { %v2578_v40 = vpop.eup %2577  ;;  %v904_v42 = vadd.f32 1.0, %v2576_v38  ;;  %2275 = vmatmul.mubr.bf16.gmra.mrb[44].mxu1 %v1254_v33  ;;  %v2938_v38 = vld [vmem:[%s3114_s4] ss:$0 sm:$0xff]  ;;  %s2637_s4 = smov [#allocation2]  }
 0x162   :  { %v2580_v44 = vpop.eup %2579  ;;  %v902_v45 = vadd.f32 1.0, %v2578_v40  ;;  %s1921_s25 = sshll.u32 %s2637_s4, 4  ;;  %s1922_s25 = int_to_ptr.vmem [resolvable:$true] %s1921_s25 }
 0x163   :  { %v2582_v46 = vpop.eup %2581  ;;  %2595 = vrcp.f32 %v904_v42  ;;  %1199 = vadd.xlane.f32.xlu1 %v1086_v43  ;;  %v907_v50 = vadd.f32 1.0, %v2580_v44  ;;  %s2612_s1 = scalar_lea.vmem %s1922_s25, 32  ;;  %p2617_p1 = scmp.lt.s32.totalorder %s1922_s25, %s1922_s25 }
 0x164   :  { %v2584_v47 = vpop.eup %2583  ;;  %2597 = vrcp.f32 %v902_v45  ;;  %v905_v48 = vadd.f32 1.0, %v2582_v46  ;;  %1209 = vadd.xlane.f32.xlu0 %v1091_v39  ;;  %p2613_p0 = scmp.ne.s32.totalorder %s1922_s25, %s2612_s1  ;;  %p2618_p2 = scmp.lt.s32.totalorder %s2612_s1, %s2612_s1 }
 0x165   :  { %v2586_v49 = vpop.eup %2585  ;;  %v1092_v51 = vmul.f32 %v2584_v47, %v2584_v47  ;;  %v1256_v52 = vpack.c.bf16 %v2584_v47, %v2572_v34 }
 0x166   :  { %v2588_v53 = vpop.eup %2587  ;;  %2599 = vrcp.f32 %v905_v48  ;;  %v1255_v54 = vpack.c.bf16 %v2586_v49, %v2574_v37  ;;  %v1090_v60 = vmul.f32 %v2586_v49, %v2586_v49  ;;  %p2619_p3 = por %p2618_p2, %p2617_p1 }
 0x167   :  { %1211 = vadd.xlane.f32.xlu1 %v1092_v51  ;;  %v2590_v56 = vpop.eup %2589  ;;  %v1095_v57 = vmul.f32 %v2588_v53, %v2588_v53  ;;  %2601 = vrcp.f32 %v907_v50 }
 0x168   :  { %2278 = vmatprep.mubr.bf16.mxu1 %v1255_v54  ;;  %1205 = vadd.xlane.f32.xlu0 %v1089_v55  ;;  %v2592_v58 = vpop.eup %2591  ;;  %v908_v59 = vadd.f32 1.0, %v2590_v56  ;;  %p2620_p4 = pnand %p2619_p3, %p2613_p0 }
 0x169   :  { %2279 = vmatmul.mubr.bf16.gmra.mrb[48].mxu1 %v1256_v52  ;;  %v906_v61 = vadd.f32 1.0, %v2592_v58  ;;  %v2594_v62 = vpop.eup %2593 }
 0x16a   :  { %2603 = vrcp.f32 %v908_v59  ;;  %v1093_v3 = vmul.f32 %v2594_v62, %v2594_v62 }
 0x16b   :  { %1207 = vadd.xlane.f32.xlu1 %v1090_v60  ;;  %2605 = vrcp.f32 %v906_v61 }
 0x16c   :  { %1217 = vadd.xlane.f32.xlu0 %v1095_v57 }
 0x16d   :  { %v2596_v63 = vpop.eup %2595 }
 0x16e   :  { %v2598_v0 = vpop.eup %2597  ;;  %v1096_v1 = vmul.f32 %v2596_v63, %v2596_v63  ;;  %v1258_v2 = vpack.c.bf16 %v2596_v63, %v2588_v53 }
 0x16f   :  { %v1257_v4 = vpack.c.bf16 %v2598_v0, %v2594_v62  ;;  %v1094_v7 = vmul.f32 %v2598_v0, %v2598_v0 }
 0x170   :  { %v2600_v5 = vpop.eup %2599  ;;  %1219 = vadd.xlane.f32.xlu1 %v1096_v1  ;;  %1213 = vadd.xlane.f32.xlu0 %v1093_v3 }
 0x171   :  { %2282 = vmatprep.mubr.bf16.mxu1 %v1257_v4  ;;  %v1097_v6 = vmul.f32 %v2600_v5, %v2600_v5  ;;  %v2602_v8 = vpop.eup %2601 }
 0x172   :  { %2283 = vmatmul.mubr.bf16.gmra.mrb[52].mxu1 %v1258_v2  ;;  %v1099_v12 = vmul.f32 %v2602_v8, %v2602_v8 }
 0x174   :  { %1215 = vadd.xlane.f32.xlu1 %v1094_v7  ;;  %1221 = vadd.xlane.f32.xlu0 %v1097_v6  ;;  %v2604_v9 = vpop.eup %2603 }
 0x175   :  { %v2606_v10 = vpop.eup %2605  ;;  %v1260_v11 = vpack.c.bf16 %v2604_v9, %v2602_v8  ;;  %v1100_v15 = vmul.f32 %v2604_v9, %v2604_v9 }
 0x176   :  { %v1098_v13 = vmul.f32 %v2606_v10, %v2606_v10  ;;  %v1259_v14 = vpack.c.bf16 %v2606_v10, %v2600_v5 }
 0x178   :  { %1225 = vadd.xlane.f32.xlu0 %v1099_v12  ;;  %1223 = vadd.xlane.f32.xlu1 %v1098_v13 }
 0x179   :  { %2286 = vmatprep.mubr.bf16.mxu1 %v1259_v14 }
 0x17a   :  { %2287 = vmatmul.mubr.bf16.gmra.mrb[56].mxu1 %v1260_v11 }
 0x17c   :  { %1227 = vadd.xlane.f32.xlu1 %v1100_v15 }
 0x185   :  { %v1106_v17 = vpop.xlane.xlu1 %1105 }
 0x186   :  { %v1102_v16 = vpop.xlane.xlu0 %1101 }
 0x189   :  { %v1108_v19 = vpop.xlane.xlu1 %1107 }
 0x18a   :  { %v1104_v18 = vpop.xlane.xlu0 %1103 }
 0x18e   :  { %v1114_v20 = vpop.xlane.xlu0 %1113 }
 0x18f   :  { %v1116_v21 = vpop.xlane.xlu1 %1115 }
 0x192   :  { %v1110_v23 = vpop.xlane.xlu0 %1109 }
 0x193   :  { %v1112_v24 = vpop.xlane.xlu1 %1111 }
 0x196   :  { %v2909_v25 = vpop.xlane.xlu0 %1121 }
 0x198   :  { %v2911_v26 = vpop.xlane.xlu1 %1123 }
 0x19a   :  { %v2913_v27 = vpop.xlane.xlu0 %1117 }
 0x19c   :  { %v2915_v28 = vpop.xlane.xlu1 %1119 }
 0x19e   :  { %v2917_v41 = vpop.xlane.xlu0 %1129 }
 0x1a0   :  { %v2919_v29 = vpop.xlane.xlu1 %1131 }
 0x1a2   :  { %v2921_v30 = vpop.xlane.xlu0 %1125 }
 0x1a4   :  { %v2923_v31 = vpop.xlane.xlu1 %1127 }
 0x1a7   :  { %v2925_v32 = vpop.xlane.xlu0 %1137 }
 0x1a9   :  { %v2927_v33 = vpop.xlane.xlu1 %1139 }
 0x1ab   :  { %v2929_v34 = vpop.xlane.xlu0 %1133 }
 0x1ad   :  { %v2931_v35 = vpop.xlane.xlu1 %1135 }
 0x1af   :  { %v2933_v36 = vpop.xlane.xlu0 %1145 }
 0x1b1   :  { %v2940_v42 = vpop.xlane.xlu1 %1147 }
 0x1b3   :  { %v2945_v52 = vpop.xlane.xlu0 %1141 }
 0x1b5   :  { %v2948_v56 = vpop.xlane.xlu1 %1143 }
 0x1b8   :  { %v2950_v3 = vpop.xlane.xlu0 %1153 }
 0x1ba   :  { %v2954_v7 = vpop.xlane.xlu1 %1155 }
 0x1bc   :  { %v2958_v15 = vpop.xlane.xlu0 %1149 }
 0x1cf   :  { %v2228_v37 = vpop.f32.mrb[64].mxu0 }
 0x1d0   :  { %v1616_v39 = vsub.f32 %v1106_v17, %v2228_v37  ;;  %v1359_v40 = vpop.f32.mrb[65].mxu0 }
 0x1d1   :  { %v1614_v43 = vsub.f32 %v1102_v16, %v1359_v40  ;;  %v2229_v44 = vpop.f32.mrb[66].mxu0 }
 0x1d2   :  { %v1687_v45 = vadd.f32 %v2938_v38, %v1616_v39  ;;  %v1617_v46 = vsub.f32 %v1108_v19, %v2229_v44  ;;  %v1362_v47 = vpop.f32.mrb[67].mxu0 }
 0x1d3   :  { %v1685_v48 = vadd.f32 %v2938_v38, %v1614_v43  ;;  %v1615_v49 = vsub.f32 %v1104_v18, %v1362_v47  ;;  %v2970_v47 = vpop.xlane.xlu0 %1161 }
 0x1d4   :  { %v1751_v50 = vand.u32 2147483647, %v1687_v45  ;;  %v1688_v51 = vadd.f32 %v2938_v38, %v1617_v46 }
 0x1d5   :  { %v1749_v53 = vand.u32 2147483647, %v1685_v48  ;;  %v1686_v54 = vadd.f32 %v2938_v38, %v1615_v49 }
 0x1d6   :  { %v1752_v55 = vand.u32 2147483647, %v1688_v51 }
 0x1d7   :  { %v1813_v57 = vmin.f32 %v1749_v53, %v1751_v50  ;;  %v1750_v58 = vand.u32 2147483647, %v1686_v54  ;;  %v2232_v59 = vpop.f32.mrb[0].mxu1 }
 0x1d8   :  { %v1620_v60 = vsub.f32 %v1114_v20, %v2232_v59  ;;  %v1375_v61 = vpop.f32.mrb[1].mxu1 }
 0x1d9   :  { %v1814_v62 = vmin.f32 %v1750_v58, %v1752_v55  ;;  %v1618_v63 = vsub.f32 %v1110_v23, %v1375_v61  ;;  %v2233_v0 = vpop.f32.mrb[2].mxu1  ;;  %v2962_v23 = vpop.xlane.xlu1 %1151 }
 0x1da   :  { %v1621_v1 = vsub.f32 %v1116_v21, %v2233_v0  ;;  %v1378_v2 = vpop.f32.mrb[3].mxu1  ;;  %v1691_v4 = vadd.f32 %v2938_v38, %v1620_v60 }
 0x1db   :  { %v1689_v5 = vadd.f32 %v2938_v38, %v1618_v63  ;;  %v1619_v6 = vsub.f32 %v1112_v24, %v1378_v2 }
 0x1dc   :  { %v1692_v9 = vadd.f32 %v2938_v38, %v1621_v1  ;;  %v1755_v11 = vand.u32 2147483647, %v1691_v4  ;;  %v2980_v1 = vpop.xlane.xlu0 %1157 }
 0x1dd   :  { %v1753_v8 = vand.u32 2147483647, %v1689_v5  ;;  %v1690_v10 = vadd.f32 %v2938_v38, %v1619_v6 }
 0x1de   :  { %v1756_v16 = vand.u32 2147483647, %v1692_v9 }
 0x1df   :  { %v1815_v12 = vmin.f32 %v1813_v57, %v1753_v8  ;;  %v1754_v13 = vand.u32 2147483647, %v1690_v10 }
 0x1e0   :  { %v2236_v14 = vpop.f32.mrb[4].mxu1 }
 0x1e1   :  { %v1816_v17 = vmin.f32 %v1814_v62, %v1754_v13  ;;  %v1624_v18 = vsub.f32 %v2909_v25, %v2236_v14  ;;  %v1391_v19 = vpop.f32.mrb[5].mxu1  ;;  %v1817_v20 = vmin.f32 %v1815_v12, %v1755_v11  ;;  %v2987_v13 = vpop.xlane.xlu0 %1169 }
 0x1e2   :  { %v1622_v21 = vsub.f32 %v2913_v27, %v1391_v19  ;;  %v2237_v22 = vpop.f32.mrb[6].mxu1 }
 0x1e3   :  { %v1625_v24 = vsub.f32 %v2911_v26, %v2237_v22  ;;  %v1394_v37 = vpop.f32.mrb[7].mxu1  ;;  %v1818_v39 = vmin.f32 %v1816_v17, %v1756_v16  ;;  %v1695_v40 = vadd.f32 %v2938_v38, %v1624_v18  ;;  %v2972_v26 = vpop.xlane.xlu1 %1163 }
 0x1e4   :  { %v1693_v43 = vadd.f32 %v2938_v38, %v1622_v21  ;;  %v1623_v44 = vsub.f32 %v2915_v28, %v1394_v37 }
 0x1e5   :  { %v1696_v25 = vadd.f32 %v2938_v38, %v1625_v24  ;;  %v1759_v27 = vand.u32 2147483647, %v1695_v40  ;;  %v2998_v40 = vpop.xlane.xlu0 %1165 }
 0x1e6   :  { %v1757_v45 = vand.u32 2147483647, %v1693_v43  ;;  %v1694_v46 = vadd.f32 %v2938_v38, %v1623_v44 }
 0x1e7   :  { %v1760_v54 = vand.u32 2147483647, %v1696_v25 }
 0x1e8   :  { %v1819_v48 = vmin.f32 %v1817_v20, %v1757_v45  ;;  %v1758_v49 = vand.u32 2147483647, %v1694_v46  ;;  %v2240_v50 = vpop.f32.mrb[8].mxu1 }
 0x1e9   :  { %v1628_v51 = vsub.f32 %v2917_v41, %v2240_v50  ;;  %v1407_v53 = vpop.f32.mrb[9].mxu1 }
 0x1ea   :  { %v1820_v55 = vmin.f32 %v1818_v39, %v1758_v49  ;;  %v1626_v28 = vsub.f32 %v2921_v30, %v1407_v53  ;;  %v1821_v57 = vmin.f32 %v1819_v48, %v1759_v27  ;;  %v2241_v58 = vpop.f32.mrb[10].mxu1  ;;  %v2984_v30 = vpop.xlane.xlu1 %1159 }
 0x1eb   :  { %v1629_v59 = vsub.f32 %v2919_v29, %v2241_v58  ;;  %v1410_v60 = vpop.f32.mrb[11].mxu1  ;;  %v1699_v61 = vadd.f32 %v2938_v38, %v1628_v51 }
 0x1ec   :  { %v1697_v62 = vadd.f32 %v2938_v38, %v1626_v28  ;;  %v1627_v63 = vsub.f32 %v2923_v31, %v1410_v60  ;;  %v1822_v0 = vmin.f32 %v1820_v55, %v1760_v54 }
 0x1ed   :  { %v1700_v2 = vadd.f32 %v2938_v38, %v1629_v59  ;;  %v1763_v5 = vand.u32 2147483647, %v1699_v61 }
 0x1ee   :  { %v1761_v41 = vand.u32 2147483647, %v1697_v62  ;;  %v1698_v4 = vadd.f32 %v2938_v38, %v1627_v63  ;;  %v2991_v20 = vpop.xlane.xlu1 %1171 }
 0x1ef   :  { %v1764_v9 = vand.u32 2147483647, %v1700_v2 }
 0x1f0   :  { %v1823_v6 = vmin.f32 %v1821_v57, %v1761_v41  ;;  %v1762_v29 = vand.u32 2147483647, %v1698_v4 }
 0x1f1   :  { %v2244_v8 = vpop.f32.mrb[12].mxu1 }
 0x1f2   :  { %v1824_v10 = vmin.f32 %v1822_v0, %v1762_v29  ;;  %v1632_v11 = vsub.f32 %v2925_v32, %v2244_v8  ;;  %v1423_v12 = vpop.f32.mrb[13].mxu1  ;;  %v1825_v31 = vmin.f32 %v1823_v6, %v1763_v5  ;;  %v3001_v46 = vpop.xlane.xlu1 %1167 }
 0x1f3   :  { %v1630_v14 = vsub.f32 %v2929_v34, %v1423_v12  ;;  %v2245_v16 = vpop.f32.mrb[14].mxu1 }
 0x1f4   :  { %v1633_v17 = vsub.f32 %v2927_v33, %v2245_v16  ;;  %v1426_v18 = vpop.f32.mrb[15].mxu1  ;;  %v1826_v19 = vmin.f32 %v1824_v10, %v1764_v9  ;;  %v1703_v21 = vadd.f32 %v2938_v38, %v1632_v11 }
 0x1f5   :  { %v1701_v22 = vadd.f32 %v2938_v38, %v1630_v14  ;;  %v1631_v24 = vsub.f32 %v2931_v35, %v1426_v18 }
 0x1f6   :  { %v1704_v37 = vadd.f32 %v2938_v38, %v1633_v17  ;;  %v1767_v34 = vand.u32 2147483647, %v1703_v21 }
 0x1f7   :  { %v1765_v32 = vand.u32 2147483647, %v1701_v22  ;;  %v1702_v39 = vadd.f32 %v2938_v38, %v1631_v24 }
 0x1f8   :  { %v1768_v27 = vand.u32 2147483647, %v1704_v37 }
 0x1f9   :  { %v1827_v43 = vmin.f32 %v1825_v31, %v1765_v32  ;;  %v1766_v33 = vand.u32 2147483647, %v1702_v39  ;;  %v2248_v44 = vpop.f32.mrb[16].mxu1 }
 0x1fa   :  { %v1636_v45 = vsub.f32 %v2933_v36, %v2248_v44  ;;  %v1439_v25 = vpop.f32.mrb[17].mxu1  ;;  %v3008_v36 = vpop.xlane.xlu0 %1177 }
 0x1fb   :  { %v1828_v48 = vmin.f32 %v1826_v19, %v1766_v33  ;;  %v1634_v35 = vsub.f32 %v2945_v52, %v1439_v25  ;;  %v1829_v49 = vmin.f32 %v1827_v43, %v1767_v34  ;;  %v2249_v50 = vpop.f32.mrb[18].mxu1  ;;  %v3012_v52 = vpop.xlane.xlu1 %1179 }
 0x1fc   :  { %v1637_v51 = vsub.f32 %v2940_v42, %v2249_v50  ;;  %v1442_v53 = vpop.f32.mrb[19].mxu1  ;;  %v1707_v54 = vadd.f32 %v2938_v38, %v1636_v45 }
 0x1fd   :  { %v1705_v55 = vadd.f32 %v2938_v38, %v1634_v35  ;;  %v1635_v28 = vsub.f32 %v2948_v56, %v1442_v53  ;;  %v1830_v57 = vmin.f32 %v1828_v48, %v1768_v27 }
 0x1fe   :  { %v1708_v59 = vadd.f32 %v2938_v38, %v1637_v51  ;;  %v1771_v61 = vand.u32 2147483647, %v1707_v54  ;;  %v3016_v29 = vpop.xlane.xlu0 %1173 }
 0x1ff   :  { %v1769_v58 = vand.u32 2147483647, %v1705_v55  ;;  %v1706_v60 = vadd.f32 %v2938_v38, %v1635_v28  ;;  %v3022_v14 = vpop.xlane.xlu1 %1175 }
 0x200   :  { %v1772_v0 = vand.u32 2147483647, %v1708_v59 }
 0x201   :  { %v1831_v62 = vmin.f32 %v1829_v49, %v1769_v58  ;;  %v1770_v42 = vand.u32 2147483647, %v1706_v60 }
 0x202   :  { %v2252_v63 = vpop.f32.mrb[20].mxu1 }
 0x203   :  { %v1832_v41 = vmin.f32 %v1830_v57, %v1770_v42  ;;  %v1640_v2 = vsub.f32 %v2950_v3, %v2252_v63  ;;  %v1455_v4 = vpop.f32.mrb[21].mxu1  ;;  %v1833_v56 = vmin.f32 %v1831_v62, %v1771_v61  ;;  %v3030_v43 = vpop.xlane.xlu1 %1187 }
 0x204   :  { %v1638_v5 = vsub.f32 %v2958_v15, %v1455_v4  ;;  %v2253_v6 = vpop.f32.mrb[22].mxu1 }
 0x205   :  { %v1641_v8 = vsub.f32 %v2954_v7, %v2253_v6  ;;  %v1458_v9 = vpop.f32.mrb[23].mxu1  ;;  %v1834_v10 = vmin.f32 %v1832_v41, %v1772_v0  ;;  %v1711_v11 = vadd.f32 %v2938_v38, %v1640_v2  ;;  %v3026_v7 = vpop.xlane.xlu0 %1185 }
 0x206   :  { %v1709_v12 = vadd.f32 %v2938_v38, %v1638_v5  ;;  %v1639_v31 = vsub.f32 %v2962_v23, %v1458_v9 }
 0x207   :  { %v1712_v16 = vadd.f32 %v2938_v38, %v1641_v8  ;;  %v1775_v17 = vand.u32 2147483647, %v1711_v11  ;;  %v3040_v54 = vpop.xlane.xlu1 %1183 }
 0x208   :  { %v1773_v3 = vand.u32 2147483647, %v1709_v12  ;;  %v1710_v15 = vadd.f32 %v2938_v38, %v1639_v31 }
 0x209   :  { %v1776_v32 = vand.u32 2147483647, %v1712_v16 }
 0x20a   :  { %v1835_v18 = vmin.f32 %v1833_v56, %v1773_v3  ;;  %v1774_v19 = vand.u32 2147483647, %v1710_v15  ;;  %v2256_v21 = vpop.f32.mrb[24].mxu1 }
 0x20b   :  { %v1644_v22 = vsub.f32 %v2970_v47, %v2256_v21  ;;  %v1471_v24 = vpop.f32.mrb[25].mxu1  ;;  %v3051_v5 = vpop.xlane.xlu1 %1195 }
 0x20c   :  { %v1836_v37 = vmin.f32 %v1834_v10, %v1774_v19  ;;  %v1642_v23 = vsub.f32 %v2980_v1, %v1471_v24  ;;  %v1837_v39 = vmin.f32 %v1835_v18, %v1775_v17  ;;  %v2257_v34 = vpop.f32.mrb[26].mxu1  ;;  %v3038_v1 = vpop.xlane.xlu0 %1181 }
 0x20d   :  { %v1645_v33 = vsub.f32 %v2972_v26, %v2257_v34  ;;  %v1474_v44 = vpop.f32.mrb[27].mxu1  ;;  %v1715_v45 = vadd.f32 %v2938_v38, %v1644_v22 }
 0x20e   :  { %v1713_v25 = vadd.f32 %v2938_v38, %v1642_v23  ;;  %v1643_v27 = vsub.f32 %v2984_v30, %v1474_v44  ;;  %v1838_v48 = vmin.f32 %v1836_v37, %v1776_v32 }
 0x20f   :  { %v1716_v35 = vadd.f32 %v2938_v38, %v1645_v33  ;;  %v1779_v50 = vand.u32 2147483647, %v1715_v45  ;;  %v1192_v22 = vpop.xlane.xlu1 %1191 }
 0x210   :  { %v1777_v47 = vand.u32 2147483647, %v1713_v25  ;;  %v1714_v49 = vadd.f32 %v2938_v38, %v1643_v27  ;;  %v3046_v0 = vpop.xlane.xlu0 %1193 }
 0x211   :  { %v1780_v28 = vand.u32 2147483647, %v1716_v35 }
 0x212   :  { %v1839_v51 = vmin.f32 %v1837_v39, %v1777_v47  ;;  %v1778_v53 = vand.u32 2147483647, %v1714_v49 }
 0x213   :  { %v2260_v26 = vpop.f32.mrb[28].mxu1  ;;  %v3065_v49 = vpop.xlane.xlu1 %1203 }
 0x214   :  { %v1841_v55 = vmin.f32 %v1839_v51, %v1779_v50  ;;  %v1840_v57 = vmin.f32 %v1838_v48, %v1778_v53  ;;  %v1648_v58 = vsub.f32 %v2987_v13, %v2260_v26  ;;  %v1487_v30 = vpop.f32.mrb[29].mxu1  ;;  %v1190_v16 = vpop.xlane.xlu0 %1189 }
 0x215   :  { %v1646_v59 = vsub.f32 %v2998_v40, %v1487_v30  ;;  %v2261_v60 = vpop.f32.mrb[30].mxu1 }
 0x216   :  { %v1842_v61 = vmin.f32 %v1840_v57, %v1780_v28  ;;  %v1719_v62 = vadd.f32 %v2938_v38, %v1648_v58  ;;  %v1649_v42 = vsub.f32 %v2991_v20, %v2261_v60  ;;  %v1490_v63 = vpop.f32.mrb[31].mxu1 }
 0x217   :  { %v1717_v41 = vadd.f32 %v2938_v38, %v1646_v59  ;;  %v1647_v2 = vsub.f32 %v3001_v46, %v1490_v63 }
 0x218   :  { %v1843_v4 = vmin.f32 %v1841_v55, %v1842_v61  ;;  %v1783_v56 = vand.u32 2147483647, %v1719_v62  ;;  %v1720_v13 = vadd.f32 %v2938_v38, %v1649_v42  ;;  %v3062_v44 = vpop.xlane.xlu0 %1201  ;;  %v1200_v42 = vpop.xlane.xlu1 %1199 }
 0x219   :  { %v1781_v40 = vand.u32 2147483647, %v1717_v41  ;;  %v1718_v6 = vadd.f32 %v2938_v38, %v1647_v2 }
 0x21a   :  { %v1844_v8 = vrot.slane %v1843_v4, 4  ;;  %v1784_v9 = vand.u32 2147483647, %v1720_v13 }
 0x21b   :  { %v1850_v10 = vmin.f32 %v1781_v40, %v1783_v56  ;;  %v1782_v20 = vand.u32 2147483647, %v1718_v6  ;;  %v2264_v11 = vpop.f32.mrb[32].mxu1 }
 0x21c   :  { %v1845_v12 = vmin.f32 %v1843_v4, %v1844_v8  ;;  %v1652_v31 = vsub.f32 %v3008_v36, %v2264_v11  ;;  %v1503_v3 = vpop.f32.mrb[33].mxu1  ;;  %v1198_v60 = vpop.xlane.xlu0 %1197 }
 0x21d   :  { %v1851_v46 = vmin.f32 %v1782_v20, %v1784_v9  ;;  %v1650_v15 = vsub.f32 %v3016_v29, %v1503_v3  ;;  %v2265_v17 = vpop.f32.mrb[34].mxu1  ;;  %v1887_v29 = vld [vmem:[#allocation2] sm:$0x1] }
 0x21e   :  { %v1846_v18 = vrot.slane %v1845_v12, 2  ;;  %v1653_v19 = vsub.f32 %v3012_v52, %v2265_v17  ;;  %v1506_v21 = vpop.f32.mrb[35].mxu1  ;;  %v1723_v24 = vadd.f32 %v2938_v38, %v1652_v31  ;;  %v1212_v17 = vpop.xlane.xlu1 %1211 }
 0x21f   :  { %v1721_v32 = vadd.f32 %v2938_v38, %v1650_v15  ;;  %v1651_v37 = vsub.f32 %v3022_v14, %v1506_v21 }
 0x220   :  { %v1847_v23 = vmin.f32 %v1845_v12, %v1846_v18  ;;  %v1724_v36 = vadd.f32 %v2938_v38, %v1653_v19  ;;  %v1787_v45 = vand.u32 2147483647, %v1723_v24  ;;  %v1210_v9 = vpop.xlane.xlu0 %1209 }
 0x221   :  { %v1785_v39 = vand.u32 2147483647, %v1721_v32  ;;  %v1722_v34 = vadd.f32 %v2938_v38, %v1651_v37 }
 0x222   :  { %v1848_v33 = vrot.slane %v1847_v23, 1  ;;  %v1788_v14 = vand.u32 2147483647, %v1724_v36 }
 0x223   :  { %v1852_v52 = vmin.f32 %v1850_v10, %v1785_v39  ;;  %v1786_v25 = vand.u32 2147483647, %v1722_v34  ;;  %v2268_v27 = vpop.f32.mrb[36].mxu1 }
 0x224   :  { %v1849_v48 = vmin.f32 %v1847_v23, %v1848_v33  ;;  %v1656_v47 = vsub.f32 %v3026_v7, %v2268_v27  ;;  %v1519_v35 = vpop.f32.mrb[37].mxu1  ;;  %v1206_v32 = vpop.xlane.xlu0 %1205 }
 0x225   :  { %v1853_v50 = vmin.f32 %v1851_v46, %v1786_v25  ;;  %v1654_v51 = vsub.f32 %v3038_v1, %v1519_v35  ;;  %v1854_v53 = vmin.f32 %v1852_v52, %v1787_v45  ;;  %v2269_v26 = vpop.f32.mrb[38].mxu1 }
 0x226   :  { %v1657_v55 = vsub.f32 %v3030_v43, %v2269_v26  ;;  %v1522_v28 = vpop.f32.mrb[39].mxu1  ;;  %v1889_v57 = vmin.f32 %v1887_v29, %v1849_v48  ;;  %v1727_v58 = vadd.f32 %v2938_v38, %v1656_v47  ;;  %v1208_v29 = vpop.xlane.xlu1 %1207 }
 0x227   :  { %v1725_v30 = vadd.f32 %v2938_v38, %v1654_v51  ;;  %v1655_v59 = vsub.f32 %v3040_v54, %v1522_v28  ;;  %v1855_v7 = vmin.f32 %v1853_v50, %v1788_v14 }
 0x228   :  { %1891 = vst [vmem:[#allocation2] sm:$0x1] %v1889_v57  ;;  %v1728_v62 = vadd.f32 %v2938_v38, %v1657_v55  ;;  %v1791_v63 = vand.u32 2147483647, %v1727_v58  ;;  %v1218_v50 = vpop.xlane.xlu0 %1217 }
 0x229   :  { %v1789_v61 = vand.u32 2147483647, %v1725_v30  ;;  %v1726_v1 = vadd.f32 %v2938_v38, %v1655_v59 }
 0x22a   :  { %v1792_v4 = vand.u32 2147483647, %v1728_v62  ;;  %v1220_v57 = vpop.xlane.xlu1 %1219 }
 0x22b   :  { %v1856_v41 = vmin.f32 %v1854_v53, %v1789_v61  ;;  %v1790_v43 = vand.u32 2147483647, %v1726_v1 }
 0x22c   :  { %v2272_v2 = vpop.f32.mrb[40].mxu1 }
 0x22d   :  { %v1857_v56 = vmin.f32 %v1855_v7, %v1790_v43  ;;  %v1660_v13 = vsub.f32 %v3046_v0, %v2272_v2  ;;  %v1535_v40 = vpop.f32.mrb[41].mxu1  ;;  %v1858_v6 = vmin.f32 %v1856_v41, %v1791_v63 }
 0x22e   :  { %v1658_v54 = vsub.f32 %v1190_v16, %v1535_v40  ;;  %v2273_v8 = vpop.f32.mrb[42].mxu1  ;;  %v1214_v40 = vpop.xlane.xlu0 %1213 }
 0x22f   :  { %v1661_v10 = vsub.f32 %v3051_v5, %v2273_v8  ;;  %v1538_v20 = vpop.f32.mrb[43].mxu1  ;;  %v1859_v11 = vmin.f32 %v1857_v56, %v1792_v4  ;;  %v1896_v12 = vld [vmem:[#allocation2] sm:$0x1]  ;;  %v1731_v31 = vadd.f32 %v2938_v38, %v1660_v13 }
 0x230   :  { %v1729_v3 = vadd.f32 %v2938_v38, %v1658_v54  ;;  %v1659_v46 = vsub.f32 %v1192_v22, %v1538_v20  ;;  %v1898_v15 = vadd.f32 1e-14, %v1896_v12 }
 0x231   :  { %v1732_v0 = vadd.f32 %v2938_v38, %v1661_v10  ;;  %v1795_v16 = vand.u32 2147483647, %v1731_v31 }
 0x232   :  { %v1793_v18 = vand.u32 2147483647, %v1729_v3  ;;  %v1730_v19 = vadd.f32 %v2938_v38, %v1659_v46  ;;  %2607 = vrsqrt.f32 %v1898_v15  ;;  %vm1902_vm1 = vcmp.eq.f32.partialorder %v1898_v15, inf }
 0x233   :  { %v1796_v39 = vand.u32 2147483647, %v1732_v0  ;;  %v1905_v59 = vand.u32 2147483648, %v1898_v15  ;;  %vm1904_vm2 = vcmp.eq.f32.partialorder %v1898_v15, 0.0 }
 0x234   :  { %v1860_v21 = vmin.f32 %v1858_v6, %v1793_v18  ;;  %v1794_v24 = vand.u32 2147483647, %v1730_v19  ;;  %v2276_v5 = vpop.f32.mrb[44].mxu1  ;;  %v1222_v18 = vpop.xlane.xlu0 %1221 }
 0x235   :  { %v1664_v37 = vsub.f32 %v3062_v44, %v2276_v5  ;;  %v1551_v23 = vpop.f32.mrb[45].mxu1 }
 0x236   :  { %v1861_v36 = vmin.f32 %v1859_v11, %v1794_v24  ;;  %v1662_v34 = vsub.f32 %v1198_v60, %v1551_v23  ;;  %v1862_v22 = vmin.f32 %v1860_v21, %v1795_v16  ;;  %v2277_v33 = vpop.f32.mrb[46].mxu1 }
 0x237   :  { %v1665_v45 = vsub.f32 %v3065_v49, %v2277_v33  ;;  %v1554_v52 = vpop.f32.mrb[47].mxu1  ;;  %v1735_v25 = vadd.f32 %v2938_v38, %v1664_v37 }
 0x238   :  { %v1733_v27 = vadd.f32 %v2938_v38, %v1662_v34  ;;  %v1663_v48 = vsub.f32 %v1200_v42, %v1554_v52  ;;  %v1863_v47 = vmin.f32 %v1861_v36, %v1796_v39 }
 0x239   :  { %v1736_v14 = vadd.f32 %v2938_v38, %v1665_v45  ;;  %v1799_v53 = vand.u32 2147483647, %v1735_v25 }
 0x23a   :  { %v1797_v35 = vand.u32 2147483647, %v1733_v27  ;;  %v1734_v44 = vadd.f32 %v2938_v38, %v1663_v48 }
 0x23b   :  { %v1800_v7 = vand.u32 2147483647, %v1736_v14 }
 0x23c   :  { %v2608_v51 = vpop.eup %2607  ;;  %v1864_v26 = vmin.f32 %v1862_v22, %v1797_v35  ;;  %v1798_v55 = vand.u32 2147483647, %v1734_v44  ;;  %v2280_v28 = vpop.f32.mrb[48].mxu1 }
 0x23d   :  { %v1668_v49 = vsub.f32 %v1210_v9, %v2280_v28  ;;  %v1567_v58 = vpop.f32.mrb[49].mxu1  ;;  %v1901_v30 = vmul.f32 %v2608_v51, %v1898_v15  ;;  %v1216_v9 = vpop.xlane.xlu1 %1215 }
 0x23e   :  { %v1865_v60 = vmin.f32 %v1863_v47, %v1798_v55  ;;  %v1666_v61 = vsub.f32 %v1206_v32, %v1567_v58  ;;  %v1866_v62 = vmin.f32 %v1864_v26, %v1799_v53  ;;  %v2281_v1 = vpop.f32.mrb[50].mxu1  ;;  %v1226_v22 = vpop.xlane.xlu0 %1225 }
 0x23f   :  { %v1739_v42 = vadd.f32 %v2938_v38, %v1668_v49  ;;  %v1669_v63 = vsub.f32 %v1212_v17, %v2281_v1  ;;  %v1570_v41 = vpop.f32.mrb[51].mxu1  ;;  %v1903_v43 = vsel %vm1902_vm1, %v1898_v15, %v1901_v30 }
 0x240   :  { %v1737_v2 = vadd.f32 %v2938_v38, %v1666_v61  ;;  %v1667_v4 = vsub.f32 %v1208_v29, %v1570_v41  ;;  %v1867_v56 = vmin.f32 %v1865_v60, %v1800_v7  ;;  %v1906_v13 = vsel %vm1904_vm2, %v1905_v59, %v1903_v43 }
 0x241   :  { %1914 = vst [vmem:[#allocation2] sm:$0x1] %v1906_v13  ;;  %v1740_v54 = vadd.f32 %v2938_v38, %v1669_v63  ;;  %v1803_v10 = vand.u32 2147483647, %v1739_v42  ;;  %v1224_v5 = vpop.xlane.xlu1 %1223  ;;  %v1888_v13 = vld [vmem:[#allocation2 + $0x1] sm:$0x1] }
 0x242   :  { %v1801_v6 = vand.u32 2147483647, %v1737_v2  ;;  %v1738_v8 = vadd.f32 %v2938_v38, %v1667_v4 }
 0x243   :  { %v1804_v31 = vand.u32 2147483647, %v1740_v54 }
 0x244   :  { %v1868_v20 = vmin.f32 %v1866_v62, %v1801_v6  ;;  %v1802_v11 = vand.u32 2147483647, %v1738_v8 }
 0x245   :  { %v2284_v12 = vpop.f32.mrb[52].mxu1  ;;  %v1228_v48 = vpop.xlane.xlu1 %1227 }
 0x246   :  { %v1869_v3 = vmin.f32 %v1867_v56, %v1802_v11  ;;  %v1672_v46 = vsub.f32 %v1218_v50, %v2284_v12  ;;  %v1583_v15 = vpop.f32.mrb[53].mxu1  ;;  %v1870_v17 = vmin.f32 %v1868_v20, %v1803_v10 }
 0x247   :  { %v1670_v0 = vsub.f32 %v1214_v40, %v1583_v15  ;;  %v2285_v19 = vpop.f32.mrb[54].mxu1 }
 0x248   :  { %v1673_v16 = vsub.f32 %v1220_v57, %v2285_v19  ;;  %v1586_v21 = vpop.f32.mrb[55].mxu1  ;;  %v1871_v24 = vmin.f32 %v1869_v3, %v1804_v31  ;;  %v1743_v32 = vadd.f32 %v2938_v38, %v1672_v46 }
 0x249   :  { %v1741_v37 = vadd.f32 %v2938_v38, %v1670_v0  ;;  %v1671_v23 = vsub.f32 %v1216_v9, %v1586_v21 }
 0x24a   :  { %v1744_v36 = vadd.f32 %v2938_v38, %v1673_v16  ;;  %v1807_v33 = vand.u32 2147483647, %v1743_v32 }
 0x24b   :  { %v1805_v39 = vand.u32 2147483647, %v1741_v37  ;;  %v1742_v34 = vadd.f32 %v2938_v38, %v1671_v23 }
 0x24c   :  { %v1808_v47 = vand.u32 2147483647, %v1744_v36 }
 0x24d   :  { %v1872_v29 = vmin.f32 %v1870_v17, %v1805_v39  ;;  %v1806_v45 = vand.u32 2147483647, %v1742_v34  ;;  %v2288_v52 = vpop.f32.mrb[56].mxu1 }
 0x24e   :  { %v1676_v25 = vsub.f32 %v1226_v22, %v2288_v52  ;;  %v1599_v27 = vpop.f32.mrb[57].mxu1 }
 0x24f   :  { %v1873_v35 = vmin.f32 %v1871_v24, %v1806_v45  ;;  %v1674_v14 = vsub.f32 %v1222_v18, %v1599_v27  ;;  %v1874_v44 = vmin.f32 %v1872_v29, %v1807_v33  ;;  %v2289_v50 = vpop.f32.mrb[58].mxu1 }
 0x250   :  { %v1677_v51 = vsub.f32 %v1228_v48, %v2289_v50  ;;  %v1602_v53 = vpop.f32.mrb[59].mxu1  ;;  %v1747_v26 = vadd.f32 %v2938_v38, %v1676_v25 }
 0x251   :  { %v1745_v55 = vadd.f32 %v2938_v38, %v1674_v14  ;;  %v1675_v28 = vsub.f32 %v1224_v5, %v1602_v53  ;;  %v1875_v57 = vmin.f32 %v1873_v35, %v1808_v47 }
 0x252   :  { %v1748_v58 = vadd.f32 %v2938_v38, %v1677_v51  ;;  %v1811_v59 = vand.u32 2147483647, %v1747_v26 }
 0x253   :  { %v1809_v49 = vand.u32 2147483647, %v1745_v55  ;;  %v1746_v30 = vadd.f32 %v2938_v38, %v1675_v28 }
 0x254   :  { %v1812_v62 = vand.u32 2147483647, %v1748_v58 }
 0x255   :  { %v1876_v7 = vmin.f32 %v1874_v44, %v1809_v49  ;;  %v1810_v60 = vand.u32 2147483647, %v1746_v30 }
 0x257   :  { %v1878_v61 = vmin.f32 %v1876_v7, %v1811_v59  ;;  %v1877_v1 = vmin.f32 %v1875_v57, %v1810_v60 }
 0x259   :  { %v1879_v42 = vmin.f32 %v1877_v1, %v1812_v62 }
 0x25b   :  { %v1880_v63 = vmin.f32 %v1878_v61, %v1879_v42 }
 0x25d   :  { %v1881_v41 = vrot.slane %v1880_v63, 4 }
 0x25f   :  { %v1882_v43 = vmin.f32 %v1880_v63, %v1881_v41 }
 0x261   :  { %v1883_v2 = vrot.slane %v1882_v43, 2 }
 0x263   :  { %v1884_v4 = vmin.f32 %v1882_v43, %v1883_v2 }
 0x265   :  { %v1885_v56 = vrot.slane %v1884_v4, 1 }
 0x267   :  { %v1886_v40 = vmin.f32 %v1884_v4, %v1885_v56 }
 0x269   :  { %v1890_v6 = vmin.f32 %v1888_v13, %v1886_v40 }
 0x26b   :  { %1892 = vst [vmem:[#allocation2 + $0x1] sm:$0x1] %v1890_v6 }
 0x272   :  { %v1897_v54 = vld [vmem:[#allocation2 + $0x1] sm:$0x1] }
 0x273   :  { %v1899_v8 = vadd.f32 1e-14, %v1897_v54 }
 0x275   :  { %2609 = vrsqrt.f32 %v1899_v8  ;;  %vm1909_vm3 = vcmp.eq.f32.partialorder %v1899_v8, inf  ;;  %v1912_v10 = vand.u32 2147483648, %v1899_v8  ;;  %vm1911_vm4 = vcmp.eq.f32.partialorder %v1899_v8, 0.0 }
 0x27f   :  { %v2610_v38 = vpop.eup %2609 }
 0x280   :  { %v1908_v9 = vmul.f32 %v2610_v38, %v1899_v8 }
 0x282   :  { %v1910_v20 = vsel %vm1909_vm3, %v1899_v8, %v1908_v9 }
 0x283   :  { %v1913_v11 = vsel %vm1911_vm4, %v1912_v10, %v1910_v20 }
 0x284   :  { %1915 = vst [vmem:[#allocation2 + $0x1] sm:$0x1] %v1913_v11 }
 0x285   :  { %2623 = shalt.err (!%p2620_p4)
}
 0x286   :  { %s2624_s28 = scalar_lea.hbm %s3115_s5, 32 }
 0x287   :  { %p2625_p5 = scmp.ne.s32.totalorder %s3115_s5, %s2624_s28  ;;  %p2628_p6 = scmp.lt.u32.totalorder %s2624_s28, %s3115_s5 }
 0x289   :  { %p2630_p7 = pnand %p2628_p6, %p2625_p5 }
 0x28b   :  { %2633 = shalt.err (!%p2630_p7)
}
 0x28c   :  { %s2638_s8 = smov 16   ;;  %s2639_s9 = smov 1  }
 0x28d   :  { %1927 = dma.vmem_to_hbm [thread:$0]  %s1922_s25, 32, %s3115_s5, [#allocation3], %s2638_s8, %s2638_s8, %s2639_s9  }
 0x28e   :  { %2634 = dma.done.wait [#allocation3], 32  }
 0x28f   :  { %2635 = vsyncadd [#allocation3], 4294967264 }
 0x290   :  { %1931 = vsyncpa [#allocation3], 1 }

// kernel: tpu_custom_call.1
= control target key start
LH: loop header
LB: loop body
LE: loop exit
PB: predicated region body
PF: predicated region fallthrough
CT: control target
= control target key end

     0   :  { %vm267_vm0 = vcmask 130048   ;;  %s3110_s0 = inlined_call_operand.vmem [shape: bf16[2,256,16], index: 0, kind: input, shape index: {}]   ;;  %s3111_s1 = inlined_call_operand.vmem [shape: bf16[16,128], index: 1, kind: input, shape index: {}]   ;;  %s3112_s2 = inlined_call_operand.vmem [shape: f32[1,128], index: 2, kind: input, shape index: {}]   ;;  %s3113_s3 = inlined_call_operand.vmem [shape: bf16[128,128], index: 3, kind: input, shape index: {}]   ;;  %s3114_s4 = inlined_call_operand.vmem [shape: f32[1,128], index: 4, kind: input, shape index: {}]   ;;  %s3115_s5 = inlined_call_operand.hbm [shape: f32[2,1,128], index: 5, kind: output, shape index: {}]  }
   0x1   :  { %v2310_v0 = vld [vmem:[%s3111_s1] sm:$0xff]   ;;  %v2312_v2 = vld [vmem:[%s3110_s0 + $0x8] sm:$0xff]   ;;  %v2313_v3 = vld [vmem:[%s3110_s0 + $0x10] sm:$0xff]  }
   0x2   :  { %v2311_v1 = vld [vmem:[%s3110_s0] sm:$0xff]   ;;  %2144 = vmatprep.subr.bf16.mxu0 %v2310_v0  ;;  %v2314_v4 = vld [vmem:[%s3110_s0 + $0x18] sm:$0xff]   ;;  %v2316_v6 = vld [vmem:[%s3110_s0 + $0x28] sm:$0xff]  }
   0x3   :  { %2145 = vmatpush3.bf16.msra.mxu0 %v2310_v0  ;;  %2146 = vmatprep.mubr.msk.bf16.mxu0 %vm267_vm0, %v2311_v1  ;;  %v2315_v5 = vld [vmem:[%s3110_s0 + $0x20] sm:$0xff]   ;;  %v2317_v7 = vld [vmem:[%s3110_s0 + $0x30] sm:$0xff]   ;;  %v2318_v8 = vld [vmem:[%s3110_s0 + $0x38] sm:$0xff]  }
   0x4   :  { %v2319_v9 = vld [vmem:[%s3110_s0 + $0x40] sm:$0xff]   ;;  %v2320_v10 = vld [vmem:[%s3110_s0 + $0x48] sm:$0xff]   ;;  %v2321_v11 = vld [vmem:[%s3110_s0 + $0x50] sm:$0xff]  }
   0x6   :  { %2147 = vmatmul.mubr.msk.bf16.vlgmr.msra.gmra.mrb[0].mxu0 %vm267_vm0, %v2312_v2 }
   0x7   :  { %2150 = vmatprep.mubr.msk.bf16.mxu0 %vm267_vm0, %v2313_v3 }
   0xe   :  { %2151 = vmatmul.mubr.msk.bf16.gmra.mrb[4].mxu0 %vm267_vm0, %v2314_v4 }
   0xf   :  { %2154 = vmatprep.mubr.msk.bf16.mxu0 %vm267_vm0, %v2315_v5 }
  0x16   :  { %2155 = vmatmul.mubr.msk.bf16.gmra.mrb[8].mxu0 %vm267_vm0, %v2316_v6 }
  0x17   :  { %2158 = vmatprep.mubr.msk.bf16.mxu0 %vm267_vm0, %v2317_v7 }
  0x1e   :  { %2159 = vmatmul.mubr.msk.bf16.gmra.mrb[12].mxu0 %vm267_vm0, %v2318_v8 }
  0x1f   :  { %2162 = vmatprep.mubr.msk.bf16.mxu0 %vm267_vm0, %v2319_v9 }
  0x26   :  { %2163 = vmatmul.mubr.msk.bf16.gmra.mrb[16].mxu0 %vm267_vm0, %v2320_v10 }
  0x27   :  { %10 = vsyncpa [#allocation3], 0  ;;  %2166 = vmatprep.mubr.msk.bf16.mxu0 %vm267_vm0, %v2321_v11  ;;  %v2322_v12 = vld [vmem:[%s3110_s0 + $0x58] sm:$0xff]   ;;  %v2323_v13 = vld [vmem:[%s3110_s0 + $0x60] sm:$0xff]  }
  0x28   :  { %v2324_v14 = vld [vmem:[%s3110_s0 + $0x68] sm:$0xff]   ;;  %v2325_v15 = vld [vmem:[%s3110_s0 + $0x70] sm:$0xff]   ;;  %v2326_v16 = vld [vmem:[%s3110_s0 + $0x78] sm:$0xff]  }
  0x29   :  { %v2327_v17 = vld [vmem:[%s3110_s0 + $0x80] sm:$0xff]   ;;  %v2328_v18 = vld [vmem:[%s3110_s0 + $0x88] sm:$0xff]   ;;  %v2329_v19 = vld [vmem:[%s3110_s0 + $0x90] sm:$0xff]  }
  0x2a   :  { %v2330_v20 = vld [vmem:[%s3110_s0 + $0x98] sm:$0xff]   ;;  %v2331_v21 = vld [vmem:[%s3110_s0 + $0xa0] sm:$0xff]   ;;  %v2332_v22 = vld [vmem:[%s3110_s0 + $0xa8] sm:$0xff]  }
  0x2b   :  { %v2333_v23 = vld [vmem:[%s3110_s0 + $0xb0] sm:$0xff]   ;;  %v2334_v24 = vld [vmem:[%s3110_s0 + $0xb8] sm:$0xff]   ;;  %v2343_v25 = vld [vmem:[%s3113_s3] sm:$0xff]  }
  0x2c   :  { %v2335_v26 = vld [vmem:[%s3110_s0 + $0xc0] sm:$0xff]   ;;  %2210 = vmatprep.subr.bf16.mxu0 %v2343_v25  ;;  %2290 = vmatprep.subr.bf16.mxu1 %v2343_v25  ;;  %v2344_v27 = vld [vmem:[%s3113_s3 + $0x8] sm:$0xff]   ;;  %v2345_v29 = vld [vmem:[%s3113_s3 + $0x10] sm:$0xff]  }
  0x2d   :  { %2211 = vmatpush3.bf16.msra.mxu0 %v2343_v25  ;;  %2298 = vmatpush3.bf16.msra.mxu1 %v2343_v25  ;;  %v2336_v28 = vld [vmem:[%s3110_s0 + $0xc8] sm:$0xff]   ;;  %v2337_v30 = vld [vmem:[%s3110_s0 + $0xd0] sm:$0xff]   ;;  %v2346_v31 = vld [vmem:[%s3113_s3 + $0x18] sm:$0xff]  }
  0x2e   :  { %2167 = vmatmul.mubr.msk.bf16.gmra.mrb[20].mxu0 %vm267_vm0, %v2322_v12  ;;  %2212 = vmatprep.subr.bf16.mxu0 %v2344_v27  ;;  %v2338_v32 = vld [vmem:[%s3110_s0 + $0xd8] sm:$0xff]   ;;  %v2339_v33 = vld [vmem:[%s3110_s0 + $0xe0] sm:$0xff]   ;;  %v2348_v35 = vld [vmem:[%s3113_s3 + $0x28] sm:$0xff]  }
  0x2f   :  { %2170 = vmatprep.mubr.msk.bf16.mxu0 %vm267_vm0, %v2323_v13  ;;  %2291 = vmatprep.subr.bf16.mxu1 %v2344_v27  ;;  %v2347_v34 = vld [vmem:[%s3113_s3 + $0x20] sm:$0xff]   ;;  %v2340_v36 = vld [vmem:[%s3110_s0 + $0xe8] sm:$0xff]   ;;  %v2341_v37 = vld [vmem:[%s3110_s0 + $0xf0] sm:$0xff]  }
  0x30   :  { %v2349_v38 = vld [vmem:[%s3113_s3 + $0x30] sm:$0xff]   ;;  %v2350_v39 = vld [vmem:[%s3113_s3 + $0x38] sm:$0xff]   ;;  %v2828_v41 = vld [vmem:[%s3112_s2] ss:$0 sm:$0xff] }
  0x31   :  { %2213 = vmatpush3.bf16.msra.mxu0 %v2344_v27  ;;  %2299 = vmatpush3.bf16.msra.mxu1 %v2344_v27  ;;  %v2342_v40 = vld [vmem:[%s3110_s0 + $0xf8] sm:$0xff]  }
  0x32   :  { %2214 = vmatprep.subr.bf16.mxu0 %v2345_v29  ;;  %2292 = vmatprep.subr.bf16.mxu1 %v2345_v29 }
  0x35   :  { %2215 = vmatpush3.bf16.msra.mxu0 %v2345_v29  ;;  %2300 = vmatpush3.bf16.msra.mxu1 %v2345_v29 }
  0x36   :  { %2171 = vmatmul.mubr.msk.bf16.gmra.mrb[24].mxu0 %vm267_vm0, %v2324_v14  ;;  %2216 = vmatprep.subr.bf16.mxu0 %v2346_v31 }
  0x37   :  { %2174 = vmatprep.mubr.msk.bf16.mxu0 %vm267_vm0, %v2325_v15  ;;  %2293 = vmatprep.subr.bf16.mxu1 %v2346_v31 }
  0x39   :  { %2217 = vmatpush3.bf16.msra.mxu0 %v2346_v31  ;;  %2301 = vmatpush3.bf16.msra.mxu1 %v2346_v31 }
  0x3a   :  { %2218 = vmatprep.subr.bf16.mxu0 %v2347_v34  ;;  %2294 = vmatprep.subr.bf16.mxu1 %v2347_v34 }
  0x3d   :  { %2302 = vmatpush3.bf16.msra.mxu1 %v2347_v34  ;;  %2219 = vmatpush3.bf16.msra.mxu0 %v2347_v34 }
  0x3e   :  { %2175 = vmatmul.mubr.msk.bf16.gmra.mrb[28].mxu0 %vm267_vm0, %v2326_v16  ;;  %2220 = vmatprep.subr.bf16.mxu0 %v2348_v35 }
  0x3f   :  { %2178 = vmatprep.mubr.msk.bf16.mxu0 %vm267_vm0, %v2327_v17  ;;  %2295 = vmatprep.subr.bf16.mxu1 %v2348_v35 }
  0x41   :  { %2303 = vmatpush3.bf16.msra.mxu1 %v2348_v35  ;;  %2221 = vmatpush3.bf16.msra.mxu0 %v2348_v35 }
  0x42   :  { %2222 = vmatprep.subr.bf16.mxu0 %v2349_v38  ;;  %2296 = vmatprep.subr.bf16.mxu1 %v2349_v38 }
  0x45   :  { %2304 = vmatpush3.bf16.msra.mxu1 %v2349_v38  ;;  %2223 = vmatpush3.bf16.msra.mxu0 %v2349_v38 }
  0x46   :  { %2179 = vmatmul.mubr.msk.bf16.gmra.mrb[32].mxu0 %vm267_vm0, %v2328_v18  ;;  %2224 = vmatprep.subr.bf16.mxu0 %v2350_v39 }
  0x47   :  { %2182 = vmatprep.mubr.msk.bf16.mxu0 %vm267_vm0, %v2329_v19  ;;  %2297 = vmatprep.subr.bf16.mxu1 %v2350_v39 }
  0x49   :  { %2305 = vmatpush3.bf16.msra.mxu1 %v2350_v39  ;;  %2225 = vmatpush3.bf16.msra.mxu0 %v2350_v39 }
  0x4e   :  { %2183 = vmatmul.mubr.msk.bf16.gmra.mrb[36].mxu0 %vm267_vm0, %v2330_v20 }
  0x4f   :  { %2186 = vmatprep.mubr.msk.bf16.mxu0 %vm267_vm0, %v2331_v21 }
  0x56   :  { %2187 = vmatmul.mubr.msk.bf16.gmra.mrb[40].mxu0 %vm267_vm0, %v2332_v22 }
  0x57   :  { %2190 = vmatprep.mubr.msk.bf16.mxu0 %vm267_vm0, %v2333_v23 }
  0x5e   :  { %2191 = vmatmul.mubr.msk.bf16.gmra.mrb[44].mxu0 %vm267_vm0, %v2334_v24 }
  0x5f   :  { %2194 = vmatprep.mubr.msk.bf16.mxu0 %vm267_vm0, %v2335_v26 }
  0x66   :  { %2195 = vmatmul.mubr.msk.bf16.gmra.mrb[48].mxu0 %vm267_vm0, %v2336_v28 }
  0x67   :  { %2198 = vmatprep.mubr.msk.bf16.mxu0 %vm267_vm0, %v2337_v30 }
  0x6e   :  { %2199 = vmatmul.mubr.msk.bf16.gmra.mrb[52].mxu0 %vm267_vm0, %v2338_v32 }
  0x6f   :  { %2202 = vmatprep.mubr.msk.bf16.mxu0 %vm267_vm0, %v2339_v33 }
  0x76   :  { %2203 = vmatmul.mubr.msk.bf16.gmra.mrb[56].mxu0 %vm267_vm0, %v2340_v36 }
  0x77   :  { %2206 = vmatprep.mubr.msk.bf16.mxu0 %vm267_vm0, %v2341_v37 }
  0x7e   :  { %2207 = vmatmul.mubr.msk.bf16.gmra.mrb[60].mxu0 %vm267_vm0, %v2342_v40 }
  0xd9   :  { %v2148_v42 = vpop.f32.mrb[0].mxu0 }
  0xda   :  { %v407_v43 = vadd.f32 %v2148_v42, %v2828_v41  ;;  %v398_v44 = vpop.f32.mrb[1].mxu0 }
  0xdb   :  { %v399_v45 = vadd.f32 %v2828_v41, %v398_v44  ;;  %v2149_v46 = vpop.f32.mrb[2].mxu0 }
  0xdc   :  { %v2000_v47 = vmul.f32 -1.442695, %v407_v43  ;;  %v410_v48 = vadd.f32 %v2149_v46, %v2828_v41  ;;  %v401_v49 = vpop.f32.mrb[3].mxu0 }
  0xdd   :  { %v1998_v50 = vmul.f32 -1.442695, %v399_v45  ;;  %v402_v51 = vadd.f32 %v2828_v41, %v401_v49 }
  0xde   :  { %2351 = vpow2.f32 %v2000_v47  ;;  %v2001_v52 = vmul.f32 -1.442695, %v410_v48 }
  0xdf   :  { %2353 = vpow2.f32 %v1998_v50  ;;  %v1999_v53 = vmul.f32 -1.442695, %v402_v51 }
  0xe0   :  { %2355 = vpow2.f32 %v2001_v52 }
  0xe1   :  { %2357 = vpow2.f32 %v1999_v53  ;;  %v2152_v54 = vpop.f32.mrb[4].mxu0 }
  0xe2   :  { %v423_v55 = vadd.f32 %v2152_v54, %v2828_v41  ;;  %v414_v56 = vpop.f32.mrb[5].mxu0 }
  0xe3   :  { %v415_v57 = vadd.f32 %v2828_v41, %v414_v56  ;;  %v2153_v58 = vpop.f32.mrb[6].mxu0 }
  0xe4   :  { %v2004_v59 = vmul.f32 -1.442695, %v423_v55  ;;  %v426_v60 = vadd.f32 %v2153_v58, %v2828_v41  ;;  %v417_v61 = vpop.f32.mrb[7].mxu0 }
  0xe5   :  { %v2002_v62 = vmul.f32 -1.442695, %v415_v57  ;;  %v418_v63 = vadd.f32 %v2828_v41, %v417_v61 }
  0xe6   :  { %2359 = vpow2.f32 %v2004_v59  ;;  %v2005_v0 = vmul.f32 -1.442695, %v426_v60 }
  0xe7   :  { %2361 = vpow2.f32 %v2002_v62  ;;  %v2003_v1 = vmul.f32 -1.442695, %v418_v63 }
  0xe8   :  { %v2352_v2 = vpop.eup %2351  ;;  %2363 = vpow2.f32 %v2005_v0 }
  0xe9   :  { %v2354_v3 = vpop.eup %2353  ;;  %v847_v4 = vadd.f32 1.0, %v2352_v2  ;;  %2365 = vpow2.f32 %v2003_v1  ;;  %v2156_v5 = vpop.f32.mrb[8].mxu0 }
  0xea   :  { %v2356_v6 = vpop.eup %2355  ;;  %v845_v7 = vadd.f32 1.0, %v2354_v3  ;;  %v439_v8 = vadd.f32 %v2156_v5, %v2828_v41  ;;  %v430_v9 = vpop.f32.mrb[9].mxu0 }
  0xeb   :  { %v2358_v10 = vpop.eup %2357  ;;  %2367 = vrcp.f32 %v847_v4  ;;  %v848_v11 = vadd.f32 1.0, %v2356_v6  ;;  %v431_v12 = vadd.f32 %v2828_v41, %v430_v9  ;;  %v2157_v13 = vpop.f32.mrb[10].mxu0 }
  0xec   :  { %2369 = vrcp.f32 %v845_v7  ;;  %v846_v14 = vadd.f32 1.0, %v2358_v10  ;;  %v2008_v15 = vmul.f32 -1.442695, %v439_v8  ;;  %v442_v16 = vadd.f32 %v2157_v13, %v2828_v41  ;;  %v433_v17 = vpop.f32.mrb[11].mxu0 }
  0xed   :  { %2371 = vrcp.f32 %v848_v11  ;;  %v2006_v18 = vmul.f32 -1.442695, %v431_v12  ;;  %v434_v19 = vadd.f32 %v2828_v41, %v433_v17 }
  0xee   :  { %2373 = vrcp.f32 %v846_v14  ;;  %v2009_v20 = vmul.f32 -1.442695, %v442_v16 }
  0xef   :  { %2375 = vpow2.f32 %v2008_v15  ;;  %v2007_v21 = vmul.f32 -1.442695, %v434_v19 }
  0xf0   :  { %v2360_v22 = vpop.eup %2359  ;;  %2377 = vpow2.f32 %v2006_v18 }
  0xf1   :  { %v2362_v23 = vpop.eup %2361  ;;  %v851_v24 = vadd.f32 1.0, %v2360_v22  ;;  %2379 = vpow2.f32 %v2009_v20  ;;  %v2160_v25 = vpop.f32.mrb[12].mxu0 }
  0xf2   :  { %v2364_v26 = vpop.eup %2363  ;;  %v849_v27 = vadd.f32 1.0, %v2362_v23  ;;  %2381 = vpow2.f32 %v2007_v21  ;;  %v455_v28 = vadd.f32 %v2160_v25, %v2828_v41  ;;  %v446_v29 = vpop.f32.mrb[13].mxu0 }
  0xf3   :  { %v2366_v30 = vpop.eup %2365  ;;  %2383 = vrcp.f32 %v851_v24  ;;  %v852_v31 = vadd.f32 1.0, %v2364_v26  ;;  %v447_v32 = vadd.f32 %v2828_v41, %v446_v29  ;;  %v2161_v33 = vpop.f32.mrb[14].mxu0 }
  0xf4   :  { %2385 = vrcp.f32 %v849_v27  ;;  %v850_v34 = vadd.f32 1.0, %v2366_v30  ;;  %v2012_v35 = vmul.f32 -1.442695, %v455_v28  ;;  %v458_v36 = vadd.f32 %v2161_v33, %v2828_v41  ;;  %v449_v37 = vpop.f32.mrb[15].mxu0 }
  0xf5   :  { %v2368_v38 = vpop.eup %2367  ;;  %2387 = vrcp.f32 %v852_v31  ;;  %v2010_v39 = vmul.f32 -1.442695, %v447_v32  ;;  %v450_v40 = vadd.f32 %v2828_v41, %v449_v37 }
  0xf6   :  { %v2370_v42 = vpop.eup %2369  ;;  %2389 = vrcp.f32 %v850_v34  ;;  %v2013_v43 = vmul.f32 -1.442695, %v458_v36  ;;  %v1039_v44 = vmul.f32 %v2368_v38, %v2368_v38 }
  0xf7   :  { %v2372_v45 = vpop.eup %2371  ;;  %2391 = vpow2.f32 %v2012_v35  ;;  %v2011_v46 = vmul.f32 -1.442695, %v450_v40  ;;  %v1037_v47 = vmul.f32 %v2370_v42, %v2370_v42 }
  0xf8   :  { %v2374_v48 = vpop.eup %2373  ;;  %2393 = vpow2.f32 %v2010_v39  ;;  %1105 = vadd.xlane.f32.xlu1 %v1039_v44  ;;  %v1230_v49 = vpack.c.bf16 %v2372_v45, %v2368_v38  ;;  %v1040_v57 = vmul.f32 %v2372_v45, %v2372_v45 }
  0xf9   :  { %v2376_v50 = vpop.eup %2375  ;;  %2395 = vpow2.f32 %v2013_v43  ;;  %v2164_v51 = vpop.f32.mrb[16].mxu0  ;;  %1101 = vadd.xlane.f32.xlu0 %v1037_v47  ;;  %v1229_v52 = vpack.c.bf16 %v2374_v48, %v2370_v42  ;;  %v1038_v62 = vmul.f32 %v2374_v48, %v2374_v48 }
  0xfa   :  { %v2378_v53 = vpop.eup %2377  ;;  %v855_v54 = vadd.f32 1.0, %v2376_v50  ;;  %2397 = vpow2.f32 %v2011_v46  ;;  %v471_v55 = vadd.f32 %v2164_v51, %v2828_v41  ;;  %v462_v56 = vpop.f32.mrb[17].mxu0 }
  0xfb   :  { %v2380_v58 = vpop.eup %2379  ;;  %v853_v59 = vadd.f32 1.0, %v2378_v53  ;;  %v463_v60 = vadd.f32 %v2828_v41, %v462_v56  ;;  %v2165_v61 = vpop.f32.mrb[18].mxu0  ;;  %2226 = vmatprep.mubr.bf16.mxu0 %v1229_v52 }
  0xfc   :  { %v2382_v63 = vpop.eup %2381  ;;  %2399 = vrcp.f32 %v855_v54  ;;  %v856_v0 = vadd.f32 1.0, %v2380_v58  ;;  %v2016_v1 = vmul.f32 -1.442695, %v471_v55  ;;  %v474_v2 = vadd.f32 %v2165_v61, %v2828_v41  ;;  %1107 = vadd.xlane.f32.xlu1 %v1040_v57  ;;  %v465_v3 = vpop.f32.mrb[19].mxu0  ;;  %2227 = vmatmul.mubr.bf16.vlgmr.msra.gmra.mrb[64].mxu0 %v1230_v49 }
  0xfd   :  { %v2384_v4 = vpop.eup %2383  ;;  %2401 = vrcp.f32 %v853_v59  ;;  %v854_v5 = vadd.f32 1.0, %v2382_v63  ;;  %v2014_v6 = vmul.f32 -1.442695, %v463_v60  ;;  %v466_v7 = vadd.f32 %v2828_v41, %v465_v3  ;;  %1103 = vadd.xlane.f32.xlu0 %v1038_v62 }
  0xfe   :  { %v2386_v8 = vpop.eup %2385  ;;  %2403 = vrcp.f32 %v856_v0  ;;  %v2017_v9 = vmul.f32 -1.442695, %v474_v2  ;;  %v1043_v10 = vmul.f32 %v2384_v4, %v2384_v4 }
  0xff   :  { %v2388_v11 = vpop.eup %2387  ;;  %2405 = vrcp.f32 %v854_v5  ;;  %v2015_v12 = vmul.f32 -1.442695, %v466_v7  ;;  %v1041_v23 = vmul.f32 %v2386_v8, %v2386_v8 }
 0x100   :  { %v2390_v13 = vpop.eup %2389  ;;  %2407 = vpow2.f32 %v2016_v1  ;;  %v1044_v14 = vmul.f32 %v2388_v11, %v2388_v11  ;;  %v1232_v15 = vpack.c.bf16 %v2388_v11, %v2384_v4 }
 0x101   :  { %v2392_v16 = vpop.eup %2391  ;;  %2409 = vpow2.f32 %v2014_v6  ;;  %v2168_v17 = vpop.f32.mrb[20].mxu0  ;;  %1113 = vadd.xlane.f32.xlu0 %v1043_v10  ;;  %v1231_v18 = vpack.c.bf16 %v2390_v13, %v2386_v8  ;;  %v1042_v28 = vmul.f32 %v2390_v13, %v2390_v13 }
 0x102   :  { %v2394_v19 = vpop.eup %2393  ;;  %v859_v20 = vadd.f32 1.0, %v2392_v16  ;;  %2411 = vpow2.f32 %v2017_v9  ;;  %v487_v21 = vadd.f32 %v2168_v17, %v2828_v41  ;;  %1115 = vadd.xlane.f32.xlu1 %v1044_v14  ;;  %v478_v22 = vpop.f32.mrb[21].mxu0 }
 0x103   :  { %v2396_v24 = vpop.eup %2395  ;;  %v857_v25 = vadd.f32 1.0, %v2394_v19  ;;  %2413 = vpow2.f32 %v2015_v12  ;;  %v479_v26 = vadd.f32 %v2828_v41, %v478_v22  ;;  %v2169_v27 = vpop.f32.mrb[22].mxu0  ;;  %2230 = vmatprep.mubr.bf16.mxu1 %v1231_v18 }
 0x104   :  { %v2398_v29 = vpop.eup %2397  ;;  %2415 = vrcp.f32 %v859_v20  ;;  %v860_v30 = vadd.f32 1.0, %v2396_v24  ;;  %v2020_v31 = vmul.f32 -1.442695, %v487_v21  ;;  %v490_v32 = vadd.f32 %v2169_v27, %v2828_v41  ;;  %v481_v33 = vpop.f32.mrb[23].mxu0  ;;  %2231 = vmatmul.mubr.bf16.vlgmr.msra.gmra.mrb[0].mxu1 %v1232_v15 }
 0x105   :  { %2417 = vrcp.f32 %v857_v25  ;;  %v858_v34 = vadd.f32 1.0, %v2398_v29  ;;  %v2018_v35 = vmul.f32 -1.442695, %v479_v26  ;;  %v482_v36 = vadd.f32 %v2828_v41, %v481_v33  ;;  %1109 = vadd.xlane.f32.xlu0 %v1041_v23 }
 0x106   :  { %v2400_v37 = vpop.eup %2399  ;;  %2419 = vrcp.f32 %v860_v30  ;;  %v2021_v38 = vmul.f32 -1.442695, %v490_v32  ;;  %1111 = vadd.xlane.f32.xlu1 %v1042_v28 }
 0x107   :  { %v2402_v39 = vpop.eup %2401  ;;  %2421 = vrcp.f32 %v858_v34  ;;  %v2019_v40 = vmul.f32 -1.442695, %v482_v36  ;;  %v1047_v42 = vmul.f32 %v2400_v37, %v2400_v37 }
 0x108   :  { %v2404_v43 = vpop.eup %2403  ;;  %2423 = vpow2.f32 %v2020_v31  ;;  %v1045_v56 = vmul.f32 %v2402_v39, %v2402_v39 }
 0x109   :  { %v2406_v44 = vpop.eup %2405  ;;  %2425 = vpow2.f32 %v2018_v35  ;;  %v2172_v45 = vpop.f32.mrb[24].mxu0  ;;  %1121 = vadd.xlane.f32.xlu0 %v1047_v42  ;;  %v1048_v46 = vmul.f32 %v2404_v43, %v2404_v43  ;;  %v1234_v47 = vpack.c.bf16 %v2404_v43, %v2400_v37 }
 0x10a   :  { %v2408_v48 = vpop.eup %2407  ;;  %2427 = vpow2.f32 %v2021_v38  ;;  %v503_v49 = vadd.f32 %v2172_v45, %v2828_v41  ;;  %v494_v50 = vpop.f32.mrb[25].mxu0  ;;  %v1233_v51 = vpack.c.bf16 %v2406_v44, %v2402_v39  ;;  %v1046_v61 = vmul.f32 %v2406_v44, %v2406_v44 }
 0x10b   :  { %v2410_v52 = vpop.eup %2409  ;;  %v863_v53 = vadd.f32 1.0, %v2408_v48  ;;  %2429 = vpow2.f32 %v2019_v40  ;;  %v495_v54 = vadd.f32 %v2828_v41, %v494_v50  ;;  %1123 = vadd.xlane.f32.xlu1 %v1048_v46  ;;  %v2173_v55 = vpop.f32.mrb[26].mxu0 }
 0x10c   :  { %v2412_v57 = vpop.eup %2411  ;;  %v861_v58 = vadd.f32 1.0, %v2410_v52  ;;  %v506_v59 = vadd.f32 %v2173_v55, %v2828_v41  ;;  %2234 = vmatprep.mubr.bf16.mxu1 %v1233_v51  ;;  %v497_v60 = vpop.f32.mrb[27].mxu0  ;;  %v2024_v0 = vmul.f32 -1.442695, %v503_v49 }
 0x10d   :  { %v2414_v62 = vpop.eup %2413  ;;  %2431 = vrcp.f32 %v863_v53  ;;  %v864_v63 = vadd.f32 1.0, %v2412_v57  ;;  %v498_v1 = vadd.f32 %v2828_v41, %v497_v60  ;;  %2235 = vmatmul.mubr.bf16.gmra.mrb[4].mxu1 %v1234_v47  ;;  %1117 = vadd.xlane.f32.xlu0 %v1045_v56  ;;  %v2022_v4 = vmul.f32 -1.442695, %v495_v54 }
 0x10e   :  { %v2416_v2 = vpop.eup %2415  ;;  %2433 = vrcp.f32 %v861_v58  ;;  %v862_v3 = vadd.f32 1.0, %v2414_v62  ;;  %v2025_v6 = vmul.f32 -1.442695, %v506_v59 }
 0x10f   :  { %v2418_v5 = vpop.eup %2417  ;;  %2435 = vrcp.f32 %v864_v63  ;;  %1119 = vadd.xlane.f32.xlu1 %v1046_v61  ;;  %v1051_v7 = vmul.f32 %v2416_v2, %v2416_v2  ;;  %v2023_v9 = vmul.f32 -1.442695, %v498_v1 }
 0x110   :  { %v2420_v8 = vpop.eup %2419  ;;  %2437 = vrcp.f32 %v862_v3  ;;  %v1049_v22 = vmul.f32 %v2418_v5, %v2418_v5 }
 0x111   :  { %v2422_v10 = vpop.eup %2421  ;;  %2439 = vpow2.f32 %v2024_v0  ;;  %v2176_v11 = vpop.f32.mrb[28].mxu0  ;;  %1129 = vadd.xlane.f32.xlu0 %v1051_v7  ;;  %v1052_v12 = vmul.f32 %v2420_v8, %v2420_v8  ;;  %v1236_v13 = vpack.c.bf16 %v2420_v8, %v2416_v2 }
 0x112   :  { %v2424_v14 = vpop.eup %2423  ;;  %2441 = vpow2.f32 %v2022_v4  ;;  %v519_v15 = vadd.f32 %v2176_v11, %v2828_v41  ;;  %v510_v16 = vpop.f32.mrb[29].mxu0  ;;  %v1235_v17 = vpack.c.bf16 %v2422_v10, %v2418_v5  ;;  %v1050_v27 = vmul.f32 %v2422_v10, %v2422_v10 }
 0x113   :  { %v2426_v18 = vpop.eup %2425  ;;  %v867_v19 = vadd.f32 1.0, %v2424_v14  ;;  %2443 = vpow2.f32 %v2025_v6  ;;  %v511_v20 = vadd.f32 %v2828_v41, %v510_v16  ;;  %1131 = vadd.xlane.f32.xlu1 %v1052_v12  ;;  %v2177_v21 = vpop.f32.mrb[30].mxu0 }
 0x114   :  { %v2428_v23 = vpop.eup %2427  ;;  %v865_v24 = vadd.f32 1.0, %v2426_v18  ;;  %2445 = vpow2.f32 %v2023_v9  ;;  %v522_v25 = vadd.f32 %v2177_v21, %v2828_v41  ;;  %2238 = vmatprep.mubr.bf16.mxu1 %v1235_v17  ;;  %v513_v26 = vpop.f32.mrb[31].mxu0  ;;  %v2028_v30 = vmul.f32 -1.442695, %v519_v15 }
 0x115   :  { %v2430_v28 = vpop.eup %2429  ;;  %2447 = vrcp.f32 %v867_v19  ;;  %v868_v29 = vadd.f32 1.0, %v2428_v23  ;;  %v514_v31 = vadd.f32 %v2828_v41, %v513_v26  ;;  %2239 = vmatmul.mubr.bf16.gmra.mrb[8].mxu1 %v1236_v13  ;;  %1125 = vadd.xlane.f32.xlu0 %v1049_v22  ;;  %v2026_v33 = vmul.f32 -1.442695, %v511_v20 }
 0x116   :  { %2449 = vrcp.f32 %v865_v24  ;;  %v866_v32 = vadd.f32 1.0, %v2430_v28  ;;  %v2029_v35 = vmul.f32 -1.442695, %v522_v25 }
 0x117   :  { %v2432_v34 = vpop.eup %2431  ;;  %2451 = vrcp.f32 %v868_v29  ;;  %1127 = vadd.xlane.f32.xlu1 %v1050_v27  ;;  %v2027_v37 = vmul.f32 -1.442695, %v514_v31 }
 0x118   :  { %v2434_v36 = vpop.eup %2433  ;;  %2453 = vrcp.f32 %v866_v32  ;;  %v1055_v38 = vmul.f32 %v2432_v34, %v2432_v34 }
 0x119   :  { %v2436_v39 = vpop.eup %2435  ;;  %2455 = vpow2.f32 %v2028_v30  ;;  %v2180_v40 = vpop.f32.mrb[32].mxu0  ;;  %v1053_v55 = vmul.f32 %v2434_v36, %v2434_v36 }
 0x11a   :  { %v2438_v42 = vpop.eup %2437  ;;  %2457 = vpow2.f32 %v2026_v33  ;;  %v535_v43 = vadd.f32 %v2180_v40, %v2828_v41  ;;  %1137 = vadd.xlane.f32.xlu0 %v1055_v38  ;;  %v526_v44 = vpop.f32.mrb[33].mxu0  ;;  %v1056_v45 = vmul.f32 %v2436_v39, %v2436_v39  ;;  %v1238_v46 = vpack.c.bf16 %v2436_v39, %v2432_v34 }
 0x11b   :  { %v2440_v47 = vpop.eup %2439  ;;  %2459 = vpow2.f32 %v2029_v35  ;;  %v527_v48 = vadd.f32 %v2828_v41, %v526_v44  ;;  %v2181_v49 = vpop.f32.mrb[34].mxu0  ;;  %v1237_v50 = vpack.c.bf16 %v2438_v42, %v2434_v36  ;;  %v1054_v62 = vmul.f32 %v2438_v42, %v2438_v42 }
 0x11c   :  { %v2442_v51 = vpop.eup %2441  ;;  %v871_v52 = vadd.f32 1.0, %v2440_v47  ;;  %2461 = vpow2.f32 %v2027_v37  ;;  %1139 = vadd.xlane.f32.xlu1 %v1056_v45  ;;  %v538_v53 = vadd.f32 %v2181_v49, %v2828_v41  ;;  %v529_v54 = vpop.f32.mrb[35].mxu0  ;;  %v2032_v61 = vmul.f32 -1.442695, %v535_v43 }
 0x11d   :  { %v2444_v56 = vpop.eup %2443  ;;  %v869_v57 = vadd.f32 1.0, %v2442_v51  ;;  %2242 = vmatprep.mubr.bf16.mxu1 %v1237_v50  ;;  %v530_v58 = vadd.f32 %v2828_v41, %v529_v54  ;;  %v2030_v1 = vmul.f32 -1.442695, %v527_v48 }
 0x11e   :  { %v2446_v59 = vpop.eup %2445  ;;  %2463 = vrcp.f32 %v871_v52  ;;  %v872_v60 = vadd.f32 1.0, %v2444_v56  ;;  %2243 = vmatmul.mubr.bf16.gmra.mrb[12].mxu1 %v1238_v46  ;;  %1133 = vadd.xlane.f32.xlu0 %v1053_v55  ;;  %v2033_v3 = vmul.f32 -1.442695, %v538_v53 }
 0x11f   :  { %v2448_v63 = vpop.eup %2447  ;;  %2465 = vrcp.f32 %v869_v57  ;;  %v870_v0 = vadd.f32 1.0, %v2446_v59  ;;  %v2031_v6 = vmul.f32 -1.442695, %v530_v58 }
 0x120   :  { %v2450_v2 = vpop.eup %2449  ;;  %2467 = vrcp.f32 %v872_v60  ;;  %1135 = vadd.xlane.f32.xlu1 %v1054_v62  ;;  %v1059_v4 = vmul.f32 %v2448_v63, %v2448_v63 }
 0x121   :  { %v2452_v5 = vpop.eup %2451  ;;  %2469 = vrcp.f32 %v870_v0  ;;  %v2184_v7 = vpop.f32.mrb[36].mxu0  ;;  %v1057_v21 = vmul.f32 %v2450_v2, %v2450_v2 }
 0x122   :  { %v2454_v8 = vpop.eup %2453  ;;  %2471 = vpow2.f32 %v2032_v61  ;;  %v551_v9 = vadd.f32 %v2184_v7, %v2828_v41  ;;  %1145 = vadd.xlane.f32.xlu0 %v1059_v4  ;;  %v542_v10 = vpop.f32.mrb[37].mxu0  ;;  %v1060_v11 = vmul.f32 %v2452_v5, %v2452_v5  ;;  %v1240_v12 = vpack.c.bf16 %v2452_v5, %v2448_v63 }
 0x123   :  { %v2456_v13 = vpop.eup %2455  ;;  %2473 = vpow2.f32 %v2030_v1  ;;  %v543_v14 = vadd.f32 %v2828_v41, %v542_v10  ;;  %v2185_v15 = vpop.f32.mrb[38].mxu0  ;;  %v1239_v16 = vpack.c.bf16 %v2454_v8, %v2450_v2  ;;  %v1058_v28 = vmul.f32 %v2454_v8, %v2454_v8 }
 0x124   :  { %v2458_v17 = vpop.eup %2457  ;;  %v875_v18 = vadd.f32 1.0, %v2456_v13  ;;  %2475 = vpow2.f32 %v2033_v3  ;;  %1147 = vadd.xlane.f32.xlu1 %v1060_v11  ;;  %v554_v19 = vadd.f32 %v2185_v15, %v2828_v41  ;;  %v545_v20 = vpop.f32.mrb[39].mxu0  ;;  %v2036_v27 = vmul.f32 -1.442695, %v551_v9 }
 0x125   :  { %v2460_v22 = vpop.eup %2459  ;;  %v873_v23 = vadd.f32 1.0, %v2458_v17  ;;  %2477 = vpow2.f32 %v2031_v6  ;;  %2246 = vmatprep.mubr.bf16.mxu1 %v1239_v16  ;;  %v546_v24 = vadd.f32 %v2828_v41, %v545_v20  ;;  %v2034_v30 = vmul.f32 -1.442695, %v543_v14 }
 0x126   :  { %v2462_v25 = vpop.eup %2461  ;;  %2479 = vrcp.f32 %v875_v18  ;;  %v876_v26 = vadd.f32 1.0, %v2460_v22  ;;  %2247 = vmatmul.mubr.bf16.gmra.mrb[16].mxu1 %v1240_v12  ;;  %1141 = vadd.xlane.f32.xlu0 %v1057_v21  ;;  %v2037_v32 = vmul.f32 -1.442695, %v554_v19 }
 0x127   :  { %2481 = vrcp.f32 %v873_v23  ;;  %v874_v29 = vadd.f32 1.0, %v2462_v25  ;;  %v2035_v34 = vmul.f32 -1.442695, %v546_v24 }
 0x128   :  { %v2464_v31 = vpop.eup %2463  ;;  %2483 = vrcp.f32 %v876_v26  ;;  %1143 = vadd.xlane.f32.xlu1 %v1058_v28 }
 0x129   :  { %v2466_v33 = vpop.eup %2465  ;;  %2485 = vrcp.f32 %v874_v29  ;;  %v2188_v35 = vpop.f32.mrb[40].mxu0  ;;  %v1063_v36 = vmul.f32 %v2464_v31, %v2464_v31 }
 0x12a   :  { %v2468_v37 = vpop.eup %2467  ;;  %2487 = vpow2.f32 %v2036_v27  ;;  %v567_v38 = vadd.f32 %v2188_v35, %v2828_v41  ;;  %v558_v39 = vpop.f32.mrb[41].mxu0  ;;  %v1061_v54 = vmul.f32 %v2466_v33, %v2466_v33 }
 0x12b   :  { %v2470_v40 = vpop.eup %2469  ;;  %2489 = vpow2.f32 %v2034_v30  ;;  %1153 = vadd.xlane.f32.xlu0 %v1063_v36  ;;  %v559_v42 = vadd.f32 %v2828_v41, %v558_v39  ;;  %v1064_v43 = vmul.f32 %v2468_v37, %v2468_v37  ;;  %v2189_v44 = vpop.f32.mrb[42].mxu0  ;;  %v1242_v45 = vpack.c.bf16 %v2468_v37, %v2464_v31 }
 0x12c   :  { %v2472_v46 = vpop.eup %2471  ;;  %2491 = vpow2.f32 %v2037_v32  ;;  %v2040_v47 = vmul.f32 -1.442695, %v567_v38  ;;  %v570_v48 = vadd.f32 %v2189_v44, %v2828_v41  ;;  %v1241_v49 = vpack.c.bf16 %v2470_v40, %v2466_v33  ;;  %v561_v50 = vpop.f32.mrb[43].mxu0 }
 0x12d   :  { %v2474_v51 = vpop.eup %2473  ;;  %v879_v52 = vadd.f32 1.0, %v2472_v46  ;;  %2493 = vpow2.f32 %v2035_v34  ;;  %1155 = vadd.xlane.f32.xlu1 %v1064_v43  ;;  %v562_v53 = vadd.f32 %v2828_v41, %v561_v50  ;;  %v2038_v59 = vmul.f32 -1.442695, %v559_v42 }
 0x12e   :  { %v2476_v55 = vpop.eup %2475  ;;  %v877_v56 = vadd.f32 1.0, %v2474_v51  ;;  %2495 = vpow2.f32 %v2040_v47  ;;  %2250 = vmatprep.mubr.bf16.mxu1 %v1241_v49  ;;  %v1062_v60 = vmul.f32 %v2470_v40, %v2470_v40  ;;  %v2041_v63 = vmul.f32 -1.442695, %v570_v48 }
 0x12f   :  { %v2478_v57 = vpop.eup %2477  ;;  %2497 = vrcp.f32 %v879_v52  ;;  %v880_v58 = vadd.f32 1.0, %v2476_v55  ;;  %2251 = vmatmul.mubr.bf16.gmra.mrb[20].mxu1 %v1242_v45  ;;  %1149 = vadd.xlane.f32.xlu0 %v1061_v54  ;;  %v2039_v1 = vmul.f32 -1.442695, %v562_v53 }
 0x130   :  { %v2480_v61 = vpop.eup %2479  ;;  %2499 = vrcp.f32 %v877_v56  ;;  %v878_v62 = vadd.f32 1.0, %v2478_v57 }
 0x131   :  { %v2482_v0 = vpop.eup %2481  ;;  %2501 = vrcp.f32 %v880_v58  ;;  %1151 = vadd.xlane.f32.xlu1 %v1062_v60  ;;  %v2192_v2 = vpop.f32.mrb[44].mxu0  ;;  %v1067_v3 = vmul.f32 %v2480_v61, %v2480_v61 }
 0x132   :  { %v2484_v4 = vpop.eup %2483  ;;  %2503 = vrcp.f32 %v878_v62  ;;  %v583_v5 = vadd.f32 %v2192_v2, %v2828_v41  ;;  %v574_v6 = vpop.f32.mrb[45].mxu0  ;;  %v1065_v19 = vmul.f32 %v2482_v0, %v2482_v0 }
 0x133   :  { %v2486_v7 = vpop.eup %2485  ;;  %2505 = vpow2.f32 %v2038_v59  ;;  %1161 = vadd.xlane.f32.xlu0 %v1067_v3  ;;  %v1068_v8 = vmul.f32 %v2484_v4, %v2484_v4  ;;  %v2193_v9 = vpop.f32.mrb[46].mxu0  ;;  %v1244_v10 = vpack.c.bf16 %v2484_v4, %v2480_v61  ;;  %v575_v13 = vadd.f32 %v2828_v41, %v574_v6 }
 0x134   :  { %v2488_v11 = vpop.eup %2487  ;;  %2507 = vpow2.f32 %v2041_v63  ;;  %v2044_v12 = vmul.f32 -1.442695, %v583_v5  ;;  %v1243_v14 = vpack.c.bf16 %v2486_v7, %v2482_v0  ;;  %v577_v15 = vpop.f32.mrb[47].mxu0  ;;  %v586_v18 = vadd.f32 %v2193_v9, %v2828_v41 }
 0x135   :  { %v2490_v16 = vpop.eup %2489  ;;  %v883_v17 = vadd.f32 1.0, %v2488_v11  ;;  %2509 = vpow2.f32 %v2039_v1  ;;  %1163 = vadd.xlane.f32.xlu1 %v1068_v8  ;;  %v578_v22 = vadd.f32 %v2828_v41, %v577_v15  ;;  %v1066_v25 = vmul.f32 %v2486_v7, %v2486_v7 }
 0x136   :  { %v2492_v20 = vpop.eup %2491  ;;  %v881_v21 = vadd.f32 1.0, %v2490_v16  ;;  %2511 = vpow2.f32 %v2044_v12  ;;  %2254 = vmatprep.mubr.bf16.mxu1 %v1243_v14  ;;  %v2042_v28 = vmul.f32 -1.442695, %v575_v13  ;;  %v2045_v31 = vmul.f32 -1.442695, %v586_v18 }
 0x137   :  { %v2494_v23 = vpop.eup %2493  ;;  %2513 = vrcp.f32 %v883_v17  ;;  %v884_v24 = vadd.f32 1.0, %v2492_v20  ;;  %2255 = vmatmul.mubr.bf16.gmra.mrb[24].mxu1 %v1244_v10  ;;  %1157 = vadd.xlane.f32.xlu0 %v1065_v19  ;;  %v2043_v34 = vmul.f32 -1.442695, %v578_v22 }
 0x138   :  { %v2496_v26 = vpop.eup %2495  ;;  %2515 = vrcp.f32 %v881_v21  ;;  %v882_v27 = vadd.f32 1.0, %v2494_v23 }
 0x139   :  { %v2498_v29 = vpop.eup %2497  ;;  %2517 = vrcp.f32 %v884_v24  ;;  %v887_v30 = vadd.f32 1.0, %v2496_v26  ;;  %1159 = vadd.xlane.f32.xlu1 %v1066_v25  ;;  %v2196_v32 = vpop.f32.mrb[48].mxu0 }
 0x13a   :  { %v2500_v33 = vpop.eup %2499  ;;  %2519 = vrcp.f32 %v882_v27  ;;  %v599_v35 = vadd.f32 %v2196_v32, %v2828_v41  ;;  %v1071_v36 = vmul.f32 %v2498_v29, %v2498_v29  ;;  %v590_v37 = vpop.f32.mrb[49].mxu0  ;;  %v2893_v32 = vld [vmem:[%s3112_s2] ss:$0 sm:$0xff] }
 0x13b   :  { %v2502_v38 = vpop.eup %2501  ;;  %2521 = vrcp.f32 %v887_v30  ;;  %v2197_v39 = vpop.f32.mrb[50].mxu0  ;;  %v591_v43 = vadd.f32 %v2828_v41, %v590_v37  ;;  %v1069_v49 = vmul.f32 %v2500_v33, %v2500_v33 }
 0x13c   :  { %v2504_v40 = vpop.eup %2503  ;;  %2523 = vpow2.f32 %v2042_v28  ;;  %v2048_v42 = vmul.f32 -1.442695, %v599_v35  ;;  %1169 = vadd.xlane.f32.xlu0 %v1071_v36  ;;  %v1072_v44 = vmul.f32 %v2502_v38, %v2502_v38  ;;  %v593_v45 = vpop.f32.mrb[51].mxu0  ;;  %v602_v47 = vadd.f32 %v2197_v39, %v2828_v41 }
 0x13d   :  { %v2506_v46 = vpop.eup %2505  ;;  %2525 = vpow2.f32 %v2045_v31  ;;  %v1245_v48 = vpack.c.bf16 %v2504_v40, %v2500_v33  ;;  %v594_v52 = vadd.f32 %v2828_v41, %v593_v45  ;;  %v1246_v53 = vpack.c.bf16 %v2502_v38, %v2498_v29 }
 0x13e   :  { %v2508_v50 = vpop.eup %2507  ;;  %v885_v51 = vadd.f32 1.0, %v2506_v46  ;;  %2527 = vpow2.f32 %v2043_v34  ;;  %1171 = vadd.xlane.f32.xlu1 %v1072_v44  ;;  %v2046_v58 = vmul.f32 -1.442695, %v591_v43  ;;  %v1070_v59 = vmul.f32 %v2504_v40, %v2504_v40 }
 0x13f   :  { %v2510_v54 = vpop.eup %2509  ;;  %v888_v55 = vadd.f32 1.0, %v2508_v50  ;;  %2529 = vpow2.f32 %v2048_v42  ;;  %2258 = vmatprep.mubr.bf16.mxu1 %v1245_v48  ;;  %v2049_v62 = vmul.f32 -1.442695, %v602_v47  ;;  %v2047_v1 = vmul.f32 -1.442695, %v594_v52 }
 0x140   :  { %v2512_v56 = vpop.eup %2511  ;;  %2531 = vrcp.f32 %v885_v51  ;;  %v886_v57 = vadd.f32 1.0, %v2510_v54  ;;  %2259 = vmatmul.mubr.bf16.gmra.mrb[28].mxu1 %v1246_v53  ;;  %1165 = vadd.xlane.f32.xlu0 %v1069_v49 }
 0x141   :  { %v2514_v60 = vpop.eup %2513  ;;  %2533 = vrcp.f32 %v888_v55  ;;  %v891_v61 = vadd.f32 1.0, %v2512_v56  ;;  %v2200_v63 = vpop.f32.mrb[52].mxu0 }
 0x142   :  { %v2516_v0 = vpop.eup %2515  ;;  %2535 = vrcp.f32 %v886_v57  ;;  %1167 = vadd.xlane.f32.xlu1 %v1070_v59  ;;  %v615_v2 = vadd.f32 %v2200_v63, %v2828_v41  ;;  %v1075_v3 = vmul.f32 %v2514_v60, %v2514_v60  ;;  %v606_v4 = vpop.f32.mrb[53].mxu0 }
 0x143   :  { %v2518_v5 = vpop.eup %2517  ;;  %2537 = vrcp.f32 %v891_v61  ;;  %v607_v6 = vadd.f32 %v2828_v41, %v606_v4  ;;  %v2201_v7 = vpop.f32.mrb[54].mxu0  ;;  %v1073_v19 = vmul.f32 %v2516_v0, %v2516_v0 }
 0x144   :  { %v2520_v8 = vpop.eup %2519  ;;  %2539 = vpow2.f32 %v2046_v58  ;;  %v2052_v9 = vmul.f32 -1.442695, %v615_v2  ;;  %1177 = vadd.xlane.f32.xlu0 %v1075_v3  ;;  %v1076_v10 = vmul.f32 %v2518_v5, %v2518_v5  ;;  %v609_v11 = vpop.f32.mrb[55].mxu0  ;;  %v618_v14 = vadd.f32 %v2201_v7, %v2828_v41 }
 0x145   :  { %v2884_v12 = vpop.eup %2521  ;;  %2541 = vpow2.f32 %v2049_v62  ;;  %v2050_v13 = vmul.f32 -1.442695, %v607_v6  ;;  %v1247_v15 = vpack.c.bf16 %v2520_v8, %v2516_v0  ;;  %v610_v17 = vadd.f32 %v2828_v41, %v609_v11 }
 0x146   :  { %v2524_v16 = vpop.eup %2523  ;;  %2543 = vpow2.f32 %v2047_v1  ;;  %1179 = vadd.xlane.f32.xlu1 %v1076_v10  ;;  %v1248_v18 = vpack.c.bf16 %v2518_v5, %v2514_v60  ;;  %v1074_v24 = vmul.f32 %v2520_v8, %v2520_v8  ;;  %v1079_v25 = vmul.f32 %v2884_v12, %v2884_v12 }
 0x147   :  { %v2526_v20 = vpop.eup %2525  ;;  %v889_v21 = vadd.f32 1.0, %v2524_v16  ;;  %2545 = vpow2.f32 %v2052_v9  ;;  %2262 = vmatprep.mubr.bf16.mxu1 %v1247_v15  ;;  %v2053_v28 = vmul.f32 -1.442695, %v618_v14  ;;  %v2051_v31 = vmul.f32 -1.442695, %v610_v17 }
 0x148   :  { %v2528_v22 = vpop.eup %2527  ;;  %v892_v23 = vadd.f32 1.0, %v2526_v20  ;;  %2547 = vpow2.f32 %v2050_v13  ;;  %2263 = vmatmul.mubr.bf16.gmra.mrb[32].mxu1 %v1248_v18  ;;  %1173 = vadd.xlane.f32.xlu0 %v1073_v19 }
 0x149   :  { %v2530_v26 = vpop.eup %2529  ;;  %2549 = vrcp.f32 %v889_v21  ;;  %v890_v27 = vadd.f32 1.0, %v2528_v22  ;;  %v2204_v41 = vpop.f32.mrb[56].mxu0 }
 0x14a   :  { %v2532_v29 = vpop.eup %2531  ;;  %2551 = vrcp.f32 %v892_v23  ;;  %v895_v30 = vadd.f32 1.0, %v2530_v26  ;;  %1175 = vadd.xlane.f32.xlu1 %v1074_v24  ;;  %v631_v33 = vadd.f32 %v2893_v32, %v2204_v41  ;;  %v622_v34 = vpop.f32.mrb[57].mxu0 }
 0x14b   :  { %v2534_v35 = vpop.eup %2533  ;;  %2553 = vrcp.f32 %v890_v27  ;;  %v623_v36 = vadd.f32 %v2893_v32, %v622_v34  ;;  %v2205_v37 = vpop.f32.mrb[58].mxu0  ;;  %v1077_v49 = vmul.f32 %v2532_v29, %v2532_v29 }
 0x14c   :  { %v2536_v38 = vpop.eup %2535  ;;  %2555 = vrcp.f32 %v895_v30  ;;  %v2056_v39 = vmul.f32 -1.442695, %v631_v33  ;;  %1185 = vadd.xlane.f32.xlu0 %v1079_v25  ;;  %v1080_v40 = vmul.f32 %v2534_v35, %v2534_v35  ;;  %v625_v42 = vpop.f32.mrb[59].mxu0  ;;  %v634_v47 = vadd.f32 %v2893_v32, %v2205_v37 }
 0x14d   :  { %v2897_v43 = vpop.eup %2537  ;;  %2557 = vpow2.f32 %v2053_v28  ;;  %v2054_v44 = vmul.f32 -1.442695, %v623_v36  ;;  %v1249_v45 = vpack.c.bf16 %v2536_v38, %v2532_v29  ;;  %v1250_v48 = vpack.c.bf16 %v2534_v35, %v2884_v12 }
 0x14e   :  { %v2540_v46 = vpop.eup %2539  ;;  %2559 = vpow2.f32 %v2051_v31  ;;  %1187 = vadd.xlane.f32.xlu1 %v1080_v40  ;;  %v626_v52 = vadd.f32 %v2893_v32, %v625_v42  ;;  %v1078_v55 = vmul.f32 %v2536_v38, %v2536_v38  ;;  %v1083_v56 = vmul.f32 %v2897_v43, %v2897_v43 }
 0x14f   :  { %v2542_v50 = vpop.eup %2541  ;;  %v893_v51 = vadd.f32 1.0, %v2540_v46  ;;  %2561 = vpow2.f32 %v2056_v39  ;;  %2266 = vmatprep.mubr.bf16.mxu1 %v1249_v45  ;;  %v2057_v62 = vmul.f32 -1.442695, %v634_v47 }
 0x150   :  { %v2544_v53 = vpop.eup %2543  ;;  %v896_v54 = vadd.f32 1.0, %v2542_v50  ;;  %2563 = vpow2.f32 %v2054_v44  ;;  %2267 = vmatmul.mubr.bf16.gmra.mrb[36].mxu1 %v1250_v48  ;;  %1181 = vadd.xlane.f32.xlu0 %v1077_v49  ;;  %v2055_v3 = vmul.f32 -1.442695, %v626_v52 }
 0x151   :  { %v2546_v57 = vpop.eup %2545  ;;  %2565 = vrcp.f32 %v893_v51  ;;  %v894_v58 = vadd.f32 1.0, %v2544_v53  ;;  %v2208_v59 = vpop.f32.mrb[60].mxu0 }
 0x152   :  { %v2548_v60 = vpop.eup %2547  ;;  %2567 = vrcp.f32 %v896_v54  ;;  %v899_v61 = vadd.f32 1.0, %v2546_v57  ;;  %1183 = vadd.xlane.f32.xlu1 %v1078_v55  ;;  %v647_v63 = vadd.f32 %v2893_v32, %v2208_v59  ;;  %v638_v0 = vpop.f32.mrb[61].mxu0 }
 0x153   :  { %v2550_v1 = vpop.eup %2549  ;;  %2569 = vrcp.f32 %v894_v58  ;;  %v897_v2 = vadd.f32 1.0, %v2548_v60  ;;  %v639_v4 = vadd.f32 %v2893_v32, %v638_v0  ;;  %v2209_v5 = vpop.f32.mrb[62].mxu0 }
 0x154   :  { %v2552_v6 = vpop.eup %2551  ;;  %2571 = vrcp.f32 %v899_v61  ;;  %v2060_v7 = vmul.f32 -1.442695, %v647_v63  ;;  %1193 = vadd.xlane.f32.xlu0 %v1083_v56  ;;  %v641_v8 = vpop.f32.mrb[63].mxu0  ;;  %v650_v12 = vadd.f32 %v2893_v32, %v2209_v5  ;;  %v1081_v16 = vmul.f32 %v2550_v1, %v2550_v1 }
 0x155   :  { %v2554_v9 = vpop.eup %2553  ;;  %2573 = vrcp.f32 %v897_v2  ;;  %v2058_v10 = vmul.f32 -1.442695, %v639_v4  ;;  %v1084_v11 = vmul.f32 %v2552_v6, %v2552_v6  ;;  %v1252_v15 = vpack.c.bf16 %v2552_v6, %v2897_v43 }
 0x156   :  { %v2556_v13 = vpop.eup %2555  ;;  %2575 = vpow2.f32 %v2057_v62  ;;  %v1251_v14 = vpack.c.bf16 %v2554_v9, %v2550_v1  ;;  %v642_v18 = vadd.f32 %v2893_v32, %v641_v8  ;;  %v1082_v24 = vmul.f32 %v2554_v9, %v2554_v9 }
 0x157   :  { %v2558_v17 = vpop.eup %2557  ;;  %2577 = vpow2.f32 %v2055_v3  ;;  %1195 = vadd.xlane.f32.xlu1 %v1084_v11  ;;  %v1087_v21 = vmul.f32 %v2556_v13, %v2556_v13  ;;  %v2061_v27 = vmul.f32 -1.442695, %v650_v12 }
 0x158   :  { %v2560_v19 = vpop.eup %2559  ;;  %v900_v20 = vadd.f32 1.0, %v2558_v17  ;;  %2579 = vpow2.f32 %v2060_v7  ;;  %2270 = vmatprep.mubr.bf16.mxu1 %v1251_v14  ;;  %1189 = vadd.xlane.f32.xlu0 %v1081_v16  ;;  %v2059_v41 = vmul.f32 -1.442695, %v642_v18 }
 0x159   :  { %v2562_v22 = vpop.eup %2561  ;;  %v898_v23 = vadd.f32 1.0, %v2560_v19  ;;  %2581 = vpow2.f32 %v2058_v10  ;;  %2271 = vmatmul.mubr.bf16.gmra.mrb[40].mxu1 %v1252_v15 }
 0x15a   :  { %v2564_v25 = vpop.eup %2563  ;;  %2583 = vrcp.f32 %v900_v20  ;;  %v903_v26 = vadd.f32 1.0, %v2562_v22  ;;  %v2636_v22 = vmov inf  }
 0x15b   :  { %v2566_v28 = vpop.eup %2565  ;;  %2585 = vrcp.f32 %v898_v23  ;;  %1191 = vadd.xlane.f32.xlu1 %v1082_v24  ;;  %v901_v31 = vadd.f32 1.0, %v2564_v25  ;;  %26 = vst [vmem:[#allocation2] sm:$0x1] %v2636_v22  ;;  %27 = vst [vmem:[#allocation2 + $0x1] sm:$0x1] %v2636_v22 }
 0x15c   :  { %v2568_v29 = vpop.eup %2567  ;;  %2587 = vrcp.f32 %v903_v26  ;;  %1201 = vadd.xlane.f32.xlu0 %v1087_v21  ;;  %v1085_v36 = vmul.f32 %v2566_v28, %v2566_v28 }
 0x15d   :  { %v2570_v30 = vpop.eup %2569  ;;  %v1088_v32 = vmul.f32 %v2568_v29, %v2568_v29  ;;  %v1254_v33 = vpack.c.bf16 %v2568_v29, %v2556_v13  ;;  %2589 = vpow2.f32 %v2061_v27 }
 0x15e   :  { %v2572_v34 = vpop.eup %2571  ;;  %v1253_v35 = vpack.c.bf16 %v2570_v30, %v2566_v28  ;;  %2591 = vpow2.f32 %v2059_v41  ;;  %v1086_v43 = vmul.f32 %v2570_v30, %v2570_v30 }
 0x15f   :  { %v2574_v37 = vpop.eup %2573  ;;  %1203 = vadd.xlane.f32.xlu1 %v1088_v32  ;;  %v1091_v39 = vmul.f32 %v2572_v34, %v2572_v34  ;;  %2593 = vrcp.f32 %v901_v31 }
 0x160   :  { %v2576_v38 = vpop.eup %2575  ;;  %2274 = vmatprep.mubr.bf16.mxu1 %v1253_v35  ;;  %1197 = vadd.xlane.f32.xlu0 %v1085_v36  ;;  %v1089_v55 = vmul.f32 %v2574_v37, %v2574_v37 }
 0x161   :  { %v2578_v40 = vpop.eup %2577  ;;  %v904_v42 = vadd.f32 1.0, %v2576_v38  ;;  %2275 = vmatmul.mubr.bf16.gmra.mrb[44].mxu1 %v1254_v33  ;;  %v2938_v38 = vld [vmem:[%s3114_s4] ss:$0 sm:$0xff]  ;;  %s2637_s4 = smov [#allocation2]  }
 0x162   :  { %v2580_v44 = vpop.eup %2579  ;;  %v902_v45 = vadd.f32 1.0, %v2578_v40  ;;  %s1921_s25 = sshll.u32 %s2637_s4, 4  ;;  %s1922_s25 = int_to_ptr.vmem [resolvable:$true] %s1921_s25 }
 0x163   :  { %v2582_v46 = vpop.eup %2581  ;;  %2595 = vrcp.f32 %v904_v42  ;;  %1199 = vadd.xlane.f32.xlu1 %v1086_v43  ;;  %v907_v50 = vadd.f32 1.0, %v2580_v44  ;;  %s2612_s1 = scalar_lea.vmem %s1922_s25, 32  ;;  %p2617_p1 = scmp.lt.s32.totalorder %s1922_s25, %s1922_s25 }
 0x164   :  { %v2584_v47 = vpop.eup %2583  ;;  %2597 = vrcp.f32 %v902_v45  ;;  %v905_v48 = vadd.f32 1.0, %v2582_v46  ;;  %1209 = vadd.xlane.f32.xlu0 %v1091_v39  ;;  %p2613_p0 = scmp.ne.s32.totalorder %s1922_s25, %s2612_s1  ;;  %p2618_p2 = scmp.lt.s32.totalorder %s2612_s1, %s2612_s1 }
 0x165   :  { %v2586_v49 = vpop.eup %2585  ;;  %v1092_v51 = vmul.f32 %v2584_v47, %v2584_v47  ;;  %v1256_v52 = vpack.c.bf16 %v2584_v47, %v2572_v34 }
 0x166   :  { %v2588_v53 = vpop.eup %2587  ;;  %2599 = vrcp.f32 %v905_v48  ;;  %v1255_v54 = vpack.c.bf16 %v2586_v49, %v2574_v37  ;;  %v1090_v60 = vmul.f32 %v2586_v49, %v2586_v49  ;;  %p2619_p3 = por %p2618_p2, %p2617_p1 }
 0x167   :  { %1211 = vadd.xlane.f32.xlu1 %v1092_v51  ;;  %v2590_v56 = vpop.eup %2589  ;;  %v1095_v57 = vmul.f32 %v2588_v53, %v2588_v53  ;;  %2601 = vrcp.f32 %v907_v50 }
 0x168   :  { %2278 = vmatprep.mubr.bf16.mxu1 %v1255_v54  ;;  %1205 = vadd.xlane.f32.xlu0 %v1089_v55  ;;  %v2592_v58 = vpop.eup %2591  ;;  %v908_v59 = vadd.f32 1.0, %v2590_v56  ;;  %p2620_p4 = pnand %p2619_p3, %p2613_p0 }
 0x169   :  { %2279 = vmatmul.mubr.bf16.gmra.mrb[48].mxu1 %v1256_v52  ;;  %v906_v61 = vadd.f32 1.0, %v2592_v58  ;;  %v2594_v62 = vpop.eup %2593 }
 0x16a   :  { %2603 = vrcp.f32 %v908_v59  ;;  %v1093_v3 = vmul.f32 %v2594_v62, %v2594_v62 }
 0x16b   :  { %1207 = vadd.xlane.f32.xlu1 %v1090_v60  ;;  %2605 = vrcp.f32 %v906_v61 }
 0x16c   :  { %1217 = vadd.xlane.f32.xlu0 %v1095_v57 }
 0x16d   :  { %v2596_v63 = vpop.eup %2595 }
 0x16e   :  { %v2598_v0 = vpop.eup %2597  ;;  %v1096_v1 = vmul.f32 %v2596_v63, %v2596_v63  ;;  %v1258_v2 = vpack.c.bf16 %v2596_v63, %v2588_v53 }
 0x16f   :  { %v1257_v4 = vpack.c.bf16 %v2598_v0, %v2594_v62  ;;  %v1094_v7 = vmul.f32 %v2598_v0, %v2598_v0 }
 0x170   :  { %v2600_v5 = vpop.eup %2599  ;;  %1219 = vadd.xlane.f32.xlu1 %v1096_v1  ;;  %1213 = vadd.xlane.f32.xlu0 %v1093_v3 }
 0x171   :  { %2282 = vmatprep.mubr.bf16.mxu1 %v1257_v4  ;;  %v1097_v6 = vmul.f32 %v2600_v5, %v2600_v5  ;;  %v2602_v8 = vpop.eup %2601 }
 0x172   :  { %2283 = vmatmul.mubr.bf16.gmra.mrb[52].mxu1 %v1258_v2  ;;  %v1099_v12 = vmul.f32 %v2602_v8, %v2602_v8 }
 0x174   :  { %1215 = vadd.xlane.f32.xlu1 %v1094_v7  ;;  %1221 = vadd.xlane.f32.xlu0 %v1097_v6  ;;  %v2604_v9 = vpop.eup %2603 }
 0x175   :  { %v2606_v10 = vpop.eup %2605  ;;  %v1260_v11 = vpack.c.bf16 %v2604_v9, %v2602_v8  ;;  %v1100_v15 = vmul.f32 %v2604_v9, %v2604_v9 }
 0x176   :  { %v1098_v13 = vmul.f32 %v2606_v10, %v2606_v10  ;;  %v1259_v14 = vpack.c.bf16 %v2606_v10, %v2600_v5 }
 0x178   :  { %1225 = vadd.xlane.f32.xlu0 %v1099_v12  ;;  %1223 = vadd.xlane.f32.xlu1 %v1098_v13 }
 0x179   :  { %2286 = vmatprep.mubr.bf16.mxu1 %v1259_v14 }
 0x17a   :  { %2287 = vmatmul.mubr.bf16.gmra.mrb[56].mxu1 %v1260_v11 }
 0x17c   :  { %1227 = vadd.xlane.f32.xlu1 %v1100_v15 }
 0x185   :  { %v1106_v17 = vpop.xlane.xlu1 %1105 }
 0x186   :  { %v1102_v16 = vpop.xlane.xlu0 %1101 }
 0x189   :  { %v1108_v19 = vpop.xlane.xlu1 %1107 }
 0x18a   :  { %v1104_v18 = vpop.xlane.xlu0 %1103 }
 0x18e   :  { %v1114_v20 = vpop.xlane.xlu0 %1113 }
 0x18f   :  { %v1116_v21 = vpop.xlane.xlu1 %1115 }
 0x192   :  { %v1110_v23 = vpop.xlane.xlu0 %1109 }
 0x193   :  { %v1112_v24 = vpop.xlane.xlu1 %1111 }
 0x196   :  { %v2909_v25 = vpop.xlane.xlu0 %1121 }
 0x198   :  { %v2911_v26 = vpop.xlane.xlu1 %1123 }
 0x19a   :  { %v2913_v27 = vpop.xlane.xlu0 %1117 }
 0x19c   :  { %v2915_v28 = vpop.xlane.xlu1 %1119 }
 0x19e   :  { %v2917_v41 = vpop.xlane.xlu0 %1129 }
 0x1a0   :  { %v2919_v29 = vpop.xlane.xlu1 %1131 }
 0x1a2   :  { %v2921_v30 = vpop.xlane.xlu0 %1125 }
 0x1a4   :  { %v2923_v31 = vpop.xlane.xlu1 %1127 }
 0x1a7   :  { %v2925_v32 = vpop.xlane.xlu0 %1137 }
 0x1a9   :  { %v2927_v33 = vpop.xlane.xlu1 %1139 }
 0x1ab   :  { %v2929_v34 = vpop.xlane.xlu0 %1133 }
 0x1ad   :  { %v2931_v35 = vpop.xlane.xlu1 %1135 }
 0x1af   :  { %v2933_v36 = vpop.xlane.xlu0 %1145 }
 0x1b1   :  { %v2940_v42 = vpop.xlane.xlu1 %1147 }
 0x1b3   :  { %v2945_v52 = vpop.xlane.xlu0 %1141 }
 0x1b5   :  { %v2948_v56 = vpop.xlane.xlu1 %1143 }
 0x1b8   :  { %v2950_v3 = vpop.xlane.xlu0 %1153 }
 0x1ba   :  { %v2954_v7 = vpop.xlane.xlu1 %1155 }
 0x1bc   :  { %v2958_v15 = vpop.xlane.xlu0 %1149 }
 0x1cf   :  { %v2228_v37 = vpop.f32.mrb[64].mxu0 }
 0x1d0   :  { %v1616_v39 = vsub.f32 %v1106_v17, %v2228_v37  ;;  %v1359_v40 = vpop.f32.mrb[65].mxu0 }
 0x1d1   :  { %v1614_v43 = vsub.f32 %v1102_v16, %v1359_v40  ;;  %v2229_v44 = vpop.f32.mrb[66].mxu0 }
 0x1d2   :  { %v1687_v45 = vadd.f32 %v2938_v38, %v1616_v39  ;;  %v1617_v46 = vsub.f32 %v1108_v19, %v2229_v44  ;;  %v1362_v47 = vpop.f32.mrb[67].mxu0 }
 0x1d3   :  { %v1685_v48 = vadd.f32 %v2938_v38, %v1614_v43  ;;  %v1615_v49 = vsub.f32 %v1104_v18, %v1362_v47  ;;  %v2970_v47 = vpop.xlane.xlu0 %1161 }
 0x1d4   :  { %v1751_v50 = vand.u32 2147483647, %v1687_v45  ;;  %v1688_v51 = vadd.f32 %v2938_v38, %v1617_v46 }
 0x1d5   :  { %v1749_v53 = vand.u32 2147483647, %v1685_v48  ;;  %v1686_v54 = vadd.f32 %v2938_v38, %v1615_v49 }
 0x1d6   :  { %v1752_v55 = vand.u32 2147483647, %v1688_v51 }
 0x1d7   :  { %v1813_v57 = vmin.f32 %v1749_v53, %v1751_v50  ;;  %v1750_v58 = vand.u32 2147483647, %v1686_v54  ;;  %v2232_v59 = vpop.f32.mrb[0].mxu1 }
 0x1d8   :  { %v1620_v60 = vsub.f32 %v1114_v20, %v2232_v59  ;;  %v1375_v61 = vpop.f32.mrb[1].mxu1 }
 0x1d9   :  { %v1814_v62 = vmin.f32 %v1750_v58, %v1752_v55  ;;  %v1618_v63 = vsub.f32 %v1110_v23, %v1375_v61  ;;  %v2233_v0 = vpop.f32.mrb[2].mxu1  ;;  %v2962_v23 = vpop.xlane.xlu1 %1151 }
 0x1da   :  { %v1621_v1 = vsub.f32 %v1116_v21, %v2233_v0  ;;  %v1378_v2 = vpop.f32.mrb[3].mxu1  ;;  %v1691_v4 = vadd.f32 %v2938_v38, %v1620_v60 }
 0x1db   :  { %v1689_v5 = vadd.f32 %v2938_v38, %v1618_v63  ;;  %v1619_v6 = vsub.f32 %v1112_v24, %v1378_v2 }
 0x1dc   :  { %v1692_v9 = vadd.f32 %v2938_v38, %v1621_v1  ;;  %v1755_v11 = vand.u32 2147483647, %v1691_v4  ;;  %v2980_v1 = vpop.xlane.xlu0 %1157 }
 0x1dd   :  { %v1753_v8 = vand.u32 2147483647, %v1689_v5  ;;  %v1690_v10 = vadd.f32 %v2938_v38, %v1619_v6 }
 0x1de   :  { %v1756_v16 = vand.u32 2147483647, %v1692_v9 }
 0x1df   :  { %v1815_v12 = vmin.f32 %v1813_v57, %v1753_v8  ;;  %v1754_v13 = vand.u32 2147483647, %v1690_v10 }
 0x1e0   :  { %v2236_v14 = vpop.f32.mrb[4].mxu1 }
 0x1e1   :  { %v1816_v17 = vmin.f32 %v1814_v62, %v1754_v13  ;;  %v1624_v18 = vsub.f32 %v2909_v25, %v2236_v14  ;;  %v1391_v19 = vpop.f32.mrb[5].mxu1  ;;  %v1817_v20 = vmin.f32 %v1815_v12, %v1755_v11  ;;  %v2987_v13 = vpop.xlane.xlu0 %1169 }
 0x1e2   :  { %v1622_v21 = vsub.f32 %v2913_v27, %v1391_v19  ;;  %v2237_v22 = vpop.f32.mrb[6].mxu1 }
 0x1e3   :  { %v1625_v24 = vsub.f32 %v2911_v26, %v2237_v22  ;;  %v1394_v37 = vpop.f32.mrb[7].mxu1  ;;  %v1818_v39 = vmin.f32 %v1816_v17, %v1756_v16  ;;  %v1695_v40 = vadd.f32 %v2938_v38, %v1624_v18  ;;  %v2972_v26 = vpop.xlane.xlu1 %1163 }
 0x1e4   :  { %v1693_v43 = vadd.f32 %v2938_v38, %v1622_v21  ;;  %v1623_v44 = vsub.f32 %v2915_v28, %v1394_v37 }
 0x1e5   :  { %v1696_v25 = vadd.f32 %v2938_v38, %v1625_v24  ;;  %v1759_v27 = vand.u32 2147483647, %v1695_v40  ;;  %v2998_v40 = vpop.xlane.xlu0 %1165 }
 0x1e6   :  { %v1757_v45 = vand.u32 2147483647, %v1693_v43  ;;  %v1694_v46 = vadd.f32 %v2938_v38, %v1623_v44 }
 0x1e7   :  { %v1760_v54 = vand.u32 2147483647, %v1696_v25 }
 0x1e8   :  { %v1819_v48 = vmin.f32 %v1817_v20, %v1757_v45  ;;  %v1758_v49 = vand.u32 2147483647, %v1694_v46  ;;  %v2240_v50 = vpop.f32.mrb[8].mxu1 }
 0x1e9   :  { %v1628_v51 = vsub.f32 %v2917_v41, %v2240_v50  ;;  %v1407_v53 = vpop.f32.mrb[9].mxu1 }
 0x1ea   :  { %v1820_v55 = vmin.f32 %v1818_v39, %v1758_v49  ;;  %v1626_v28 = vsub.f32 %v2921_v30, %v1407_v53  ;;  %v1821_v57 = vmin.f32 %v1819_v48, %v1759_v27  ;;  %v2241_v58 = vpop.f32.mrb[10].mxu1  ;;  %v2984_v30 = vpop.xlane.xlu1 %1159 }
 0x1eb   :  { %v1629_v59 = vsub.f32 %v2919_v29, %v2241_v58  ;;  %v1410_v60 = vpop.f32.mrb[11].mxu1  ;;  %v1699_v61 = vadd.f32 %v2938_v38, %v1628_v51 }
 0x1ec   :  { %v1697_v62 = vadd.f32 %v2938_v38, %v1626_v28  ;;  %v1627_v63 = vsub.f32 %v2923_v31, %v1410_v60  ;;  %v1822_v0 = vmin.f32 %v1820_v55, %v1760_v54 }
 0x1ed   :  { %v1700_v2 = vadd.f32 %v2938_v38, %v1629_v59  ;;  %v1763_v5 = vand.u32 2147483647, %v1699_v61 }
 0x1ee   :  { %v1761_v41 = vand.u32 2147483647, %v1697_v62  ;;  %v1698_v4 = vadd.f32 %v2938_v38, %v1627_v63  ;;  %v2991_v20 = vpop.xlane.xlu1 %1171 }
 0x1ef   :  { %v1764_v9 = vand.u32 2147483647, %v1700_v2 }
 0x1f0   :  { %v1823_v6 = vmin.f32 %v1821_v57, %v1761_v41  ;;  %v1762_v29 = vand.u32 2147483647, %v1698_v4 }
 0x1f1   :  { %v2244_v8 = vpop.f32.mrb[12].mxu1 }
 0x1f2   :  { %v1824_v10 = vmin.f32 %v1822_v0, %v1762_v29  ;;  %v1632_v11 = vsub.f32 %v2925_v32, %v2244_v8  ;;  %v1423_v12 = vpop.f32.mrb[13].mxu1  ;;  %v1825_v31 = vmin.f32 %v1823_v6, %v1763_v5  ;;  %v3001_v46 = vpop.xlane.xlu1 %1167 }
 0x1f3   :  { %v1630_v14 = vsub.f32 %v2929_v34, %v1423_v12  ;;  %v2245_v16 = vpop.f32.mrb[14].mxu1 }
 0x1f4   :  { %v1633_v17 = vsub.f32 %v2927_v33, %v2245_v16  ;;  %v1426_v18 = vpop.f32.mrb[15].mxu1  ;;  %v1826_v19 = vmin.f32 %v1824_v10, %v1764_v9  ;;  %v1703_v21 = vadd.f32 %v2938_v38, %v1632_v11 }
 0x1f5   :  { %v1701_v22 = vadd.f32 %v2938_v38, %v1630_v14  ;;  %v1631_v24 = vsub.f32 %v2931_v35, %v1426_v18 }
 0x1f6   :  { %v1704_v37 = vadd.f32 %v2938_v38, %v1633_v17  ;;  %v1767_v34 = vand.u32 2147483647, %v1703_v21 }
 0x1f7   :  { %v1765_v32 = vand.u32 2147483647, %v1701_v22  ;;  %v1702_v39 = vadd.f32 %v2938_v38, %v1631_v24 }
 0x1f8   :  { %v1768_v27 = vand.u32 2147483647, %v1704_v37 }
 0x1f9   :  { %v1827_v43 = vmin.f32 %v1825_v31, %v1765_v32  ;;  %v1766_v33 = vand.u32 2147483647, %v1702_v39  ;;  %v2248_v44 = vpop.f32.mrb[16].mxu1 }
 0x1fa   :  { %v1636_v45 = vsub.f32 %v2933_v36, %v2248_v44  ;;  %v1439_v25 = vpop.f32.mrb[17].mxu1  ;;  %v3008_v36 = vpop.xlane.xlu0 %1177 }
 0x1fb   :  { %v1828_v48 = vmin.f32 %v1826_v19, %v1766_v33  ;;  %v1634_v35 = vsub.f32 %v2945_v52, %v1439_v25  ;;  %v1829_v49 = vmin.f32 %v1827_v43, %v1767_v34  ;;  %v2249_v50 = vpop.f32.mrb[18].mxu1  ;;  %v3012_v52 = vpop.xlane.xlu1 %1179 }
 0x1fc   :  { %v1637_v51 = vsub.f32 %v2940_v42, %v2249_v50  ;;  %v1442_v53 = vpop.f32.mrb[19].mxu1  ;;  %v1707_v54 = vadd.f32 %v2938_v38, %v1636_v45 }
 0x1fd   :  { %v1705_v55 = vadd.f32 %v2938_v38, %v1634_v35  ;;  %v1635_v28 = vsub.f32 %v2948_v56, %v1442_v53  ;;  %v1830_v57 = vmin.f32 %v1828_v48, %v1768_v27 }
 0x1fe   :  { %v1708_v59 = vadd.f32 %v2938_v38, %v1637_v51  ;;  %v1771_v61 = vand.u32 2147483647, %v1707_v54  ;;  %v3016_v29 = vpop.xlane.xlu0 %1173 }
 0x1ff   :  { %v1769_v58 = vand.u32 2147483647, %v1705_v55  ;;  %v1706_v60 = vadd.f32 %v2938_v38, %v1635_v28  ;;  %v3022_v14 = vpop.xlane.xlu1 %1175 }
 0x200   :  { %v1772_v0 = vand.u32 2147483647, %v1708_v59 }
 0x201   :  { %v1831_v62 = vmin.f32 %v1829_v49, %v1769_v58  ;;  %v1770_v42 = vand.u32 2147483647, %v1706_v60 }
 0x202   :  { %v2252_v63 = vpop.f32.mrb[20].mxu1 }
 0x203   :  { %v1832_v41 = vmin.f32 %v1830_v57, %v1770_v42  ;;  %v1640_v2 = vsub.f32 %v2950_v3, %v2252_v63  ;;  %v1455_v4 = vpop.f32.mrb[21].mxu1  ;;  %v1833_v56 = vmin.f32 %v1831_v62, %v1771_v61  ;;  %v3030_v43 = vpop.xlane.xlu1 %1187 }
 0x204   :  { %v1638_v5 = vsub.f32 %v2958_v15, %v1455_v4  ;;  %v2253_v6 = vpop.f32.mrb[22].mxu1 }
 0x205   :  { %v1641_v8 = vsub.f32 %v2954_v7, %v2253_v6  ;;  %v1458_v9 = vpop.f32.mrb[23].mxu1  ;;  %v1834_v10 = vmin.f32 %v1832_v41, %v1772_v0  ;;  %v1711_v11 = vadd.f32 %v2938_v38, %v1640_v2  ;;  %v3026_v7 = vpop.xlane.xlu0 %1185 }
 0x206   :  { %v1709_v12 = vadd.f32 %v2938_v38, %v1638_v5  ;;  %v1639_v31 = vsub.f32 %v2962_v23, %v1458_v9 }
 0x207   :  { %v1712_v16 = vadd.f32 %v2938_v38, %v1641_v8  ;;  %v1775_v17 = vand.u32 2147483647, %v1711_v11  ;;  %v3040_v54 = vpop.xlane.xlu1 %1183 }
 0x208   :  { %v1773_v3 = vand.u32 2147483647, %v1709_v12  ;;  %v1710_v15 = vadd.f32 %v2938_v38, %v1639_v31 }
 0x209   :  { %v1776_v32 = vand.u32 2147483647, %v1712_v16 }
 0x20a   :  { %v1835_v18 = vmin.f32 %v1833_v56, %v1773_v3  ;;  %v1774_v19 = vand.u32 2147483647, %v1710_v15  ;;  %v2256_v21 = vpop.f32.mrb[24].mxu1 }
 0x20b   :  { %v1644_v22 = vsub.f32 %v2970_v47, %v2256_v21  ;;  %v1471_v24 = vpop.f32.mrb[25].mxu1  ;;  %v3051_v5 = vpop.xlane.xlu1 %1195 }
 0x20c   :  { %v1836_v37 = vmin.f32 %v1834_v10, %v1774_v19  ;;  %v1642_v23 = vsub.f32 %v2980_v1, %v1471_v24  ;;  %v1837_v39 = vmin.f32 %v1835_v18, %v1775_v17  ;;  %v2257_v34 = vpop.f32.mrb[26].mxu1  ;;  %v3038_v1 = vpop.xlane.xlu0 %1181 }
 0x20d   :  { %v1645_v33 = vsub.f32 %v2972_v26, %v2257_v34  ;;  %v1474_v44 = vpop.f32.mrb[27].mxu1  ;;  %v1715_v45 = vadd.f32 %v2938_v38, %v1644_v22 }
 0x20e   :  { %v1713_v25 = vadd.f32 %v2938_v38, %v1642_v23  ;;  %v1643_v27 = vsub.f32 %v2984_v30, %v1474_v44  ;;  %v1838_v48 = vmin.f32 %v1836_v37, %v1776_v32 }
 0x20f   :  { %v1716_v35 = vadd.f32 %v2938_v38, %v1645_v33  ;;  %v1779_v50 = vand.u32 2147483647, %v1715_v45  ;;  %v1192_v22 = vpop.xlane.xlu1 %1191 }
 0x210   :  { %v1777_v47 = vand.u32 2147483647, %v1713_v25  ;;  %v1714_v49 = vadd.f32 %v2938_v38, %v1643_v27  ;;  %v3046_v0 = vpop.xlane.xlu0 %1193 }
 0x211   :  { %v1780_v28 = vand.u32 2147483647, %v1716_v35 }
 0x212   :  { %v1839_v51 = vmin.f32 %v1837_v39, %v1777_v47  ;;  %v1778_v53 = vand.u32 2147483647, %v1714_v49 }
 0x213   :  { %v2260_v26 = vpop.f32.mrb[28].mxu1  ;;  %v3065_v49 = vpop.xlane.xlu1 %1203 }
 0x214   :  { %v1841_v55 = vmin.f32 %v1839_v51, %v1779_v50  ;;  %v1840_v57 = vmin.f32 %v1838_v48, %v1778_v53  ;;  %v1648_v58 = vsub.f32 %v2987_v13, %v2260_v26  ;;  %v1487_v30 = vpop.f32.mrb[29].mxu1  ;;  %v1190_v16 = vpop.xlane.xlu0 %1189 }
 0x215   :  { %v1646_v59 = vsub.f32 %v2998_v40, %v1487_v30  ;;  %v2261_v60 = vpop.f32.mrb[30].mxu1 }
 0x216   :  { %v1842_v61 = vmin.f32 %v1840_v57, %v1780_v28  ;;  %v1719_v62 = vadd.f32 %v2938_v38, %v1648_v58  ;;  %v1649_v42 = vsub.f32 %v2991_v20, %v2261_v60  ;;  %v1490_v63 = vpop.f32.mrb[31].mxu1 }
 0x217   :  { %v1717_v41 = vadd.f32 %v2938_v38, %v1646_v59  ;;  %v1647_v2 = vsub.f32 %v3001_v46, %v1490_v63 }
 0x218   :  { %v1843_v4 = vmin.f32 %v1841_v55, %v1842_v61  ;;  %v1783_v56 = vand.u32 2147483647, %v1719_v62  ;;  %v1720_v13 = vadd.f32 %v2938_v38, %v1649_v42  ;;  %v3062_v44 = vpop.xlane.xlu0 %1201  ;;  %v1200_v42 = vpop.xlane.xlu1 %1199 }
 0x219   :  { %v1781_v40 = vand.u32 2147483647, %v1717_v41  ;;  %v1718_v6 = vadd.f32 %v2938_v38, %v1647_v2 }
 0x21a   :  { %v1844_v8 = vrot.slane %v1843_v4, 4  ;;  %v1784_v9 = vand.u32 2147483647, %v1720_v13 }
 0x21b   :  { %v1850_v10 = vmin.f32 %v1781_v40, %v1783_v56  ;;  %v1782_v20 = vand.u32 2147483647, %v1718_v6  ;;  %v2264_v11 = vpop.f32.mrb[32].mxu1 }
 0x21c   :  { %v1845_v12 = vmin.f32 %v1843_v4, %v1844_v8  ;;  %v1652_v31 = vsub.f32 %v3008_v36, %v2264_v11  ;;  %v1503_v3 = vpop.f32.mrb[33].mxu1  ;;  %v1198_v60 = vpop.xlane.xlu0 %1197 }
 0x21d   :  { %v1851_v46 = vmin.f32 %v1782_v20, %v1784_v9  ;;  %v1650_v15 = vsub.f32 %v3016_v29, %v1503_v3  ;;  %v2265_v17 = vpop.f32.mrb[34].mxu1  ;;  %v1887_v29 = vld [vmem:[#allocation2] sm:$0x1] }
 0x21e   :  { %v1846_v18 = vrot.slane %v1845_v12, 2  ;;  %v1653_v19 = vsub.f32 %v3012_v52, %v2265_v17  ;;  %v1506_v21 = vpop.f32.mrb[35].mxu1  ;;  %v1723_v24 = vadd.f32 %v2938_v38, %v1652_v31  ;;  %v1212_v17 = vpop.xlane.xlu1 %1211 }
 0x21f   :  { %v1721_v32 = vadd.f32 %v2938_v38, %v1650_v15  ;;  %v1651_v37 = vsub.f32 %v3022_v14, %v1506_v21 }
 0x220   :  { %v1847_v23 = vmin.f32 %v1845_v12, %v1846_v18  ;;  %v1724_v36 = vadd.f32 %v2938_v38, %v1653_v19  ;;  %v1787_v45 = vand.u32 2147483647, %v1723_v24  ;;  %v1210_v9 = vpop.xlane.xlu0 %1209 }
 0x221   :  { %v1785_v39 = vand.u32 2147483647, %v1721_v32  ;;  %v1722_v34 = vadd.f32 %v2938_v38, %v1651_v37 }
 0x222   :  { %v1848_v33 = vrot.slane %v1847_v23, 1  ;;  %v1788_v14 = vand.u32 2147483647, %v1724_v36 }
 0x223   :  { %v1852_v52 = vmin.f32 %v1850_v10, %v1785_v39  ;;  %v1786_v25 = vand.u32 2147483647, %v1722_v34  ;;  %v2268_v27 = vpop.f32.mrb[36].mxu1 }
 0x224   :  { %v1849_v48 = vmin.f32 %v1847_v23, %v1848_v33  ;;  %v1656_v47 = vsub.f32 %v3026_v7, %v2268_v27  ;;  %v1519_v35 = vpop.f32.mrb[37].mxu1  ;;  %v1206_v32 = vpop.xlane.xlu0 %1205 }
 0x225   :  { %v1853_v50 = vmin.f32 %v1851_v46, %v1786_v25  ;;  %v1654_v51 = vsub.f32 %v3038_v1, %v1519_v35  ;;  %v1854_v53 = vmin.f32 %v1852_v52, %v1787_v45  ;;  %v2269_v26 = vpop.f32.mrb[38].mxu1 }
 0x226   :  { %v1657_v55 = vsub.f32 %v3030_v43, %v2269_v26  ;;  %v1522_v28 = vpop.f32.mrb[39].mxu1  ;;  %v1889_v57 = vmin.f32 %v1887_v29, %v1849_v48  ;;  %v1727_v58 = vadd.f32 %v2938_v38, %v1656_v47  ;;  %v1208_v29 = vpop.xlane.xlu1 %1207 }
 0x227   :  { %v1725_v30 = vadd.f32 %v2938_v38, %v1654_v51  ;;  %v1655_v59 = vsub.f32 %v3040_v54, %v1522_v28  ;;  %v1855_v7 = vmin.f32 %v1853_v50, %v1788_v14 }
 0x228   :  { %1891 = vst [vmem:[#allocation2] sm:$0x1] %v1889_v57  ;;  %v1728_v62 = vadd.f32 %v2938_v38, %v1657_v55  ;;  %v1791_v63 = vand.u32 2147483647, %v1727_v58  ;;  %v1218_v50 = vpop.xlane.xlu0 %1217 }
 0x229   :  { %v1789_v61 = vand.u32 2147483647, %v1725_v30  ;;  %v1726_v1 = vadd.f32 %v2938_v38, %v1655_v59 }
 0x22a   :  { %v1792_v4 = vand.u32 2147483647, %v1728_v62  ;;  %v1220_v57 = vpop.xlane.xlu1 %1219 }
 0x22b   :  { %v1856_v41 = vmin.f32 %v1854_v53, %v1789_v61  ;;  %v1790_v43 = vand.u32 2147483647, %v1726_v1 }
 0x22c   :  { %v2272_v2 = vpop.f32.mrb[40].mxu1 }
 0x22d   :  { %v1857_v56 = vmin.f32 %v1855_v7, %v1790_v43  ;;  %v1660_v13 = vsub.f32 %v3046_v0, %v2272_v2  ;;  %v1535_v40 = vpop.f32.mrb[41].mxu1  ;;  %v1858_v6 = vmin.f32 %v1856_v41, %v1791_v63 }
 0x22e   :  { %v1658_v54 = vsub.f32 %v1190_v16, %v1535_v40  ;;  %v2273_v8 = vpop.f32.mrb[42].mxu1  ;;  %v1214_v40 = vpop.xlane.xlu0 %1213 }
 0x22f   :  { %v1661_v10 = vsub.f32 %v3051_v5, %v2273_v8  ;;  %v1538_v20 = vpop.f32.mrb[43].mxu1  ;;  %v1859_v11 = vmin.f32 %v1857_v56, %v1792_v4  ;;  %v1896_v12 = vld [vmem:[#allocation2] sm:$0x1]  ;;  %v1731_v31 = vadd.f32 %v2938_v38, %v1660_v13 }
 0x230   :  { %v1729_v3 = vadd.f32 %v2938_v38, %v1658_v54  ;;  %v1659_v46 = vsub.f32 %v1192_v22, %v1538_v20  ;;  %v1898_v15 = vadd.f32 1e-14, %v1896_v12 }
 0x231   :  { %v1732_v0 = vadd.f32 %v2938_v38, %v1661_v10  ;;  %v1795_v16 = vand.u32 2147483647, %v1731_v31 }
 0x232   :  { %v1793_v18 = vand.u32 2147483647, %v1729_v3  ;;  %v1730_v19 = vadd.f32 %v2938_v38, %v1659_v46  ;;  %2607 = vrsqrt.f32 %v1898_v15  ;;  %vm1902_vm1 = vcmp.eq.f32.partialorder %v1898_v15, inf }
 0x233   :  { %v1796_v39 = vand.u32 2147483647, %v1732_v0  ;;  %v1905_v59 = vand.u32 2147483648, %v1898_v15  ;;  %vm1904_vm2 = vcmp.eq.f32.partialorder %v1898_v15, 0.0 }
 0x234   :  { %v1860_v21 = vmin.f32 %v1858_v6, %v1793_v18  ;;  %v1794_v24 = vand.u32 2147483647, %v1730_v19  ;;  %v2276_v5 = vpop.f32.mrb[44].mxu1  ;;  %v1222_v18 = vpop.xlane.xlu0 %1221 }
 0x235   :  { %v1664_v37 = vsub.f32 %v3062_v44, %v2276_v5  ;;  %v1551_v23 = vpop.f32.mrb[45].mxu1 }
 0x236   :  { %v1861_v36 = vmin.f32 %v1859_v11, %v1794_v24  ;;  %v1662_v34 = vsub.f32 %v1198_v60, %v1551_v23  ;;  %v1862_v22 = vmin.f32 %v1860_v21, %v1795_v16  ;;  %v2277_v33 = vpop.f32.mrb[46].mxu1 }
 0x237   :  { %v1665_v45 = vsub.f32 %v3065_v49, %v2277_v33  ;;  %v1554_v52 = vpop.f32.mrb[47].mxu1  ;;  %v1735_v25 = vadd.f32 %v2938_v38, %v1664_v37 }
 0x238   :  { %v1733_v27 = vadd.f32 %v2938_v38, %v1662_v34  ;;  %v1663_v48 = vsub.f32 %v1200_v42, %v1554_v52  ;;  %v1863_v47 = vmin.f32 %v1861_v36, %v1796_v39 }
 0x239   :  { %v1736_v14 = vadd.f32 %v2938_v38, %v1665_v45  ;;  %v1799_v53 = vand.u32 2147483647, %v1735_v25 }
 0x23a   :  { %v1797_v35 = vand.u32 2147483647, %v1733_v27  ;;  %v1734_v44 = vadd.f32 %v2938_v38, %v1663_v48 }
 0x23b   :  { %v1800_v7 = vand.u32 2147483647, %v1736_v14 }
 0x23c   :  { %v2608_v51 = vpop.eup %2607  ;;  %v1864_v26 = vmin.f32 %v1862_v22, %v1797_v35  ;;  %v1798_v55 = vand.u32 2147483647, %v1734_v44  ;;  %v2280_v28 = vpop.f32.mrb[48].mxu1 }
 0x23d   :  { %v1668_v49 = vsub.f32 %v1210_v9, %v2280_v28  ;;  %v1567_v58 = vpop.f32.mrb[49].mxu1  ;;  %v1901_v30 = vmul.f32 %v2608_v51, %v1898_v15  ;;  %v1216_v9 = vpop.xlane.xlu1 %1215 }
 0x23e   :  { %v1865_v60 = vmin.f32 %v1863_v47, %v1798_v55  ;;  %v1666_v61 = vsub.f32 %v1206_v32, %v1567_v58  ;;  %v1866_v62 = vmin.f32 %v1864_v26, %v1799_v53  ;;  %v2281_v1 = vpop.f32.mrb[50].mxu1  ;;  %v1226_v22 = vpop.xlane.xlu0 %1225 }
 0x23f   :  { %v1739_v42 = vadd.f32 %v2938_v38, %v1668_v49  ;;  %v1669_v63 = vsub.f32 %v1212_v17, %v2281_v1  ;;  %v1570_v41 = vpop.f32.mrb[51].mxu1  ;;  %v1903_v43 = vsel %vm1902_vm1, %v1898_v15, %v1901_v30 }
 0x240   :  { %v1737_v2 = vadd.f32 %v2938_v38, %v1666_v61  ;;  %v1667_v4 = vsub.f32 %v1208_v29, %v1570_v41  ;;  %v1867_v56 = vmin.f32 %v1865_v60, %v1800_v7  ;;  %v1906_v13 = vsel %vm1904_vm2, %v1905_v59, %v1903_v43 }
 0x241   :  { %1914 = vst [vmem:[#allocation2] sm:$0x1] %v1906_v13  ;;  %v1740_v54 = vadd.f32 %v2938_v38, %v1669_v63  ;;  %v1803_v10 = vand.u32 2147483647, %v1739_v42  ;;  %v1224_v5 = vpop.xlane.xlu1 %1223  ;;  %v1888_v13 = vld [vmem:[#allocation2 + $0x1] sm:$0x1] }
 0x242   :  { %v1801_v6 = vand.u32 2147483647, %v1737_v2  ;;  %v1738_v8 = vadd.f32 %v2938_v38, %v1667_v4 }
 0x243   :  { %v1804_v31 = vand.u32 2147483647, %v1740_v54 }
 0x244   :  { %v1868_v20 = vmin.f32 %v1866_v62, %v1801_v6  ;;  %v1802_v11 = vand.u32 2147483647, %v1738_v8 }
 0x245   :  { %v2284_v12 = vpop.f32.mrb[52].mxu1  ;;  %v1228_v48 = vpop.xlane.xlu1 %1227 }
 0x246   :  { %v1869_v3 = vmin.f32 %v1867_v56, %v1802_v11  ;;  %v1672_v46 = vsub.f32 %v1218_v50, %v2284_v12  ;;  %v1583_v15 = vpop.f32.mrb[53].mxu1  ;;  %v1870_v17 = vmin.f32 %v1868_v20, %v1803_v10 }
 0x247   :  { %v1670_v0 = vsub.f32 %v1214_v40, %v1583_v15  ;;  %v2285_v19 = vpop.f32.mrb[54].mxu1 }
 0x248   :  { %v1673_v16 = vsub.f32 %v1220_v57, %v2285_v19  ;;  %v1586_v21 = vpop.f32.mrb[55].mxu1  ;;  %v1871_v24 = vmin.f32 %v1869_v3, %v1804_v31  ;;  %v1743_v32 = vadd.f32 %v2938_v38, %v1672_v46 }
 0x249   :  { %v1741_v37 = vadd.f32 %v2938_v38, %v1670_v0  ;;  %v1671_v23 = vsub.f32 %v1216_v9, %v1586_v21 }
 0x24a   :  { %v1744_v36 = vadd.f32 %v2938_v38, %v1673_v16  ;;  %v1807_v33 = vand.u32 2147483647, %v1743_v32 }
 0x24b   :  { %v1805_v39 = vand.u32 2147483647, %v1741_v37  ;;  %v1742_v34 = vadd.f32 %v2938_v38, %v1671_v23 }
 0x24c   :  { %v1808_v47 = vand.u32 2147483647, %v1744_v36 }
 0x24d   :  { %v1872_v29 = vmin.f32 %v1870_v17, %v1805_v39  ;;  %v1806_v45 = vand.u32 2147483647, %v1742_v34  ;;  %v2288_v52 = vpop.f32.mrb[56].mxu1 }
 0x24e   :  { %v1676_v25 = vsub.f32 %v1226_v22, %v2288_v52  ;;  %v1599_v27 = vpop.f32.mrb[57].mxu1 }
 0x24f   :  { %v1873_v35 = vmin.f32 %v1871_v24, %v1806_v45  ;;  %v1674_v14 = vsub.f32 %v1222_v18, %v1599_v27  ;;  %v1874_v44 = vmin.f32 %v1872_v29, %v1807_v33  ;;  %v2289_v50 = vpop.f32.mrb[58].mxu1 }
 0x250   :  { %v1677_v51 = vsub.f32 %v1228_v48, %v2289_v50  ;;  %v1602_v53 = vpop.f32.mrb[59].mxu1  ;;  %v1747_v26 = vadd.f32 %v2938_v38, %v1676_v25 }
 0x251   :  { %v1745_v55 = vadd.f32 %v2938_v38, %v1674_v14  ;;  %v1675_v28 = vsub.f32 %v1224_v5, %v1602_v53  ;;  %v1875_v57 = vmin.f32 %v1873_v35, %v1808_v47 }
 0x252   :  { %v1748_v58 = vadd.f32 %v2938_v38, %v1677_v51  ;;  %v1811_v59 = vand.u32 2147483647, %v1747_v26 }
 0x253   :  { %v1809_v49 = vand.u32 2147483647, %v1745_v55  ;;  %v1746_v30 = vadd.f32 %v2938_v38, %v1675_v28 }
 0x254   :  { %v1812_v62 = vand.u32 2147483647, %v1748_v58 }
 0x255   :  { %v1876_v7 = vmin.f32 %v1874_v44, %v1809_v49  ;;  %v1810_v60 = vand.u32 2147483647, %v1746_v30 }
 0x257   :  { %v1878_v61 = vmin.f32 %v1876_v7, %v1811_v59  ;;  %v1877_v1 = vmin.f32 %v1875_v57, %v1810_v60 }
 0x259   :  { %v1879_v42 = vmin.f32 %v1877_v1, %v1812_v62 }
 0x25b   :  { %v1880_v63 = vmin.f32 %v1878_v61, %v1879_v42 }
 0x25d   :  { %v1881_v41 = vrot.slane %v1880_v63, 4 }
 0x25f   :  { %v1882_v43 = vmin.f32 %v1880_v63, %v1881_v41 }
 0x261   :  { %v1883_v2 = vrot.slane %v1882_v43, 2 }
 0x263   :  { %v1884_v4 = vmin.f32 %v1882_v43, %v1883_v2 }
 0x265   :  { %v1885_v56 = vrot.slane %v1884_v4, 1 }
 0x267   :  { %v1886_v40 = vmin.f32 %v1884_v4, %v1885_v56 }
 0x269   :  { %v1890_v6 = vmin.f32 %v1888_v13, %v1886_v40 }
 0x26b   :  { %1892 = vst [vmem:[#allocation2 + $0x1] sm:$0x1] %v1890_v6 }
 0x272   :  { %v1897_v54 = vld [vmem:[#allocation2 + $0x1] sm:$0x1] }
 0x273   :  { %v1899_v8 = vadd.f32 1e-14, %v1897_v54 }
 0x275   :  { %2609 = vrsqrt.f32 %v1899_v8  ;;  %vm1909_vm3 = vcmp.eq.f32.partialorder %v1899_v8, inf  ;;  %v1912_v10 = vand.u32 2147483648, %v1899_v8  ;;  %vm1911_vm4 = vcmp.eq.f32.partialorder %v1899_v8, 0.0 }
 0x27f   :  { %v2610_v38 = vpop.eup %2609 }
 0x280   :  { %v1908_v9 = vmul.f32 %v2610_v38, %v1899_v8 }
 0x282   :  { %v1910_v20 = vsel %vm1909_vm3, %v1899_v8, %v1908_v9 }
 0x283   :  { %v1913_v11 = vsel %vm1911_vm4, %v1912_v10, %v1910_v20 }
 0x284   :  { %1915 = vst [vmem:[#allocation2 + $0x1] sm:$0x1] %v1913_v11 }
 0x285   :  { %2623 = shalt.err (!%p2620_p4)
}
 0x286   :  { %s2624_s28 = scalar_lea.hbm %s3115_s5, 32 }
 0x287   :  { %p2625_p5 = scmp.ne.s32.totalorder %s3115_s5, %s2624_s28  ;;  %p2628_p6 = scmp.lt.u32.totalorder %s2624_s28, %s3115_s5 }
 0x289   :  { %p2630_p7 = pnand %p2628_p6, %p2625_p5 }
 0x28b   :  { %2633 = shalt.err (!%p2630_p7)
}
 0x28c   :  { %s2638_s8 = smov 16   ;;  %s2639_s9 = smov 1  }
 0x28d   :  { %1927 = dma.vmem_to_hbm [thread:$0]  %s1922_s25, 32, %s3115_s5, [#allocation3], %s2638_s8, %s2638_s8, %s2639_s9  }
 0x28e   :  { %2634 = dma.done.wait [#allocation3], 32  }
 0x28f   :  { %2635 = vsyncadd [#allocation3], 4294967264 }
 0x290   :  { %1931 = vsyncpa [#allocation3], 1 }

</bundles_post_ra>
